<compile_context>
chip_gen: v7x
topology: tpu7x:2x2x1
jax: 0.10.0
libtpu: 0.0.40
codegen_flags: <defaults>
</compile_context>

<pallas_src>
import jax
import jax.numpy as jnp
from jax.experimental import pallas as pl
from jax.experimental.pallas import tpu as pltpu

ROBOT_DIM = 9      # robot state length (after trans_no_rotation)
HUMAN_DIM = 5      # human state length
HUMAN_NUM = 5      # number of humans
N_NODES = 1 + HUMAN_NUM          # 6
EMB_HIDDEN = 64    # wr_dims / wh_dims hidden
X_DIM = 32         # config.gcn.X_dim
FC_HIDDEN = 256    # action_network hidden
ACTION_DIM = 2

PACK_W = 64        # packed input row: [robot(9) | humans(5*5) | zero pad]
TILE_B_MAX = 1024  # batch rows per grid step (a few MiB of VMEM at most)


def _relu(x):
    return jnp.maximum(x, 0.0)


def _round_up(n, m):
    return ((n + m - 1) // m) * m


# ----------------------------------------------------------------------------
# Pallas kernel: one grid step = tb batch elements.
#
# Layouts inside the kernel (lane-dense, node index lives on the lane axis):
#   Xw  (tb, 192): lane block n (32 lanes) = embedding of node n
#                  (node 0 = robot, nodes 1..5 = humans)
#   S,A (tb, 36) : column 6*n + m = score / attention of target n vs source m
# ----------------------------------------------------------------------------
def actor_kernel(x_ref, w1b, b1b, w2b, b2b, wa_s, rep6, sumplace, gsum, gbcast,
                 abcast, gat32, wg1s, ext0, wg2t, wf1, bf1, wf2, bf2, maxa,
                 o_ref):
    f32 = jnp.float32

    def dot(a, b):
        return jnp.dot(a, b, preferred_element_type=f32)

    # --- node embeddings: block-structured weights do the robot/human routing
    x = x_ref[...]                                    # (tb, 64)
    h1 = _relu(dot(x, w1b[...]) + b1b[...])           # (tb, 6*64)
    Xw = _relu(dot(h1, w2b[...]) + b2b[...])          # (tb, 6*32)

    # --- embedded-gaussian scores, assembled lane-dense into (tb, 36) --------
    S = None
    for n in range(N_NODES):
        qn = dot(Xw, wa_s[n])                         # (tb, 32)  = X[n] @ Wa
        pn = dot(qn, rep6[...]) * Xw                  # (tb, 192) Q[n]*X[m] blocks
        sn = dot(pn, sumplace[n])                     # (tb, 36)  block-sum + place
        S = sn if S is None else S + sn

    # Row softmax per target group of 6 (a single per-row max is valid for
    # every group; it cancels inside each group's softmax).
    mx = jnp.max(S, axis=-1, keepdims=True)           # (tb, 1)
    E = jnp.exp(S - mx)                               # ONE exp (EUP), 36 lanes
    inv = pl.reciprocal(dot(E, gsum[...]), approx=True)   # (tb, 6) denominators
    A = E * dot(inv, gbcast[...])                     # (tb, 36)

    # --- GCN layer 1: H1[n] = relu((sum_m A[n,m] X[m]) @ Wg1) + X[n] ---------
    H1pre = None
    a_exp0 = None
    for n in range(N_NODES):
        a_exp = dot(A, abcast[n])                     # (tb, 192): A[n,m] per block m
        if n == 0:
            a_exp0 = a_exp                            # robot attention row (layer 2)
        ax_n = dot(a_exp * Xw, gat32[...])            # (tb, 32) = sum_m A[n,m] X[m]
        h = dot(ax_n, wg1s[n])                        # (tb, 192), placed in block n
        H1pre = h if H1pre is None else H1pre + h
    H1w = _relu(H1pre) + Xw                           # (tb, 192)

    # --- GCN layer 2, robot node only (Wg2 folded into the gather matmul) ----
    H2_0 = _relu(dot(a_exp0 * H1w, wg2t[...])) + dot(H1w, ext0[...])   # (tb, 32)

    # --- action MLP -> bounded tanh action ------------------------------------
    z = _relu(dot(H2_0, wf1[...]) + bf1[...])         # (tb, 256)
    a_out = dot(z, wf2[...]) + bf2[...]               # (tb, 2)
    o_ref[...] = maxa[...] * jnp.tanh(a_out)


# ----------------------------------------------------------------------------
# Glue: trans_no_rotation (elementwise preprocessing; faithful to the torch
# source, including the duplicated theta slots in new_robot_state).
# ----------------------------------------------------------------------------
def trans_no_rotation(robot_state, human_state):
    # robot_state: (B, 1, 9), human_state: (B, H, 5)
    dx = robot_state[:, :, 5:6] - robot_state[:, :, 0:1]
    dy = robot_state[:, :, 6:7] - robot_state[:, :, 1:2]
    radius_r = robot_state[:, :, 4:5]
    dg = jnp.sqrt(dx * dx + dy * dy)
    rot = jnp.arctan2(dy, dx)
    vx = robot_state[:, :, 2:3]
    vy = robot_state[:, :, 3:4]
    v_pref = robot_state[:, :, 7:8]
    theta = robot_state[:, :, 8:9]
    new_robot = jnp.concatenate(
        [theta, theta, vx, vy, radius_r, dg, rot, v_pref, theta], axis=2)  # (B, 1, 9)

    dx1 = human_state[:, :, 0:1] - robot_state[:, :, 0:1]
    dy1 = human_state[:, :, 1:2] - robot_state[:, :, 1:2]
    vx1 = human_state[:, :, 2:3]
    vy1 = human_state[:, :, 3:4]
    radius_h = human_state[:, :, 4:5]
    new_human = jnp.concatenate([dx1, dy1, vx1, vy1, radius_h], axis=2)    # (B, H, 5)
    return new_robot, new_human


# ----------------------------------------------------------------------------
# Constant block-structured weights / selector matrices (built once, host side,
# all VMEM-resident inside the kernel).
# ----------------------------------------------------------------------------
KERNEL_PARAM_ORDER = ("w1b", "b1b", "w2b", "b2b", "wa_s", "rep6", "sumplace",
                      "gsum", "gbcast", "abcast", "gat32", "wg1s", "ext0",
                      "wg2t", "wf1", "bf1", "wf2", "bf2", "maxa")


def build_kernel_params(p):
    f32 = jnp.float32
    N, X, H = N_NODES, X_DIM, EMB_HIDDEN
    eyeX = jnp.eye(X, dtype=f32)
    eyeN = jnp.eye(N, dtype=f32)

    # Embedding layer 1/2 with robot + human blocks routed by block structure.
    w1b = jnp.zeros((PACK_W, N * H), f32)
    w1b = w1b.at[:ROBOT_DIM, :H].set(p["wr1"])
    w2b = jnp.zeros((N * H, N * X), f32)
    w2b = w2b.at[:H, :X].set(p["wr2"])
    for n in range(HUMAN_NUM):
        r0 = ROBOT_DIM + n * HUMAN_DIM
        w1b = w1b.at[r0:r0 + HUMAN_DIM, (n + 1) * H:(n + 2) * H].set(p["wh1"])
        w2b = w2b.at[(n + 1) * H:(n + 2) * H, (n + 1) * X:(n + 2) * X].set(p["wh2"])
    b1b = jnp.concatenate([p["br1"]] + [p["bh1"]] * HUMAN_NUM, axis=1)   # (1, 384)
    b2b = jnp.concatenate([p["br2"]] + [p["bh2"]] * HUMAN_NUM, axis=1)   # (1, 192)

    # Per-target selector / routing constants.
    wa_s = jnp.zeros((N, N * X, X), f32)       # wa placed at row-block n
    wg1s = jnp.zeros((N, X, N * X), f32)       # wg1 placed at column-block n
    sumplace = jnp.zeros((N, N * X, N * N), f32)   # sum over d, place at col 6n+m
    abcast = jnp.zeros((N, N * N, N * X), f32)     # A[:,6n+m] -> lane block m
    for n in range(N):
        wa_s = wa_s.at[n, n * X:(n + 1) * X, :].set(p["wa"])
        wg1s = wg1s.at[n, :, n * X:(n + 1) * X].set(p["wg1"])
        for m in range(N):
            sumplace = sumplace.at[n, m * X:(m + 1) * X, n * N + m].set(1.0)
            abcast = abcast.at[n, n * N + m, m * X:(m + 1) * X].set(1.0)

    return {
        "w1b": w1b, "b1b": b1b, "w2b": w2b, "b2b": b2b,
        "wa_s": wa_s,
        "rep6": jnp.tile(eyeX, (1, N)),                  # (32, 192) lane tile
        "sumplace": sumplace,
        "gsum": jnp.repeat(eyeN, N, axis=0),             # (36, 6) group sums
        "gbcast": jnp.repeat(eyeN, N, axis=1),           # (6, 36) group broadcast
        "abcast": abcast,
        "gat32": jnp.tile(eyeX, (N, 1)),                 # (192, 32) sum over blocks
        "wg1s": wg1s,
        "ext0": jnp.zeros((N * X, X), f32).at[:X, :].set(eyeX),   # robot block extract
        "wg2t": jnp.tile(p["wg2"], (N, 1)),              # (192, 32): gather + Wg2 fused
        "wf1": p["wf1"], "bf1": p["bf1"], "wf2": p["wf2"], "bf2": p["bf2"],
        "maxa": p["maxa"],
    }


def _choose_tile(B, tile_b):
    tile_b = _round_up(max(int(tile_b), 8), 8)
    Bp8 = _round_up(B, 8)
    tb = min(tile_b, Bp8)
    if Bp8 >= 16:
        # keep >= 2 grid steps so the "parallel" axis shards across v7x's 2 TCs
        tb = min(tb, _round_up((Bp8 + 1) // 2, 8))
    tb = max(tb, 8)
    return tb, _round_up(B, tb)


def actor_forward(robot_state, human_state, params, tile_b=TILE_B_MAX):
    f32 = jnp.float32
    new_robot, new_human = trans_no_rotation(robot_state, human_state)
    B = new_robot.shape[0]

    # Pack robot + humans into one lane-dense slab -> single contiguous DMA
    # per grid step (no 20-byte-row strided sub-transfers).
    robot2d = new_robot[:, 0, :].astype(f32)                         # (B, 9)
    hum2d = new_human.reshape(B, HUMAN_NUM * HUMAN_DIM).astype(f32)  # (B, 25)
    used = ROBOT_DIM + HUMAN_NUM * HUMAN_DIM
    packed = jnp.concatenate(
        [robot2d, hum2d, jnp.zeros((B, PACK_W - used), f32)], axis=1)  # (B, 64)

    tb, Bp = _choose_tile(B, tile_b)
    if Bp != B:
        packed = jnp.pad(packed, ((0, Bp - B), (0, 0)))

    kp = build_kernel_params(params)
    weight_list = [kp[k] for k in KERNEL_PARAM_ORDER]

    def _const_spec(arr):
        nd = arr.ndim
        return pl.BlockSpec(arr.shape, lambda b, _nd=nd: (0,) * _nd)

    in_specs = [pl.BlockSpec((tb, PACK_W), lambda b: (b, 0))]
    in_specs += [_const_spec(w) for w in weight_list]

    out = pl.pallas_call(
        actor_kernel,
        out_shape=jax.ShapeDtypeStruct((Bp, ACTION_DIM), f32),
        grid=(Bp // tb,),
        in_specs=in_specs,
        out_specs=pl.BlockSpec((tb, ACTION_DIM), lambda b: (b, 0)),
        compiler_params=pltpu.CompilerParams(
            dimension_semantics=("parallel",),
            vmem_limit_bytes=32 * 1024 * 1024,
        ),
    )(packed, *weight_list)
    return out[:B]                                                   # (B, ACTION_DIM)


# ----------------------------------------------------------------------------
# Pure-JAX reference (same math, no Pallas) for a correctness check.
# ----------------------------------------------------------------------------
def actor_reference(robot_state, human_state, p):
    new_robot, new_human = trans_no_rotation(robot_state, human_state)
    r_emb = _relu(_relu(new_robot @ p["wr1"] + p["br1"]) @ p["wr2"] + p["br2"])  # (B,1,X)
    h_emb = _relu(_relu(new_human @ p["wh1"] + p["bh1"]) @ p["wh2"] + p["bh2"])  # (B,H,X)
    X = jnp.concatenate([r_emb, h_emb], axis=1)                                  # (B,N,X)
    S = jnp.einsum("bnd,de,bme->bnm", X, p["wa"], X)
    A = jax.nn.softmax(S, axis=-1)
    H1 = _relu(jnp.einsum("bnm,bmd->bnd", A, X) @ p["wg1"]) + X
    H2 = _relu(jnp.einsum("bnm,bmd->bnd", A, H1) @ p["wg2"]) + H1
    s = H2[:, 0, :]
    a = _relu(s @ p["wf1"] + p["bf1"]) @ p["wf2"] + p["bf2"]
    return p["maxa"] * jnp.tanh(a)


def init_params(key):
    keys = jax.random.split(key, 15)

    def w(k, shape):
        return (jax.random.normal(k, shape, jnp.float32) / jnp.sqrt(shape[0])).astype(jnp.float32)

    def b(k, n):
        return (0.01 * jax.random.normal(k, (1, n), jnp.float32)).astype(jnp.float32)

    params = {
        "wr1": w(keys[0], (ROBOT_DIM, EMB_HIDDEN)), "br1": b(keys[1], EMB_HIDDEN),
        "wr2": w(keys[2], (EMB_HIDDEN, X_DIM)),     "br2": b(keys[3], X_DIM),
        "wh1": w(keys[4], (HUMAN_DIM, EMB_HIDDEN)), "bh1": b(keys[5], EMB_HIDDEN),
        "wh2": w(keys[6], (EMB_HIDDEN, X_DIM)),     "bh2": b(keys[7], X_DIM),
        "wa":  w(keys[8], (X_DIM, X_DIM)),
        "wg1": w(keys[9], (X_DIM, X_DIM)),
        "wg2": w(keys[10], (X_DIM, X_DIM)),
        "wf1": w(keys[11], (X_DIM, FC_HIDDEN)),     "bf1": b(keys[12], FC_HIDDEN),
        "wf2": w(keys[13], (FC_HIDDEN, ACTION_DIM)), "bf2": b(keys[14], ACTION_DIM),
        # max_action (torch.from_numpy(max_action)), broadcast over batch
        "maxa": jnp.array([[1.0, 0.5]], dtype=jnp.float32),
    }
    return params


if __name__ == "__main__":
    key = jax.random.PRNGKey(0)
    kr, kh, kp = jax.random.split(key, 3)
    params = init_params(kp)

    # Small check (single tile).
    batch = 2
    robot_state = jax.random.normal(kr, (batch, 1, ROBOT_DIM), jnp.float32)
    human_state = jax.random.normal(kh, (batch, HUMAN_NUM, HUMAN_DIM), jnp.float32)
    out = jax.block_until_ready(actor_forward(robot_state, human_state, params))
    ref = actor_reference(robot_state, human_state, params)
    assert out.shape == (batch, ACTION_DIM), out.shape
    # tolerance accounts for the approximate-EUP reciprocal in the softmax
    assert jnp.allclose(out, ref, atol=5e-3, rtol=5e-3), (out, ref)

    # Multi-tile check: B=19 -> tile capped at 16, padded batch 32, grid of 2
    # steps (exercises the >=2-step / v7x dual-TC path and the padding path).
    batch2 = 19
    kr2, kh2 = jax.random.split(kh)
    rs2 = jax.random.normal(kr2, (batch2, 1, ROBOT_DIM), jnp.float32)
    hs2 = jax.random.normal(kh2, (batch2, HUMAN_NUM, HUMAN_DIM), jnp.float32)
    out2 = jax.block_until_ready(actor_forward(rs2, hs2, params))
    ref2 = actor_reference(rs2, hs2, params)
    assert out2.shape == (batch2, ACTION_DIM), out2.shape
    assert jnp.allclose(out2, ref2, atol=5e-3, rtol=5e-3), (out2, ref2)

    print("KERNEL_OK")
</pallas_src>

<mosaic_0001>
module attributes {stable_mosaic.version = 11 : i64} {
  func.func @actor_kernel(%arg0: i32, %arg1: memref<8x64xf32, #tpu.memory_space<vmem>>, %arg2: memref<64x384xf32, #tpu.memory_space<vmem>>, %arg3: memref<1x384xf32, #tpu.memory_space<vmem>>, %arg4: memref<384x192xf32, #tpu.memory_space<vmem>>, %arg5: memref<1x192xf32, #tpu.memory_space<vmem>>, %arg6: memref<6x192x32xf32, #tpu.memory_space<vmem>>, %arg7: memref<32x192xf32, #tpu.memory_space<vmem>>, %arg8: memref<6x192x36xf32, #tpu.memory_space<vmem>>, %arg9: memref<36x6xf32, #tpu.memory_space<vmem>>, %arg10: memref<6x36xf32, #tpu.memory_space<vmem>>, %arg11: memref<6x36x192xf32, #tpu.memory_space<vmem>>, %arg12: memref<192x32xf32, #tpu.memory_space<vmem>>, %arg13: memref<6x32x192xf32, #tpu.memory_space<vmem>>, %arg14: memref<192x32xf32, #tpu.memory_space<vmem>>, %arg15: memref<192x32xf32, #tpu.memory_space<vmem>>, %arg16: memref<32x256xf32, #tpu.memory_space<vmem>>, %arg17: memref<1x256xf32, #tpu.memory_space<vmem>>, %arg18: memref<256x2xf32, #tpu.memory_space<vmem>>, %arg19: memref<1x2xf32, #tpu.memory_space<vmem>>, %arg20: memref<1x2xf32, #tpu.memory_space<vmem>>, %arg21: memref<8x2xf32, #tpu.memory_space<vmem>>) attributes {dimension_semantics = [#tpu.dimension_semantics<parallel>], iteration_bounds = array<i64: 1>, scalar_prefetch = 0 : i64, scratch_operands = 0 : i64, tpu.core_type = #tpu.core_type<tc>, window_params = [{transform_indices = @transform_0, window_bounds = array<i64: 8, 64>}, {pipeline_mode = #tpu.pipeline_mode<synchronous>, transform_indices = @transform_1, window_bounds = array<i64: 64, 384>}, {pipeline_mode = #tpu.pipeline_mode<synchronous>, transform_indices = @transform_2, window_bounds = array<i64: 1, 384>}, {pipeline_mode = #tpu.pipeline_mode<synchronous>, transform_indices = @transform_3, window_bounds = array<i64: 384, 192>}, {pipeline_mode = #tpu.pipeline_mode<synchronous>, transform_indices = @transform_4, window_bounds = array<i64: 1, 192>}, {pipeline_mode = #tpu.pipeline_mode<synchronous>, transform_indices = @transform_5, window_bounds = array<i64: 6, 192, 32>}, {pipeline_mode = #tpu.pipeline_mode<synchronous>, transform_indices = @transform_6, window_bounds = array<i64: 32, 192>}, {pipeline_mode = #tpu.pipeline_mode<synchronous>, transform_indices = @transform_7, window_bounds = array<i64: 6, 192, 36>}, {pipeline_mode = #tpu.pipeline_mode<synchronous>, transform_indices = @transform_8, window_bounds = array<i64: 36, 6>}, {pipeline_mode = #tpu.pipeline_mode<synchronous>, transform_indices = @transform_9, window_bounds = array<i64: 6, 36>}, {pipeline_mode = #tpu.pipeline_mode<synchronous>, transform_indices = @transform_10, window_bounds = array<i64: 6, 36, 192>}, {pipeline_mode = #tpu.pipeline_mode<synchronous>, transform_indices = @transform_11, window_bounds = array<i64: 192, 32>}, {pipeline_mode = #tpu.pipeline_mode<synchronous>, transform_indices = @transform_12, window_bounds = array<i64: 6, 32, 192>}, {pipeline_mode = #tpu.pipeline_mode<synchronous>, transform_indices = @transform_13, window_bounds = array<i64: 192, 32>}, {pipeline_mode = #tpu.pipeline_mode<synchronous>, transform_indices = @transform_14, window_bounds = array<i64: 192, 32>}, {pipeline_mode = #tpu.pipeline_mode<synchronous>, transform_indices = @transform_15, window_bounds = array<i64: 32, 256>}, {pipeline_mode = #tpu.pipeline_mode<synchronous>, transform_indices = @transform_16, window_bounds = array<i64: 1, 256>}, {pipeline_mode = #tpu.pipeline_mode<synchronous>, transform_indices = @transform_17, window_bounds = array<i64: 256, 2>}, {pipeline_mode = #tpu.pipeline_mode<synchronous>, transform_indices = @transform_18, window_bounds = array<i64: 1, 2>}, {pipeline_mode = #tpu.pipeline_mode<synchronous>, transform_indices = @transform_19, window_bounds = array<i64: 1, 2>}, {transform_indices = @transform_20, window_bounds = array<i64: 8, 2>}]} {
    %c0 = arith.constant 0 : index
    %c0_0 = arith.constant 0 : index
    %0 = vector.load %arg1[%c0, %c0_0] : memref<8x64xf32, #tpu.memory_space<vmem>>, vector<8x64xf32>
    %c0_1 = arith.constant 0 : index
    %c0_2 = arith.constant 0 : index
    %1 = vector.load %arg2[%c0_1, %c0_2] : memref<64x384xf32, #tpu.memory_space<vmem>>, vector<64x384xf32>
    %cst = arith.constant dense<0.000000e+00> : vector<8x384xf32>
    %2 = tpu.matmul %0, %1, %cst {dimension_numbers = #tpu.dot_dimension_numbers<[1], [0], [0], [1], [0, 0, 1, 1], [], []>} : vector<8x64xf32>, vector<64x384xf32>, vector<8x384xf32> -> vector<8x384xf32>
    %c0_3 = arith.constant 0 : index
    %c0_4 = arith.constant 0 : index
    %3 = vector.load %arg3[%c0_3, %c0_4] : memref<1x384xf32, #tpu.memory_space<vmem>>, vector<1x384xf32>
    %4 = vector.broadcast %3 : vector<1x384xf32> to vector<8x384xf32>
    %5 = arith.addf %2, %4 : vector<8x384xf32>
    %cst_5 = arith.constant 0.000000e+00 : f32
    %6 = vector.broadcast %cst_5 : f32 to vector<8x384xf32>
    %7 = arith.maximumf %5, %6 : vector<8x384xf32>
    %c0_6 = arith.constant 0 : index
    %c0_7 = arith.constant 0 : index
    %8 = vector.load %arg4[%c0_6, %c0_7] : memref<384x192xf32, #tpu.memory_space<vmem>>, vector<384x192xf32>
    %cst_8 = arith.constant dense<0.000000e+00> : vector<8x192xf32>
    %9 = tpu.matmul %7, %8, %cst_8 {dimension_numbers = #tpu.dot_dimension_numbers<[1], [0], [0], [1], [0, 0, 1, 1], [], []>} : vector<8x384xf32>, vector<384x192xf32>, vector<8x192xf32> -> vector<8x192xf32>
    %c0_9 = arith.constant 0 : index
    %c0_10 = arith.constant 0 : index
    %10 = vector.load %arg5[%c0_9, %c0_10] : memref<1x192xf32, #tpu.memory_space<vmem>>, vector<1x192xf32>
    %11 = vector.broadcast %10 : vector<1x192xf32> to vector<8x192xf32>
    %12 = arith.addf %9, %11 : vector<8x192xf32>
    %cst_11 = arith.constant 0.000000e+00 : f32
    %13 = vector.broadcast %cst_11 : f32 to vector<8x192xf32>
    %14 = arith.maximumf %12, %13 : vector<8x192xf32>
    %c0_12 = arith.constant 0 : index
    %c0_13 = arith.constant 0 : index
    %c0_14 = arith.constant 0 : index
    %15 = vector.load %arg6[%c0_12, %c0_13, %c0_14] : memref<6x192x32xf32, #tpu.memory_space<vmem>>, vector<1x192x32xf32>
    %16 = vector.shape_cast %15 : vector<1x192x32xf32> to vector<192x32xf32>
    %cst_15 = arith.constant dense<0.000000e+00> : vector<8x32xf32>
    %17 = tpu.matmul %14, %16, %cst_15 {dimension_numbers = #tpu.dot_dimension_numbers<[1], [0], [0], [1], [0, 0, 1, 1], [], []>} : vector<8x192xf32>, vector<192x32xf32>, vector<8x32xf32> -> vector<8x32xf32>
    %c0_16 = arith.constant 0 : index
    %c0_17 = arith.constant 0 : index
    %18 = vector.load %arg7[%c0_16, %c0_17] : memref<32x192xf32, #tpu.memory_space<vmem>>, vector<32x192xf32>
    %cst_18 = arith.constant dense<0.000000e+00> : vector<8x192xf32>
    %19 = tpu.matmul %17, %18, %cst_18 {dimension_numbers = #tpu.dot_dimension_numbers<[1], [0], [0], [1], [0, 0, 1, 1], [], []>} : vector<8x32xf32>, vector<32x192xf32>, vector<8x192xf32> -> vector<8x192xf32>
    %20 = arith.mulf %19, %14 : vector<8x192xf32>
    %c0_19 = arith.constant 0 : index
    %c0_20 = arith.constant 0 : index
    %c0_21 = arith.constant 0 : index
    %21 = vector.load %arg8[%c0_19, %c0_20, %c0_21] : memref<6x192x36xf32, #tpu.memory_space<vmem>>, vector<1x192x36xf32>
    %22 = vector.shape_cast %21 : vector<1x192x36xf32> to vector<192x36xf32>
    %cst_22 = arith.constant dense<0.000000e+00> : vector<8x36xf32>
    %23 = tpu.matmul %20, %22, %cst_22 {dimension_numbers = #tpu.dot_dimension_numbers<[1], [0], [0], [1], [0, 0, 1, 1], [], []>} : vector<8x192xf32>, vector<192x36xf32>, vector<8x36xf32> -> vector<8x36xf32>
    %c1 = arith.constant 1 : index
    %c0_23 = arith.constant 0 : index
    %c0_24 = arith.constant 0 : index
    %24 = vector.load %arg6[%c1, %c0_23, %c0_24] : memref<6x192x32xf32, #tpu.memory_space<vmem>>, vector<1x192x32xf32>
    %25 = vector.shape_cast %24 : vector<1x192x32xf32> to vector<192x32xf32>
    %cst_25 = arith.constant dense<0.000000e+00> : vector<8x32xf32>
    %26 = tpu.matmul %14, %25, %cst_25 {dimension_numbers = #tpu.dot_dimension_numbers<[1], [0], [0], [1], [0, 0, 1, 1], [], []>} : vector<8x192xf32>, vector<192x32xf32>, vector<8x32xf32> -> vector<8x32xf32>
    %c0_26 = arith.constant 0 : index
    %c0_27 = arith.constant 0 : index
    %27 = vector.load %arg7[%c0_26, %c0_27] : memref<32x192xf32, #tpu.memory_space<vmem>>, vector<32x192xf32>
    %cst_28 = arith.constant dense<0.000000e+00> : vector<8x192xf32>
    %28 = tpu.matmul %26, %27, %cst_28 {dimension_numbers = #tpu.dot_dimension_numbers<[1], [0], [0], [1], [0, 0, 1, 1], [], []>} : vector<8x32xf32>, vector<32x192xf32>, vector<8x192xf32> -> vector<8x192xf32>
    %29 = arith.mulf %28, %14 : vector<8x192xf32>
    %c1_29 = arith.constant 1 : index
    %c0_30 = arith.constant 0 : index
    %c0_31 = arith.constant 0 : index
    %30 = vector.load %arg8[%c1_29, %c0_30, %c0_31] : memref<6x192x36xf32, #tpu.memory_space<vmem>>, vector<1x192x36xf32>
    %31 = vector.shape_cast %30 : vector<1x192x36xf32> to vector<192x36xf32>
    %cst_32 = arith.constant dense<0.000000e+00> : vector<8x36xf32>
    %32 = tpu.matmul %29, %31, %cst_32 {dimension_numbers = #tpu.dot_dimension_numbers<[1], [0], [0], [1], [0, 0, 1, 1], [], []>} : vector<8x192xf32>, vector<192x36xf32>, vector<8x36xf32> -> vector<8x36xf32>
    %33 = arith.addf %23, %32 : vector<8x36xf32>
    %c2 = arith.constant 2 : index
    %c0_33 = arith.constant 0 : index
    %c0_34 = arith.constant 0 : index
    %34 = vector.load %arg6[%c2, %c0_33, %c0_34] : memref<6x192x32xf32, #tpu.memory_space<vmem>>, vector<1x192x32xf32>
    %35 = vector.shape_cast %34 : vector<1x192x32xf32> to vector<192x32xf32>
    %cst_35 = arith.constant dense<0.000000e+00> : vector<8x32xf32>
    %36 = tpu.matmul %14, %35, %cst_35 {dimension_numbers = #tpu.dot_dimension_numbers<[1], [0], [0], [1], [0, 0, 1, 1], [], []>} : vector<8x192xf32>, vector<192x32xf32>, vector<8x32xf32> -> vector<8x32xf32>
    %c0_36 = arith.constant 0 : index
    %c0_37 = arith.constant 0 : index
    %37 = vector.load %arg7[%c0_36, %c0_37] : memref<32x192xf32, #tpu.memory_space<vmem>>, vector<32x192xf32>
    %cst_38 = arith.constant dense<0.000000e+00> : vector<8x192xf32>
    %38 = tpu.matmul %36, %37, %cst_38 {dimension_numbers = #tpu.dot_dimension_numbers<[1], [0], [0], [1], [0, 0, 1, 1], [], []>} : vector<8x32xf32>, vector<32x192xf32>, vector<8x192xf32> -> vector<8x192xf32>
    %39 = arith.mulf %38, %14 : vector<8x192xf32>
    %c2_39 = arith.constant 2 : index
    %c0_40 = arith.constant 0 : index
    %c0_41 = arith.constant 0 : index
    %40 = vector.load %arg8[%c2_39, %c0_40, %c0_41] : memref<6x192x36xf32, #tpu.memory_space<vmem>>, vector<1x192x36xf32>
    %41 = vector.shape_cast %40 : vector<1x192x36xf32> to vector<192x36xf32>
    %cst_42 = arith.constant dense<0.000000e+00> : vector<8x36xf32>
    %42 = tpu.matmul %39, %41, %cst_42 {dimension_numbers = #tpu.dot_dimension_numbers<[1], [0], [0], [1], [0, 0, 1, 1], [], []>} : vector<8x192xf32>, vector<192x36xf32>, vector<8x36xf32> -> vector<8x36xf32>
    %43 = arith.addf %33, %42 : vector<8x36xf32>
    %c3 = arith.constant 3 : index
    %c0_43 = arith.constant 0 : index
    %c0_44 = arith.constant 0 : index
    %44 = vector.load %arg6[%c3, %c0_43, %c0_44] : memref<6x192x32xf32, #tpu.memory_space<vmem>>, vector<1x192x32xf32>
    %45 = vector.shape_cast %44 : vector<1x192x32xf32> to vector<192x32xf32>
    %cst_45 = arith.constant dense<0.000000e+00> : vector<8x32xf32>
    %46 = tpu.matmul %14, %45, %cst_45 {dimension_numbers = #tpu.dot_dimension_numbers<[1], [0], [0], [1], [0, 0, 1, 1], [], []>} : vector<8x192xf32>, vector<192x32xf32>, vector<8x32xf32> -> vector<8x32xf32>
    %c0_46 = arith.constant 0 : index
    %c0_47 = arith.constant 0 : index
    %47 = vector.load %arg7[%c0_46, %c0_47] : memref<32x192xf32, #tpu.memory_space<vmem>>, vector<32x192xf32>
    %cst_48 = arith.constant dense<0.000000e+00> : vector<8x192xf32>
    %48 = tpu.matmul %46, %47, %cst_48 {dimension_numbers = #tpu.dot_dimension_numbers<[1], [0], [0], [1], [0, 0, 1, 1], [], []>} : vector<8x32xf32>, vector<32x192xf32>, vector<8x192xf32> -> vector<8x192xf32>
    %49 = arith.mulf %48, %14 : vector<8x192xf32>
    %c3_49 = arith.constant 3 : index
    %c0_50 = arith.constant 0 : index
    %c0_51 = arith.constant 0 : index
    %50 = vector.load %arg8[%c3_49, %c0_50, %c0_51] : memref<6x192x36xf32, #tpu.memory_space<vmem>>, vector<1x192x36xf32>
    %51 = vector.shape_cast %50 : vector<1x192x36xf32> to vector<192x36xf32>
    %cst_52 = arith.constant dense<0.000000e+00> : vector<8x36xf32>
    %52 = tpu.matmul %49, %51, %cst_52 {dimension_numbers = #tpu.dot_dimension_numbers<[1], [0], [0], [1], [0, 0, 1, 1], [], []>} : vector<8x192xf32>, vector<192x36xf32>, vector<8x36xf32> -> vector<8x36xf32>
    %53 = arith.addf %43, %52 : vector<8x36xf32>
    %c4 = arith.constant 4 : index
    %c0_53 = arith.constant 0 : index
    %c0_54 = arith.constant 0 : index
    %54 = vector.load %arg6[%c4, %c0_53, %c0_54] : memref<6x192x32xf32, #tpu.memory_space<vmem>>, vector<1x192x32xf32>
    %55 = vector.shape_cast %54 : vector<1x192x32xf32> to vector<192x32xf32>
    %cst_55 = arith.constant dense<0.000000e+00> : vector<8x32xf32>
    %56 = tpu.matmul %14, %55, %cst_55 {dimension_numbers = #tpu.dot_dimension_numbers<[1], [0], [0], [1], [0, 0, 1, 1], [], []>} : vector<8x192xf32>, vector<192x32xf32>, vector<8x32xf32> -> vector<8x32xf32>
    %c0_56 = arith.constant 0 : index
    %c0_57 = arith.constant 0 : index
    %57 = vector.load %arg7[%c0_56, %c0_57] : memref<32x192xf32, #tpu.memory_space<vmem>>, vector<32x192xf32>
    %cst_58 = arith.constant dense<0.000000e+00> : vector<8x192xf32>
    %58 = tpu.matmul %56, %57, %cst_58 {dimension_numbers = #tpu.dot_dimension_numbers<[1], [0], [0], [1], [0, 0, 1, 1], [], []>} : vector<8x32xf32>, vector<32x192xf32>, vector<8x192xf32> -> vector<8x192xf32>
    %59 = arith.mulf %58, %14 : vector<8x192xf32>
    %c4_59 = arith.constant 4 : index
    %c0_60 = arith.constant 0 : index
    %c0_61 = arith.constant 0 : index
    %60 = vector.load %arg8[%c4_59, %c0_60, %c0_61] : memref<6x192x36xf32, #tpu.memory_space<vmem>>, vector<1x192x36xf32>
    %61 = vector.shape_cast %60 : vector<1x192x36xf32> to vector<192x36xf32>
    %cst_62 = arith.constant dense<0.000000e+00> : vector<8x36xf32>
    %62 = tpu.matmul %59, %61, %cst_62 {dimension_numbers = #tpu.dot_dimension_numbers<[1], [0], [0], [1], [0, 0, 1, 1], [], []>} : vector<8x192xf32>, vector<192x36xf32>, vector<8x36xf32> -> vector<8x36xf32>
    %63 = arith.addf %53, %62 : vector<8x36xf32>
    %c5 = arith.constant 5 : index
    %c0_63 = arith.constant 0 : index
    %c0_64 = arith.constant 0 : index
    %64 = vector.load %arg6[%c5, %c0_63, %c0_64] : memref<6x192x32xf32, #tpu.memory_space<vmem>>, vector<1x192x32xf32>
    %65 = vector.shape_cast %64 : vector<1x192x32xf32> to vector<192x32xf32>
    %cst_65 = arith.constant dense<0.000000e+00> : vector<8x32xf32>
    %66 = tpu.matmul %14, %65, %cst_65 {dimension_numbers = #tpu.dot_dimension_numbers<[1], [0], [0], [1], [0, 0, 1, 1], [], []>} : vector<8x192xf32>, vector<192x32xf32>, vector<8x32xf32> -> vector<8x32xf32>
    %c0_66 = arith.constant 0 : index
    %c0_67 = arith.constant 0 : index
    %67 = vector.load %arg7[%c0_66, %c0_67] : memref<32x192xf32, #tpu.memory_space<vmem>>, vector<32x192xf32>
    %cst_68 = arith.constant dense<0.000000e+00> : vector<8x192xf32>
    %68 = tpu.matmul %66, %67, %cst_68 {dimension_numbers = #tpu.dot_dimension_numbers<[1], [0], [0], [1], [0, 0, 1, 1], [], []>} : vector<8x32xf32>, vector<32x192xf32>, vector<8x192xf32> -> vector<8x192xf32>
    %69 = arith.mulf %68, %14 : vector<8x192xf32>
    %c5_69 = arith.constant 5 : index
    %c0_70 = arith.constant 0 : index
    %c0_71 = arith.constant 0 : index
    %70 = vector.load %arg8[%c5_69, %c0_70, %c0_71] : memref<6x192x36xf32, #tpu.memory_space<vmem>>, vector<1x192x36xf32>
    %71 = vector.shape_cast %70 : vector<1x192x36xf32> to vector<192x36xf32>
    %cst_72 = arith.constant dense<0.000000e+00> : vector<8x36xf32>
    %72 = tpu.matmul %69, %71, %cst_72 {dimension_numbers = #tpu.dot_dimension_numbers<[1], [0], [0], [1], [0, 0, 1, 1], [], []>} : vector<8x192xf32>, vector<192x36xf32>, vector<8x36xf32> -> vector<8x36xf32>
    %73 = arith.addf %63, %72 : vector<8x36xf32>
    %cst_73 = arith.constant dense<0xFF800000> : vector<8xf32>
    %74 = vector.multi_reduction <maximumf>, %73, %cst_73 [1] : vector<8x36xf32> to vector<8xf32>
    %75 = vector.shape_cast %74 : vector<8xf32> to vector<8x1xf32>
    %76 = vector.broadcast %75 : vector<8x1xf32> to vector<8x36xf32>
    %77 = arith.subf %73, %76 : vector<8x36xf32>
    %78 = math.exp %77 : vector<8x36xf32>
    %c0_74 = arith.constant 0 : index
    %c0_75 = arith.constant 0 : index
    %79 = vector.load %arg9[%c0_74, %c0_75] : memref<36x6xf32, #tpu.memory_space<vmem>>, vector<36x6xf32>
    %cst_76 = arith.constant dense<0.000000e+00> : vector<8x6xf32>
    %80 = tpu.matmul %78, %79, %cst_76 {dimension_numbers = #tpu.dot_dimension_numbers<[1], [0], [0], [1], [0, 0, 1, 1], [], []>} : vector<8x36xf32>, vector<36x6xf32>, vector<8x6xf32> -> vector<8x6xf32>
    %81 = tpu.reciprocal %80 {approx = true} : vector<8x6xf32> -> vector<8x6xf32>
    %c0_77 = arith.constant 0 : index
    %c0_78 = arith.constant 0 : index
    %82 = vector.load %arg10[%c0_77, %c0_78] : memref<6x36xf32, #tpu.memory_space<vmem>>, vector<6x36xf32>
    %cst_79 = arith.constant dense<0.000000e+00> : vector<8x36xf32>
    %83 = tpu.matmul %81, %82, %cst_79 {dimension_numbers = #tpu.dot_dimension_numbers<[1], [0], [0], [1], [0, 0, 1, 1], [], []>} : vector<8x6xf32>, vector<6x36xf32>, vector<8x36xf32> -> vector<8x36xf32>
    %84 = arith.mulf %78, %83 : vector<8x36xf32>
    %c0_80 = arith.constant 0 : index
    %c0_81 = arith.constant 0 : index
    %c0_82 = arith.constant 0 : index
    %85 = vector.load %arg11[%c0_80, %c0_81, %c0_82] : memref<6x36x192xf32, #tpu.memory_space<vmem>>, vector<1x36x192xf32>
    %86 = vector.shape_cast %85 : vector<1x36x192xf32> to vector<36x192xf32>
    %cst_83 = arith.constant dense<0.000000e+00> : vector<8x192xf32>
    %87 = tpu.matmul %84, %86, %cst_83 {dimension_numbers = #tpu.dot_dimension_numbers<[1], [0], [0], [1], [0, 0, 1, 1], [], []>} : vector<8x36xf32>, vector<36x192xf32>, vector<8x192xf32> -> vector<8x192xf32>
    %88 = arith.mulf %87, %14 : vector<8x192xf32>
    %c0_84 = arith.constant 0 : index
    %c0_85 = arith.constant 0 : index
    %89 = vector.load %arg12[%c0_84, %c0_85] : memref<192x32xf32, #tpu.memory_space<vmem>>, vector<192x32xf32>
    %cst_86 = arith.constant dense<0.000000e+00> : vector<8x32xf32>
    %90 = tpu.matmul %88, %89, %cst_86 {dimension_numbers = #tpu.dot_dimension_numbers<[1], [0], [0], [1], [0, 0, 1, 1], [], []>} : vector<8x192xf32>, vector<192x32xf32>, vector<8x32xf32> -> vector<8x32xf32>
    %c0_87 = arith.constant 0 : index
    %c0_88 = arith.constant 0 : index
    %c0_89 = arith.constant 0 : index
    %91 = vector.load %arg13[%c0_87, %c0_88, %c0_89] : memref<6x32x192xf32, #tpu.memory_space<vmem>>, vector<1x32x192xf32>
    %92 = vector.shape_cast %91 : vector<1x32x192xf32> to vector<32x192xf32>
    %cst_90 = arith.constant dense<0.000000e+00> : vector<8x192xf32>
    %93 = tpu.matmul %90, %92, %cst_90 {dimension_numbers = #tpu.dot_dimension_numbers<[1], [0], [0], [1], [0, 0, 1, 1], [], []>} : vector<8x32xf32>, vector<32x192xf32>, vector<8x192xf32> -> vector<8x192xf32>
    %c1_91 = arith.constant 1 : index
    %c0_92 = arith.constant 0 : index
    %c0_93 = arith.constant 0 : index
    %94 = vector.load %arg11[%c1_91, %c0_92, %c0_93] : memref<6x36x192xf32, #tpu.memory_space<vmem>>, vector<1x36x192xf32>
    %95 = vector.shape_cast %94 : vector<1x36x192xf32> to vector<36x192xf32>
    %cst_94 = arith.constant dense<0.000000e+00> : vector<8x192xf32>
    %96 = tpu.matmul %84, %95, %cst_94 {dimension_numbers = #tpu.dot_dimension_numbers<[1], [0], [0], [1], [0, 0, 1, 1], [], []>} : vector<8x36xf32>, vector<36x192xf32>, vector<8x192xf32> -> vector<8x192xf32>
    %97 = arith.mulf %96, %14 : vector<8x192xf32>
    %c0_95 = arith.constant 0 : index
    %c0_96 = arith.constant 0 : index
    %98 = vector.load %arg12[%c0_95, %c0_96] : memref<192x32xf32, #tpu.memory_space<vmem>>, vector<192x32xf32>
    %cst_97 = arith.constant dense<0.000000e+00> : vector<8x32xf32>
    %99 = tpu.matmul %97, %98, %cst_97 {dimension_numbers = #tpu.dot_dimension_numbers<[1], [0], [0], [1], [0, 0, 1, 1], [], []>} : vector<8x192xf32>, vector<192x32xf32>, vector<8x32xf32> -> vector<8x32xf32>
    %c1_98 = arith.constant 1 : index
    %c0_99 = arith.constant 0 : index
    %c0_100 = arith.constant 0 : index
    %100 = vector.load %arg13[%c1_98, %c0_99, %c0_100] : memref<6x32x192xf32, #tpu.memory_space<vmem>>, vector<1x32x192xf32>
    %101 = vector.shape_cast %100 : vector<1x32x192xf32> to vector<32x192xf32>
    %cst_101 = arith.constant dense<0.000000e+00> : vector<8x192xf32>
    %102 = tpu.matmul %99, %101, %cst_101 {dimension_numbers = #tpu.dot_dimension_numbers<[1], [0], [0], [1], [0, 0, 1, 1], [], []>} : vector<8x32xf32>, vector<32x192xf32>, vector<8x192xf32> -> vector<8x192xf32>
    %103 = arith.addf %93, %102 : vector<8x192xf32>
    %c2_102 = arith.constant 2 : index
    %c0_103 = arith.constant 0 : index
    %c0_104 = arith.constant 0 : index
    %104 = vector.load %arg11[%c2_102, %c0_103, %c0_104] : memref<6x36x192xf32, #tpu.memory_space<vmem>>, vector<1x36x192xf32>
    %105 = vector.shape_cast %104 : vector<1x36x192xf32> to vector<36x192xf32>
    %cst_105 = arith.constant dense<0.000000e+00> : vector<8x192xf32>
    %106 = tpu.matmul %84, %105, %cst_105 {dimension_numbers = #tpu.dot_dimension_numbers<[1], [0], [0], [1], [0, 0, 1, 1], [], []>} : vector<8x36xf32>, vector<36x192xf32>, vector<8x192xf32> -> vector<8x192xf32>
    %107 = arith.mulf %106, %14 : vector<8x192xf32>
    %c0_106 = arith.constant 0 : index
    %c0_107 = arith.constant 0 : index
    %108 = vector.load %arg12[%c0_106, %c0_107] : memref<192x32xf32, #tpu.memory_space<vmem>>, vector<192x32xf32>
    %cst_108 = arith.constant dense<0.000000e+00> : vector<8x32xf32>
    %109 = tpu.matmul %107, %108, %cst_108 {dimension_numbers = #tpu.dot_dimension_numbers<[1], [0], [0], [1], [0, 0, 1, 1], [], []>} : vector<8x192xf32>, vector<192x32xf32>, vector<8x32xf32> -> vector<8x32xf32>
    %c2_109 = arith.constant 2 : index
    %c0_110 = arith.constant 0 : index
    %c0_111 = arith.constant 0 : index
    %110 = vector.load %arg13[%c2_109, %c0_110, %c0_111] : memref<6x32x192xf32, #tpu.memory_space<vmem>>, vector<1x32x192xf32>
    %111 = vector.shape_cast %110 : vector<1x32x192xf32> to vector<32x192xf32>
    %cst_112 = arith.constant dense<0.000000e+00> : vector<8x192xf32>
    %112 = tpu.matmul %109, %111, %cst_112 {dimension_numbers = #tpu.dot_dimension_numbers<[1], [0], [0], [1], [0, 0, 1, 1], [], []>} : vector<8x32xf32>, vector<32x192xf32>, vector<8x192xf32> -> vector<8x192xf32>
    %113 = arith.addf %103, %112 : vector<8x192xf32>
    %c3_113 = arith.constant 3 : index
    %c0_114 = arith.constant 0 : index
    %c0_115 = arith.constant 0 : index
    %114 = vector.load %arg11[%c3_113, %c0_114, %c0_115] : memref<6x36x192xf32, #tpu.memory_space<vmem>>, vector<1x36x192xf32>
    %115 = vector.shape_cast %114 : vector<1x36x192xf32> to vector<36x192xf32>
    %cst_116 = arith.constant dense<0.000000e+00> : vector<8x192xf32>
    %116 = tpu.matmul %84, %115, %cst_116 {dimension_numbers = #tpu.dot_dimension_numbers<[1], [0], [0], [1], [0, 0, 1, 1], [], []>} : vector<8x36xf32>, vector<36x192xf32>, vector<8x192xf32> -> vector<8x192xf32>
    %117 = arith.mulf %116, %14 : vector<8x192xf32>
    %c0_117 = arith.constant 0 : index
    %c0_118 = arith.constant 0 : index
    %118 = vector.load %arg12[%c0_117, %c0_118] : memref<192x32xf32, #tpu.memory_space<vmem>>, vector<192x32xf32>
    %cst_119 = arith.constant dense<0.000000e+00> : vector<8x32xf32>
    %119 = tpu.matmul %117, %118, %cst_119 {dimension_numbers = #tpu.dot_dimension_numbers<[1], [0], [0], [1], [0, 0, 1, 1], [], []>} : vector<8x192xf32>, vector<192x32xf32>, vector<8x32xf32> -> vector<8x32xf32>
    %c3_120 = arith.constant 3 : index
    %c0_121 = arith.constant 0 : index
    %c0_122 = arith.constant 0 : index
    %120 = vector.load %arg13[%c3_120, %c0_121, %c0_122] : memref<6x32x192xf32, #tpu.memory_space<vmem>>, vector<1x32x192xf32>
    %121 = vector.shape_cast %120 : vector<1x32x192xf32> to vector<32x192xf32>
    %cst_123 = arith.constant dense<0.000000e+00> : vector<8x192xf32>
    %122 = tpu.matmul %119, %121, %cst_123 {dimension_numbers = #tpu.dot_dimension_numbers<[1], [0], [0], [1], [0, 0, 1, 1], [], []>} : vector<8x32xf32>, vector<32x192xf32>, vector<8x192xf32> -> vector<8x192xf32>
    %123 = arith.addf %113, %122 : vector<8x192xf32>
    %c4_124 = arith.constant 4 : index
    %c0_125 = arith.constant 0 : index
    %c0_126 = arith.constant 0 : index
    %124 = vector.load %arg11[%c4_124, %c0_125, %c0_126] : memref<6x36x192xf32, #tpu.memory_space<vmem>>, vector<1x36x192xf32>
    %125 = vector.shape_cast %124 : vector<1x36x192xf32> to vector<36x192xf32>
    %cst_127 = arith.constant dense<0.000000e+00> : vector<8x192xf32>
    %126 = tpu.matmul %84, %125, %cst_127 {dimension_numbers = #tpu.dot_dimension_numbers<[1], [0], [0], [1], [0, 0, 1, 1], [], []>} : vector<8x36xf32>, vector<36x192xf32>, vector<8x192xf32> -> vector<8x192xf32>
    %127 = arith.mulf %126, %14 : vector<8x192xf32>
    %c0_128 = arith.constant 0 : index
    %c0_129 = arith.constant 0 : index
    %128 = vector.load %arg12[%c0_128, %c0_129] : memref<192x32xf32, #tpu.memory_space<vmem>>, vector<192x32xf32>
    %cst_130 = arith.constant dense<0.000000e+00> : vector<8x32xf32>
    %129 = tpu.matmul %127, %128, %cst_130 {dimension_numbers = #tpu.dot_dimension_numbers<[1], [0], [0], [1], [0, 0, 1, 1], [], []>} : vector<8x192xf32>, vector<192x32xf32>, vector<8x32xf32> -> vector<8x32xf32>
    %c4_131 = arith.constant 4 : index
    %c0_132 = arith.constant 0 : index
    %c0_133 = arith.constant 0 : index
    %130 = vector.load %arg13[%c4_131, %c0_132, %c0_133] : memref<6x32x192xf32, #tpu.memory_space<vmem>>, vector<1x32x192xf32>
    %131 = vector.shape_cast %130 : vector<1x32x192xf32> to vector<32x192xf32>
    %cst_134 = arith.constant dense<0.000000e+00> : vector<8x192xf32>
    %132 = tpu.matmul %129, %131, %cst_134 {dimension_numbers = #tpu.dot_dimension_numbers<[1], [0], [0], [1], [0, 0, 1, 1], [], []>} : vector<8x32xf32>, vector<32x192xf32>, vector<8x192xf32> -> vector<8x192xf32>
    %133 = arith.addf %123, %132 : vector<8x192xf32>
    %c5_135 = arith.constant 5 : index
    %c0_136 = arith.constant 0 : index
    %c0_137 = arith.constant 0 : index
    %134 = vector.load %arg11[%c5_135, %c0_136, %c0_137] : memref<6x36x192xf32, #tpu.memory_space<vmem>>, vector<1x36x192xf32>
    %135 = vector.shape_cast %134 : vector<1x36x192xf32> to vector<36x192xf32>
    %cst_138 = arith.constant dense<0.000000e+00> : vector<8x192xf32>
    %136 = tpu.matmul %84, %135, %cst_138 {dimension_numbers = #tpu.dot_dimension_numbers<[1], [0], [0], [1], [0, 0, 1, 1], [], []>} : vector<8x36xf32>, vector<36x192xf32>, vector<8x192xf32> -> vector<8x192xf32>
    %137 = arith.mulf %136, %14 : vector<8x192xf32>
    %c0_139 = arith.constant 0 : index
    %c0_140 = arith.constant 0 : index
    %138 = vector.load %arg12[%c0_139, %c0_140] : memref<192x32xf32, #tpu.memory_space<vmem>>, vector<192x32xf32>
    %cst_141 = arith.constant dense<0.000000e+00> : vector<8x32xf32>
    %139 = tpu.matmul %137, %138, %cst_141 {dimension_numbers = #tpu.dot_dimension_numbers<[1], [0], [0], [1], [0, 0, 1, 1], [], []>} : vector<8x192xf32>, vector<192x32xf32>, vector<8x32xf32> -> vector<8x32xf32>
    %c5_142 = arith.constant 5 : index
    %c0_143 = arith.constant 0 : index
    %c0_144 = arith.constant 0 : index
    %140 = vector.load %arg13[%c5_142, %c0_143, %c0_144] : memref<6x32x192xf32, #tpu.memory_space<vmem>>, vector<1x32x192xf32>
    %141 = vector.shape_cast %140 : vector<1x32x192xf32> to vector<32x192xf32>
    %cst_145 = arith.constant dense<0.000000e+00> : vector<8x192xf32>
    %142 = tpu.matmul %139, %141, %cst_145 {dimension_numbers = #tpu.dot_dimension_numbers<[1], [0], [0], [1], [0, 0, 1, 1], [], []>} : vector<8x32xf32>, vector<32x192xf32>, vector<8x192xf32> -> vector<8x192xf32>
    %143 = arith.addf %133, %142 : vector<8x192xf32>
    %cst_146 = arith.constant 0.000000e+00 : f32
    %144 = vector.broadcast %cst_146 : f32 to vector<8x192xf32>
    %145 = arith.maximumf %143, %144 : vector<8x192xf32>
    %146 = arith.addf %145, %14 : vector<8x192xf32>
    %147 = arith.mulf %87, %146 : vector<8x192xf32>
    %c0_147 = arith.constant 0 : index
    %c0_148 = arith.constant 0 : index
    %148 = vector.load %arg15[%c0_147, %c0_148] : memref<192x32xf32, #tpu.memory_space<vmem>>, vector<192x32xf32>
    %cst_149 = arith.constant dense<0.000000e+00> : vector<8x32xf32>
    %149 = tpu.matmul %147, %148, %cst_149 {dimension_numbers = #tpu.dot_dimension_numbers<[1], [0], [0], [1], [0, 0, 1, 1], [], []>} : vector<8x192xf32>, vector<192x32xf32>, vector<8x32xf32> -> vector<8x32xf32>
    %cst_150 = arith.constant 0.000000e+00 : f32
    %150 = vector.broadcast %cst_150 : f32 to vector<8x32xf32>
    %151 = arith.maximumf %149, %150 : vector<8x32xf32>
    %c0_151 = arith.constant 0 : index
    %c0_152 = arith.constant 0 : index
    %152 = vector.load %arg14[%c0_151, %c0_152] : memref<192x32xf32, #tpu.memory_space<vmem>>, vector<192x32xf32>
    %cst_153 = arith.constant dense<0.000000e+00> : vector<8x32xf32>
    %153 = tpu.matmul %146, %152, %cst_153 {dimension_numbers = #tpu.dot_dimension_numbers<[1], [0], [0], [1], [0, 0, 1, 1], [], []>} : vector<8x192xf32>, vector<192x32xf32>, vector<8x32xf32> -> vector<8x32xf32>
    %154 = arith.addf %151, %153 : vector<8x32xf32>
    %c0_154 = arith.constant 0 : index
    %c0_155 = arith.constant 0 : index
    %155 = vector.load %arg16[%c0_154, %c0_155] : memref<32x256xf32, #tpu.memory_space<vmem>>, vector<32x256xf32>
    %cst_156 = arith.constant dense<0.000000e+00> : vector<8x256xf32>
    %156 = tpu.matmul %154, %155, %cst_156 {dimension_numbers = #tpu.dot_dimension_numbers<[1], [0], [0], [1], [0, 0, 1, 1], [], []>} : vector<8x32xf32>, vector<32x256xf32>, vector<8x256xf32> -> vector<8x256xf32>
    %c0_157 = arith.constant 0 : index
    %c0_158 = arith.constant 0 : index
    %157 = vector.load %arg17[%c0_157, %c0_158] : memref<1x256xf32, #tpu.memory_space<vmem>>, vector<1x256xf32>
    %158 = vector.broadcast %157 : vector<1x256xf32> to vector<8x256xf32>
    %159 = arith.addf %156, %158 : vector<8x256xf32>
    %cst_159 = arith.constant 0.000000e+00 : f32
    %160 = vector.broadcast %cst_159 : f32 to vector<8x256xf32>
    %161 = arith.maximumf %159, %160 : vector<8x256xf32>
    %c0_160 = arith.constant 0 : index
    %c0_161 = arith.constant 0 : index
    %162 = vector.load %arg18[%c0_160, %c0_161] : memref<256x2xf32, #tpu.memory_space<vmem>>, vector<256x2xf32>
    %cst_162 = arith.constant dense<0.000000e+00> : vector<8x2xf32>
    %163 = tpu.matmul %161, %162, %cst_162 {dimension_numbers = #tpu.dot_dimension_numbers<[1], [0], [0], [1], [0, 0, 1, 1], [], []>} : vector<8x256xf32>, vector<256x2xf32>, vector<8x2xf32> -> vector<8x2xf32>
    %c0_163 = arith.constant 0 : index
    %c0_164 = arith.constant 0 : index
    %164 = vector.load %arg19[%c0_163, %c0_164] : memref<1x2xf32, #tpu.memory_space<vmem>>, vector<1x2xf32>
    %165 = vector.broadcast %164 : vector<1x2xf32> to vector<8x2xf32>
    %166 = arith.addf %163, %165 : vector<8x2xf32>
    %c0_165 = arith.constant 0 : index
    %c0_166 = arith.constant 0 : index
    %167 = vector.load %arg20[%c0_165, %c0_166] : memref<1x2xf32, #tpu.memory_space<vmem>>, vector<1x2xf32>
    %168 = math.tanh %166 : vector<8x2xf32>
    %169 = vector.broadcast %167 : vector<1x2xf32> to vector<8x2xf32>
    %170 = arith.mulf %169, %168 : vector<8x2xf32>
    %c0_167 = arith.constant 0 : index
    %c0_168 = arith.constant 0 : index
    %171 = vector.load %arg21[%c0_167, %c0_168] : memref<8x2xf32, #tpu.memory_space<vmem>>, vector<8x2xf32>
    tpu.vector_store %arg21[%c0_167, %c0_168], %170 {strides = array<i32>} : memref<8x2xf32, #tpu.memory_space<vmem>>, vector<8x2xf32>,
    return
  }
  func.func @transform_0(%arg0: i32) -> (i32, i32) {
    %c0_i32 = arith.constant 0 : i32
    %c0_i32_0 = arith.constant 0 : i32
    return %arg0, %c0_i32 : i32, i32
  }
  func.func @transform_1(%arg0: i32) -> (i32, i32) {
    %c0_i32 = arith.constant 0 : i32
    %c0_i32_0 = arith.constant 0 : i32
    %c0_i32_1 = arith.constant 0 : i32
    return %c0_i32, %c0_i32_0 : i32, i32
  }
  func.func @transform_2(%arg0: i32) -> (i32, i32) {
    %c0_i32 = arith.constant 0 : i32
    %c0_i32_0 = arith.constant 0 : i32
    %c0_i32_1 = arith.constant 0 : i32
    return %c0_i32, %c0_i32_0 : i32, i32
  }
  func.func @transform_3(%arg0: i32) -> (i32, i32) {
    %c0_i32 = arith.constant 0 : i32
    %c0_i32_0 = arith.constant 0 : i32
    %c0_i32_1 = arith.constant 0 : i32
    return %c0_i32, %c0_i32_0 : i32, i32
  }
  func.func @transform_4(%arg0: i32) -> (i32, i32) {
    %c0_i32 = arith.constant 0 : i32
    %c0_i32_0 = arith.constant 0 : i32
    %c0_i32_1 = arith.constant 0 : i32
    return %c0_i32, %c0_i32_0 : i32, i32
  }
  func.func @transform_5(%arg0: i32) -> (i32, i32, i32) {
    %c0_i32 = arith.constant 0 : i32
    %c0_i32_0 = arith.constant 0 : i32
    %c0_i32_1 = arith.constant 0 : i32
    %c0_i32_2 = arith.constant 0 : i32
    return %c0_i32, %c0_i32_0, %c0_i32_1 : i32, i32, i32
  }
  func.func @transform_6(%arg0: i32) -> (i32, i32) {
    %c0_i32 = arith.constant 0 : i32
    %c0_i32_0 = arith.constant 0 : i32
    %c0_i32_1 = arith.constant 0 : i32
    return %c0_i32, %c0_i32_0 : i32, i32
  }
  func.func @transform_7(%arg0: i32) -> (i32, i32, i32) {
    %c0_i32 = arith.constant 0 : i32
    %c0_i32_0 = arith.constant 0 : i32
    %c0_i32_1 = arith.constant 0 : i32
    %c0_i32_2 = arith.constant 0 : i32
    return %c0_i32, %c0_i32_0, %c0_i32_1 : i32, i32, i32
  }
  func.func @transform_8(%arg0: i32) -> (i32, i32) {
    %c0_i32 = arith.constant 0 : i32
    %c0_i32_0 = arith.constant 0 : i32
    %c0_i32_1 = arith.constant 0 : i32
    return %c0_i32, %c0_i32_0 : i32, i32
  }
  func.func @transform_9(%arg0: i32) -> (i32, i32) {
    %c0_i32 = arith.constant 0 : i32
    %c0_i32_0 = arith.constant 0 : i32
    %c0_i32_1 = arith.constant 0 : i32
    return %c0_i32, %c0_i32_0 : i32, i32
  }
  func.func @transform_10(%arg0: i32) -> (i32, i32, i32) {
    %c0_i32 = arith.constant 0 : i32
    %c0_i32_0 = arith.constant 0 : i32
    %c0_i32_1 = arith.constant 0 : i32
    %c0_i32_2 = arith.constant 0 : i32
    return %c0_i32, %c0_i32_0, %c0_i32_1 : i32, i32, i32
  }
  func.func @transform_11(%arg0: i32) -> (i32, i32) {
    %c0_i32 = arith.constant 0 : i32
    %c0_i32_0 = arith.constant 0 : i32
    %c0_i32_1 = arith.constant 0 : i32
    return %c0_i32, %c0_i32_0 : i32, i32
  }
  func.func @transform_12(%arg0: i32) -> (i32, i32, i32) {
    %c0_i32 = arith.constant 0 : i32
    %c0_i32_0 = arith.constant 0 : i32
    %c0_i32_1 = arith.constant 0 : i32
    %c0_i32_2 = arith.constant 0 : i32
    return %c0_i32, %c0_i32_0, %c0_i32_1 : i32, i32, i32
  }
  func.func @transform_13(%arg0: i32) -> (i32, i32) {
    %c0_i32 = arith.constant 0 : i32
    %c0_i32_0 = arith.constant 0 : i32
    %c0_i32_1 = arith.constant 0 : i32
    return %c0_i32, %c0_i32_0 : i32, i32
  }
  func.func @transform_14(%arg0: i32) -> (i32, i32) {
    %c0_i32 = arith.constant 0 : i32
    %c0_i32_0 = arith.constant 0 : i32
    %c0_i32_1 = arith.constant 0 : i32
    return %c0_i32, %c0_i32_0 : i32, i32
  }
  func.func @transform_15(%arg0: i32) -> (i32, i32) {
    %c0_i32 = arith.constant 0 : i32
    %c0_i32_0 = arith.constant 0 : i32
    %c0_i32_1 = arith.constant 0 : i32
    return %c0_i32, %c0_i32_0 : i32, i32
  }
  func.func @transform_16(%arg0: i32) -> (i32, i32) {
    %c0_i32 = arith.constant 0 : i32
    %c0_i32_0 = arith.constant 0 : i32
    %c0_i32_1 = arith.constant 0 : i32
    return %c0_i32, %c0_i32_0 : i32, i32
  }
  func.func @transform_17(%arg0: i32) -> (i32, i32) {
    %c0_i32 = arith.constant 0 : i32
    %c0_i32_0 = arith.constant 0 : i32
    %c0_i32_1 = arith.constant 0 : i32
    return %c0_i32, %c0_i32_0 : i32, i32
  }
  func.func @transform_18(%arg0: i32) -> (i32, i32) {
    %c0_i32 = arith.constant 0 : i32
    %c0_i32_0 = arith.constant 0 : i32
    %c0_i32_1 = arith.constant 0 : i32
    return %c0_i32, %c0_i32_0 : i32, i32
  }
  func.func @transform_19(%arg0: i32) -> (i32, i32) {
    %c0_i32 = arith.constant 0 : i32
    %c0_i32_0 = arith.constant 0 : i32
    %c0_i32_1 = arith.constant 0 : i32
    return %c0_i32, %c0_i32_0 : i32, i32
  }
  func.func @transform_20(%arg0: i32) -> (i32, i32) {
    %c0_i32 = arith.constant 0 : i32
    %c0_i32_0 = arith.constant 0 : i32
    return %arg0, %c0_i32 : i32, i32
  }
}

</mosaic_0001>

<bundles_post_ra>
// kernel: tpu_custom_call.1
= control target key start
LH: loop header
LB: loop body
LE: loop exit
PB: predicated region body
PF: predicated region fallthrough
CT: control target
= control target key end

     0   :  { %v5781_v3 = vmov 0.0   ;;  %vm107_vm0 = vcmask 523264   ;;  %v5782_v48 = vmov 0.0|0.0   ;;  %vm5783_vm1 = vmmov 0   ;;  %s8389_s1 = inlined_call_operand.vmem [shape: f32[64,384], index: 1, kind: input, shape index: {}]   ;;  %s8390_s3 = inlined_call_operand.vmem [shape: f32[384,192], index: 3, kind: input, shape index: {}]   ;;  %s8391_s0 = inlined_call_operand.vmem [shape: f32[8,64], index: 0, kind: input, shape index: {}]   ;;  %s8392_s5 = inlined_call_operand.vmem [shape: f32[6,192,32], index: 5, kind: input, shape index: {}]   ;;  %s8393_s2 = inlined_call_operand.vmem [shape: f32[1,384], index: 2, kind: input, shape index: {}]   ;;  %s8394_s6 = inlined_call_operand.vmem [shape: f32[32,192], index: 6, kind: input, shape index: {}]   ;;  %s8395_s4 = inlined_call_operand.vmem [shape: f32[1,192], index: 4, kind: input, shape index: {}]   ;;  %s8396_s7 = inlined_call_operand.vmem [shape: f32[6,192,36], index: 7, kind: input, shape index: {}]   ;;  %s8397_s8 = inlined_call_operand.vmem [shape: f32[36,6], index: 8, kind: input, shape index: {}]   ;;  %s8398_s9 = inlined_call_operand.vmem [shape: f32[6,36], index: 9, kind: input, shape index: {}]   ;;  %s8399_s10 = inlined_call_operand.vmem [shape: f32[6,36,192], index: 10, kind: input, shape index: {}]   ;;  %s8400_s11 = inlined_call_operand.vmem [shape: f32[192,32], index: 11, kind: input, shape index: {}]   ;;  %s8401_s12 = inlined_call_operand.vmem [shape: f32[6,32,192], index: 12, kind: input, shape index: {}]   ;;  %s8402_s14 = inlined_call_operand.vmem [shape: f32[192,32], index: 14, kind: input, shape index: {}]   ;;  %s8403_s13 = inlined_call_operand.vmem [shape: f32[192,32], index: 13, kind: input, shape index: {}]   ;;  %s8404_s15 = inlined_call_operand.vmem [shape: f32[32,256], index: 15, kind: input, shape index: {}]   ;;  %s8405_s17 = inlined_call_operand.vmem [shape: f32[256,2], index: 17, kind: input, shape index: {}]   ;;  %s8406_s16 = inlined_call_operand.vmem [shape: f32[1,256], index: 16, kind: input, shape index: {}]   ;;  %s8407_s18 = inlined_call_operand.vmem [shape: f32[1,2], index: 18, kind: input, shape index: {}]   ;;  %s8408_s19 = inlined_call_operand.vmem [shape: f32[1,2], index: 19, kind: input, shape index: {}]   ;;  %s8409_s20 = inlined_call_operand.vmem [shape: f32[8,2], index: 20, kind: output, shape index: {}]  }
   0x1   :  { %8413 = sst [smem:[#allocation2_spill]] %s8389_s1  ;;  %175 = vmatprep.mubr.f32.mxu1 %v5781_v3  ;;  %vm612_vm2 = vcmask 261120   ;;  %vm2135_vm3 = vcmask 293888   ;;  %vm2150_vm4 = vcmask 1043456   ;;  %vm2230_vm5 = vcmask 1045504  }
   0x2   :  { %8414 = sst [smem:[#allocation3_spill]] %s8390_s3  ;;  %s8418_s23 = sld [smem:[#allocation2_spill]]  ;;  %vm2226_vm6 = vcmask 48128   ;;  %vm4230_vm7 = vcmask 15360  }
   0x3   :  { %8415 = sst [smem:[#allocation4_spill]] %s8391_s0  ;;  %s8419_s26 = sld [smem:[#allocation3_spill]] }
   0x4   :  { %8416 = sst [smem:[#allocation5_spill]] %s8392_s5  ;;  %s8420_s21 = sld [smem:[#allocation4_spill]] }
   0x5   :  { %8417 = sst [smem:[#allocation6_spill]] %s8393_s2  ;;  %s8421_s2 = sld [smem:[#allocation5_spill]] }
   0x8   :  { %v67_v0 = vld [vmem:[%s8418_s23 + $0x8] sm:$0xff]  ;;  %v70_v1 = vld [vmem:[%s8418_s23 + $0x20] sm:$0xff]  ;;  %v69_v5 = vld [vmem:[%s8418_s23 + $0x18] sm:$0xff] }
   0x9   :  { %v66_v2 = vld [vmem:[%s8418_s23] sm:$0xff]  ;;  %v4714_v4 = vpack.c.bf16 %v70_v1, %v67_v0  ;;  %v73_v6 = vld [vmem:[%s8418_s23 + $0x38] sm:$0xff]  ;;  %v76_v7 = vld [vmem:[%s8418_s23 + $0x50] sm:$0xff] }
   0xa   :  { %v4716_v8 = vpack.c.bf16 %v69_v5, %v66_v2  ;;  %v4718_v9 = vpack.c.bf16 %v76_v7, %v73_v6  ;;  %v72_v10 = vld [vmem:[%s8418_s23 + $0x30] sm:$0xff]  ;;  %v75_v11 = vld [vmem:[%s8418_s23 + $0x48] sm:$0xff]  ;;  %v82_v13 = vld [vmem:[%s8418_s23 + $0x80] sm:$0xff] }
   0xb   :  { %v79_v12 = vld [vmem:[%s8418_s23 + $0x68] sm:$0xff]  ;;  %4715 = vmatprep.subr.bf16.mxu1 %v4714_v4  ;;  %v4720_v14 = vpack.c.bf16 %v75_v11, %v72_v10  ;;  %v78_v16 = vld [vmem:[%s8418_s23 + $0x60] sm:$0xff]  ;;  %v81_v17 = vld [vmem:[%s8418_s23 + $0x78] sm:$0xff] }
   0xc   :  { %4717 = vmatpush1.bf16.msra.mxu1 %v4716_v8  ;;  %v4722_v15 = vpack.c.bf16 %v82_v13, %v79_v12  ;;  %v85_v18 = vld [vmem:[%s8418_s23 + $0x98] sm:$0xff]  ;;  %v88_v19 = vld [vmem:[%s8418_s23 + $0xb0] sm:$0xff]  ;;  %v4724_v21 = vpack.c.bf16 %v81_v17, %v78_v16  ;;  %v87_v22 = vld [vmem:[%s8418_s23 + $0xa8] sm:$0xff] }
   0xd   :  { %4719 = vmatprep.subr.bf16.mxu1 %v4718_v9  ;;  %v84_v20 = vld [vmem:[%s8418_s23 + $0x90] sm:$0xff]  ;;  %v256_v23 = vld [vmem:[%s8419_s26 + $0x8] sm:$0xff]  ;;  %v258_v24 = vld [vmem:[%s8419_s26 + $0x18] sm:$0xff]  ;;  %v4726_v25 = vpack.c.bf16 %v88_v19, %v85_v18 }
   0xe   :  { %v4742_v26 = vpack.c.bf16 %v258_v24, %v256_v23  ;;  %v255_v27 = vld [vmem:[%s8419_s26] sm:$0xff]  ;;  %v257_v28 = vld [vmem:[%s8419_s26 + $0x10] sm:$0xff]  ;;  %v260_v29 = vld [vmem:[%s8419_s26 + $0x28] sm:$0xff]  ;;  %v4728_v37 = vpack.c.bf16 %v87_v22, %v84_v20 }
   0xf   :  { %v4744_v30 = vpack.c.bf16 %v257_v28, %v255_v27  ;;  %v262_v31 = vld [vmem:[%s8419_s26 + $0x38] sm:$0xff]  ;;  %v259_v32 = vld [vmem:[%s8419_s26 + $0x20] sm:$0xff]  ;;  %v261_v33 = vld [vmem:[%s8419_s26 + $0x30] sm:$0xff] }
  0x10   :  { %4721 = vmatpush1.bf16.msra.mxu1 %v4720_v14  ;;  %4743 = vmatprep.subr.bf16.mxu0 %v4742_v26  ;;  %v4746_v34 = vpack.c.bf16 %v262_v31, %v260_v29  ;;  %v264_v35 = vld [vmem:[%s8419_s26 + $0x48] sm:$0xff]  ;;  %v266_v36 = vld [vmem:[%s8419_s26 + $0x58] sm:$0xff]  ;;  %v4748_v38 = vpack.c.bf16 %v261_v33, %v259_v32  ;;  %v68_v39 = vld [vmem:[%s8418_s23 + $0x10] sm:$0xff] }
  0x11   :  { %4723 = vmatprep.subr.bf16.mxu1 %v4722_v15  ;;  %4745 = vmatpush1.bf16.msra.mxu0 %v4744_v30  ;;  %v71_v40 = vld [vmem:[%s8418_s23 + $0x28] sm:$0xff]  ;;  %v4750_v41 = vpack.c.bf16 %v266_v36, %v264_v35  ;;  %v263_v42 = vld [vmem:[%s8419_s26 + $0x40] sm:$0xff]  ;;  %v265_v43 = vld [vmem:[%s8419_s26 + $0x50] sm:$0xff] }
  0x12   :  { %4747 = vmatprep.subr.bf16.mxu0 %v4746_v34  ;;  %v268_v44 = vld [vmem:[%s8419_s26 + $0x68] sm:$0xff]  ;;  %v270_v45 = vld [vmem:[%s8419_s26 + $0x78] sm:$0xff]  ;;  %v5989_v46 = vld [vmem:[%s8420_s21] sm:$0xff]  ;;  %v4731_v47 = vpack.c.bf16 %v71_v40, %v68_v39  ;;  %v4752_v51 = vpack.c.bf16 %v265_v43, %v263_v42 }
  0x13   :  { %v74_v49 = vld [vmem:[%s8418_s23 + $0x40] sm:$0xff]  ;;  %v77_v50 = vld [vmem:[%s8418_s23 + $0x58] sm:$0xff]  ;;  %v4754_v52 = vpack.c.bf16 %v270_v45, %v268_v44  ;;  %v269_v54 = vld [vmem:[%s8419_s26 + $0x70] sm:$0xff] }
  0x14   :  { %4725 = vmatpush1.bf16.msra.mxu1 %v4724_v21  ;;  %v267_v53 = vld [vmem:[%s8419_s26 + $0x60] sm:$0xff]  ;;  %v272_v55 = vld [vmem:[%s8419_s26 + $0x88] sm:$0xff]  ;;  %v274_v56 = vld [vmem:[%s8419_s26 + $0x98] sm:$0xff]  ;;  %v4734_v57 = vpack.c.bf16 %v77_v50, %v74_v49 }
  0x15   :  { %4727 = vmatprep.subr.bf16.mxu1 %v4726_v25  ;;  %4749 = vmatpush1.bf16.msra.mxu0 %v4748_v38  ;;  %v80_v58 = vld [vmem:[%s8418_s23 + $0x70] sm:$0xff]  ;;  %v83_v59 = vld [vmem:[%s8418_s23 + $0x88] sm:$0xff]  ;;  %v4756_v60 = vpack.c.bf16 %v269_v54, %v267_v53  ;;  %v4758_v61 = vpack.c.bf16 %v274_v56, %v272_v55  ;;  %v271_v62 = vld [vmem:[%s8419_s26 + $0x80] sm:$0xff] }
  0x16   :  { %4751 = vmatprep.subr.bf16.mxu0 %v4750_v41  ;;  %v273_v63 = vld [vmem:[%s8419_s26 + $0x90] sm:$0xff]  ;;  %v276_v0 = vld [vmem:[%s8419_s26 + $0xa8] sm:$0xff]  ;;  %v278_v1 = vld [vmem:[%s8419_s26 + $0xb8] sm:$0xff]  ;;  %v4737_v2 = vpack.c.bf16 %v83_v59, %v80_v58 }
  0x17   :  { %v86_v4 = vld [vmem:[%s8418_s23 + $0xa0] sm:$0xff]  ;;  %v89_v5 = vld [vmem:[%s8418_s23 + $0xb8] sm:$0xff]  ;;  %v4760_v6 = vpack.c.bf16 %v273_v63, %v271_v62  ;;  %v4762_v7 = vpack.c.bf16 %v278_v1, %v276_v0  ;;  %v277_v9 = vld [vmem:[%s8419_s26 + $0xb0] sm:$0xff]  ;;  %s8422_s23 = sld [smem:[#allocation6_spill]] }
  0x18   :  { %4729 = vmatpush1.bf16.msra.mxu1 %v4728_v37  ;;  %v275_v8 = vld [vmem:[%s8419_s26 + $0xa0] sm:$0xff]  ;;  %v280_v10 = vld [vmem:[%s8419_s26 + $0xc8] sm:$0xff]  ;;  %v282_v11 = vld [vmem:[%s8419_s26 + $0xd8] sm:$0xff]  ;;  %v4740_v12 = vpack.c.bf16 %v89_v5, %v86_v4 }
  0x19   :  { %4730 = vmatprep.subr.bf16.mxu1 %v5782_v48  ;;  %4753 = vmatpush1.bf16.msra.mxu0 %v4752_v51  ;;  %v4764_v13 = vpack.c.bf16 %v277_v9, %v275_v8  ;;  %v4766_v14 = vpack.c.bf16 %v282_v11, %v280_v10  ;;  %v279_v15 = vld [vmem:[%s8419_s26 + $0xc0] sm:$0xff]  ;;  %v281_v16 = vld [vmem:[%s8419_s26 + $0xd0] sm:$0xff]  ;;  %v284_v17 = vld [vmem:[%s8419_s26 + $0xe8] sm:$0xff] }
  0x1a   :  { %4755 = vmatprep.subr.bf16.mxu0 %v4754_v52  ;;  %v286_v18 = vld [vmem:[%s8419_s26 + $0xf8] sm:$0xff]  ;;  %v4768_v19 = vpack.c.bf16 %v281_v16, %v279_v15  ;;  %v283_v21 = vld [vmem:[%s8419_s26 + $0xe0] sm:$0xff]  ;;  %v285_v22 = vld [vmem:[%s8419_s26 + $0xf0] sm:$0xff] }
  0x1b   :  { %4236 = vmatmul.mubr.msk.f32.vlgmr.msra.gmra.mrb[0].mxu1 %vm107_vm0, %v5989_v46  ;;  %v4770_v20 = vpack.c.bf16 %v286_v18, %v284_v17  ;;  %v288_v23 = vld [vmem:[%s8419_s26 + $0x108] sm:$0xff]  ;;  %v290_v24 = vld [vmem:[%s8419_s26 + $0x118] sm:$0xff]  ;;  %v4772_v25 = vpack.c.bf16 %v285_v22, %v283_v21  ;;  %v287_v27 = vld [vmem:[%s8419_s26 + $0x100] sm:$0xff] }
  0x1c   :  { %4732 = vmatpush3.bf16.msra.mxu1 %v4731_v47  ;;  %4693 = vmatprep.mubr.msk.f32.mxu1 %vm5783_vm1, %v5781_v3  ;;  %v4774_v26 = vpack.c.bf16 %v290_v24, %v288_v23  ;;  %v289_v28 = vld [vmem:[%s8419_s26 + $0x110] sm:$0xff]  ;;  %v292_v29 = vld [vmem:[%s8419_s26 + $0x128] sm:$0xff]  ;;  %v294_v30 = vld [vmem:[%s8419_s26 + $0x138] sm:$0xff] }
  0x1d   :  { %4733 = vmatprep.subr.bf16.mxu1 %v5782_v48  ;;  %4757 = vmatpush1.bf16.msra.mxu0 %v4756_v60  ;;  %v4776_v31 = vpack.c.bf16 %v289_v28, %v287_v27  ;;  %v4778_v32 = vpack.c.bf16 %v294_v30, %v292_v29  ;;  %v291_v33 = vld [vmem:[%s8419_s26 + $0x120] sm:$0xff]  ;;  %v293_v34 = vld [vmem:[%s8419_s26 + $0x130] sm:$0xff]  ;;  %v296_v35 = vld [vmem:[%s8419_s26 + $0x148] sm:$0xff] }
  0x1e   :  { %4759 = vmatprep.subr.bf16.mxu0 %v4758_v61  ;;  %v298_v36 = vld [vmem:[%s8419_s26 + $0x158] sm:$0xff]  ;;  %v4780_v37 = vpack.c.bf16 %v293_v34, %v291_v33  ;;  %v295_v39 = vld [vmem:[%s8419_s26 + $0x140] sm:$0xff]  ;;  %v297_v40 = vld [vmem:[%s8419_s26 + $0x150] sm:$0xff] }
  0x1f   :  { %v4782_v38 = vpack.c.bf16 %v298_v36, %v296_v35  ;;  %v300_v41 = vld [vmem:[%s8419_s26 + $0x168] sm:$0xff]  ;;  %v302_v42 = vld [vmem:[%s8419_s26 + $0x178] sm:$0xff]  ;;  %v4784_v43 = vpack.c.bf16 %v297_v40, %v295_v39  ;;  %v299_v45 = vld [vmem:[%s8419_s26 + $0x160] sm:$0xff] }
  0x20   :  { %4735 = vmatpush3.bf16.msra.mxu1 %v4734_v57  ;;  %v4786_v44 = vpack.c.bf16 %v302_v42, %v300_v41  ;;  %v304_v47 = vld [vmem:[%s8419_s26 + $0x188] sm:$0xff]  ;;  %v306_v49 = vld [vmem:[%s8419_s26 + $0x198] sm:$0xff]  ;;  %v303_v52 = vld [vmem:[%s8419_s26 + $0x180] sm:$0xff] }
  0x21   :  { %4736 = vmatprep.subr.bf16.mxu1 %v5782_v48  ;;  %4761 = vmatpush1.bf16.msra.mxu0 %v4760_v6  ;;  %v4790_v51 = vpack.c.bf16 %v306_v49, %v304_v47  ;;  %v305_v53 = vld [vmem:[%s8419_s26 + $0x190] sm:$0xff]  ;;  %v308_v54 = vld [vmem:[%s8419_s26 + $0x1a8] sm:$0xff]  ;;  %v310_v55 = vld [vmem:[%s8419_s26 + $0x1b8] sm:$0xff] }
  0x22   :  { %4763 = vmatprep.subr.bf16.mxu0 %v4762_v7  ;;  %v4792_v56 = vpack.c.bf16 %v305_v53, %v303_v52  ;;  %v4794_v57 = vpack.c.bf16 %v310_v55, %v308_v54  ;;  %v307_v58 = vld [vmem:[%s8419_s26 + $0x1a0] sm:$0xff]  ;;  %v309_v59 = vld [vmem:[%s8419_s26 + $0x1b0] sm:$0xff]  ;;  %v312_v60 = vld [vmem:[%s8419_s26 + $0x1c8] sm:$0xff] }
  0x23   :  { %v314_v61 = vld [vmem:[%s8419_s26 + $0x1d8] sm:$0xff]  ;;  %v4796_v62 = vpack.c.bf16 %v309_v59, %v307_v58  ;;  %v311_v0 = vld [vmem:[%s8419_s26 + $0x1c0] sm:$0xff]  ;;  %v313_v1 = vld [vmem:[%s8419_s26 + $0x1d0] sm:$0xff] }
  0x24   :  { %4738 = vmatpush3.bf16.msra.mxu1 %v4737_v2  ;;  %v4798_v63 = vpack.c.bf16 %v314_v61, %v312_v60  ;;  %v4800_v2 = vpack.c.bf16 %v313_v1, %v311_v0  ;;  %v316_v4 = vld [vmem:[%s8419_s26 + $0x1e8] sm:$0xff]  ;;  %v318_v5 = vld [vmem:[%s8419_s26 + $0x1f8] sm:$0xff]  ;;  %v315_v7 = vld [vmem:[%s8419_s26 + $0x1e0] sm:$0xff] }
  0x25   :  { %4739 = vmatprep.subr.bf16.mxu1 %v5782_v48  ;;  %4765 = vmatpush1.bf16.msra.mxu0 %v4764_v13  ;;  %v4802_v6 = vpack.c.bf16 %v318_v5, %v316_v4  ;;  %v317_v8 = vld [vmem:[%s8419_s26 + $0x1f0] sm:$0xff]  ;;  %v320_v10 = vld [vmem:[%s8419_s26 + $0x208] sm:$0xff]  ;;  %v322_v11 = vld [vmem:[%s8419_s26 + $0x218] sm:$0xff] }
  0x26   :  { %4767 = vmatprep.subr.bf16.mxu0 %v4766_v14  ;;  %v4804_v9 = vpack.c.bf16 %v317_v8, %v315_v7  ;;  %v507_v13 = vld [vmem:[%s8421_s2] sm:$0xff]  ;;  %v508_v14 = vld [vmem:[%s8421_s2 + $0x8] sm:$0xff]  ;;  %v509_v15 = vld [vmem:[%s8421_s2 + $0x10] sm:$0xff] }
  0x27   :  { %v4839_v16 = vpack.c.bf16 %v508_v14, %v507_v13  ;;  %v510_v17 = vld [vmem:[%s8421_s2 + $0x18] sm:$0xff]  ;;  %v513_v22 = vld [vmem:[%s8421_s2 + $0x30] sm:$0xff]  ;;  %v319_v54 = vld [vmem:[%s8419_s26 + $0x200] sm:$0xff] }
  0x28   :  { %4741 = vmatpush3.bf16.msra.mxu1 %v4740_v12  ;;  %v4806_v12 = vpack.c.bf16 %v322_v11, %v320_v10  ;;  %v4842_v18 = vpack.c.bf16 %v510_v17, %v509_v15  ;;  %v514_v23 = vld [vmem:[%s8421_s2 + $0x38] sm:$0xff]  ;;  %v517_v28 = vld [vmem:[%s8421_s2 + $0x50] sm:$0xff]  ;;  %v328_v1 = vld [vmem:[%s8419_s26 + $0x248] sm:$0xff] }
  0x29   :  { %4838 = vmatprep.subr.bf16.mxu1 %v5782_v48  ;;  %4769 = vmatpush1.bf16.msra.mxu0 %v4768_v19  ;;  %v511_v19 = vld [vmem:[%s8421_s2 + $0x20] sm:$0xff]  ;;  %v4848_v24 = vpack.c.bf16 %v514_v23, %v513_v22  ;;  %v518_v29 = vld [vmem:[%s8421_s2 + $0x58] sm:$0xff]  ;;  %v521_v34 = vld [vmem:[%s8421_s2 + $0x70] sm:$0xff] }
  0x2a   :  { %4771 = vmatprep.subr.bf16.mxu0 %v4770_v20  ;;  %v512_v20 = vld [vmem:[%s8421_s2 + $0x28] sm:$0xff]  ;;  %v4854_v30 = vpack.c.bf16 %v518_v29, %v517_v28  ;;  %v522_v35 = vld [vmem:[%s8421_s2 + $0x78] sm:$0xff]  ;;  %v525_v40 = vld [vmem:[%s8421_s2 + $0x90] sm:$0xff] }
  0x2b   :  { %4694 = vmatmul.mubr.msk.f32.vlgmr.msra.gmra.mrb[2].mxu1 %vm107_vm0, %v5989_v46  ;;  %v301_v46 = vld [vmem:[%s8419_s26 + $0x170] sm:$0xff]  ;;  %v4845_v21 = vpack.c.bf16 %v512_v20, %v511_v19  ;;  %v4860_v36 = vpack.c.bf16 %v522_v35, %v521_v34  ;;  %v526_v41 = vld [vmem:[%s8421_s2 + $0x98] sm:$0xff]  ;;  %v332_v8 = vld [vmem:[%s8419_s26 + $0x268] sm:$0xff] }
  0x2c   :  { %v4788_v50 = vpack.c.bf16 %v301_v46, %v299_v45  ;;  %4840 = vmatpush1.bf16.msra.mxu1 %v4839_v16  ;;  %v4866_v42 = vpack.c.bf16 %v526_v41, %v525_v40  ;;  %v6254_v46 = vld [vmem:[%s8422_s23] sm:$0x7]  ;;  %v321_v55 = vld [vmem:[%s8419_s26 + $0x210] sm:$0xff]  ;;  %v326_v58 = vld [vmem:[%s8419_s26 + $0x238] sm:$0xff] }
  0x2d   :  { %4773 = vmatpush1.bf16.msra.mxu0 %v4772_v25  ;;  %4841 = vmatprep.subr.bf16.mxu1 %v5782_v48  ;;  %v515_v25 = vld [vmem:[%s8421_s2 + $0x40] sm:$0xff]  ;;  %v4808_v60 = vpack.c.bf16 %v321_v55, %v319_v54  ;;  %v325_v0 = vld [vmem:[%s8419_s26 + $0x230] sm:$0xff]  ;;  %v336_v14 = vld [vmem:[%s8419_s26 + $0x288] sm:$0xff] }
  0x2e   :  { %4775 = vmatprep.subr.bf16.mxu0 %v4774_v26  ;;  %v516_v26 = vld [vmem:[%s8421_s2 + $0x48] sm:$0xff]  ;;  %v329_v7 = vld [vmem:[%s8419_s26 + $0x250] sm:$0xff]  ;;  %v338_v15 = vld [vmem:[%s8419_s26 + $0x298] sm:$0xff] }
  0x2f   :  { %v4851_v27 = vpack.c.bf16 %v516_v26, %v515_v25  ;;  %v333_v13 = vld [vmem:[%s8419_s26 + $0x270] sm:$0xff]  ;;  %v335_v19 = vld [vmem:[%s8419_s26 + $0x280] sm:$0xff]  ;;  %v340_v22 = vld [vmem:[%s8419_s26 + $0x2a8] sm:$0xff] }
  0x30   :  { %4843 = vmatpush1.bf16.msra.mxu1 %v4842_v18  ;;  %v4822_v18 = vpack.c.bf16 %v338_v15, %v336_v14  ;;  %v337_v20 = vld [vmem:[%s8419_s26 + $0x290] sm:$0xff]  ;;  %v342_v23 = vld [vmem:[%s8419_s26 + $0x2b8] sm:$0xff]  ;;  %v339_v26 = vld [vmem:[%s8419_s26 + $0x2a0] sm:$0xff] }
  0x31   :  { %4777 = vmatpush1.bf16.msra.mxu0 %v4776_v31  ;;  %4844 = vmatprep.subr.bf16.mxu1 %v5782_v48  ;;  %v519_v31 = vld [vmem:[%s8421_s2 + $0x60] sm:$0xff]  ;;  %v4826_v25 = vpack.c.bf16 %v342_v23, %v340_v22  ;;  %v344_v28 = vld [vmem:[%s8419_s26 + $0x2c8] sm:$0xff]  ;;  %v346_v29 = vld [vmem:[%s8419_s26 + $0x2d8] sm:$0xff] }
  0x32   :  { %4779 = vmatprep.subr.bf16.mxu0 %v4778_v32  ;;  %v520_v32 = vld [vmem:[%s8421_s2 + $0x68] sm:$0xff]  ;;  %v345_v34 = vld [vmem:[%s8419_s26 + $0x2d0] sm:$0xff]  ;;  %v347_v40 = vld [vmem:[%s8419_s26 + $0x2e0] sm:$0xff] }
  0x33   :  { %v4857_v33 = vpack.c.bf16 %v520_v32, %v519_v31  ;;  %v4830_v32 = vpack.c.bf16 %v346_v29, %v344_v28  ;;  %v348_v35 = vld [vmem:[%s8419_s26 + $0x2e8] sm:$0xff]  ;;  %v349_v41 = vld [vmem:[%s8419_s26 + $0x2f0] sm:$0xff]  ;;  %v607_v55 = vld [vmem:[%s8394_s6 + $0x18] sm:$0xff] }
  0x34   :  { %4846 = vmatpush1.bf16.msra.mxu1 %v4845_v21  ;;  %v605_v54 = vld [vmem:[%s8394_s6 + $0x8] sm:$0xff]  ;;  %v4242_v15 = vld [vmem:[%s8421_s2 + $0xd0] sm:$0xff] }
  0x35   :  { %4781 = vmatpush1.bf16.msra.mxu0 %v4780_v37  ;;  %4847 = vmatprep.subr.bf16.mxu1 %v5782_v48  ;;  %v523_v37 = vld [vmem:[%s8421_s2 + $0x80] sm:$0xff]  ;;  %v4246_v23 = vld [vmem:[%s8421_s2 + $0xf0] sm:$0xff] }
  0x36   :  { %4783 = vmatprep.subr.bf16.mxu0 %v4782_v38  ;;  %v524_v38 = vld [vmem:[%s8421_s2 + $0x88] sm:$0xff]  ;;  %v4250_v29 = vld [vmem:[%s8421_s2 + $0x110] sm:$0xff] }
  0x37   :  { %v4863_v39 = vpack.c.bf16 %v524_v38, %v523_v37 }
  0x38   :  { %4849 = vmatpush1.bf16.msra.mxu1 %v4848_v24  ;;  %v4824_v24 = vpack.c.bf16 %v337_v20, %v335_v19  ;;  %v4244_v20 = vld [vmem:[%s8421_s2 + $0xe0] sm:$0xff] }
  0x39   :  { %4785 = vmatpush1.bf16.msra.mxu0 %v4784_v43  ;;  %4850 = vmatprep.subr.bf16.mxu1 %v5782_v48  ;;  %v92_v43 = vlaneseq }
  0x3a   :  { %4787 = vmatprep.subr.bf16.mxu0 %v4786_v44 }
  0x3b   :  { %v6246_v44 = vshrl.u32 %v92_v43, 7  ;;  %v4836_v43 = vpack.c.bf16 %v349_v41, %v347_v40  ;;  %v4258_v41 = vld [vmem:[%s8421_s2 + $0x150] sm:$0xff] }
  0x3c   :  { %4852 = vmatpush1.bf16.msra.mxu1 %v4851_v27  ;;  %v341_v27 = vld [vmem:[%s8419_s26 + $0x2b0] sm:$0xff] }
  0x3d   :  { %4789 = vmatpush1.bf16.msra.mxu0 %v4788_v50  ;;  %4853 = vmatprep.subr.bf16.mxu1 %v5782_v48  ;;  %v6249_v45 = vsub.s32 0, %v6246_v44  ;;  %v6257_v47 = vsub.s32 1, %v6246_v44  ;;  %v4828_v31 = vpack.c.bf16 %v341_v27, %v339_v26  ;;  %v4248_v26 = vld [vmem:[%s8421_s2 + $0x100] sm:$0xff]  ;;  %v4249_v27 = vld [vmem:[%s8421_s2 + $0x108] sm:$0xff] }
  0x3e   :  { %4791 = vmatprep.subr.bf16.mxu0 %v4790_v51  ;;  %v4895_v28 = vpack.c.bf16 %v4249_v27, %v4248_v26  ;;  %v4312_v26 = vld [vmem:[%s8421_s2 + $0x220] sm:$0xff]  ;;  %v4313_v27 = vld [vmem:[%s8421_s2 + $0x228] sm:$0xff] }
  0x3f   :  { %v95_v49 = vrot.slane %v6254_v46, %v6249_v45  ;;  %v99_v50 = vrot.slane %v6254_v46, %v6257_v47 }
  0x40   :  { %4855 = vmatpush1.bf16.msra.mxu1 %v4854_v30  ;;  %v102_v30 = vsub.s32 2, %v6246_v44 }
  0x41   :  { %4793 = vmatpush1.bf16.msra.mxu0 %v4792_v56  ;;  %4856 = vmatprep.subr.bf16.mxu1 %v5782_v48 }
  0x42   :  { %4795 = vmatprep.subr.bf16.mxu0 %v4794_v57  ;;  %v324_v57 = vld [vmem:[%s8419_s26 + $0x228] sm:$0xff]  ;;  %v103_v37 = vrot.slane %v6254_v46, %v102_v30  ;;  %v527_v46 = vld [vmem:[%s8421_s2 + $0xa0] sm:$0xff]  ;;  %v4251_v30 = vld [vmem:[%s8421_s2 + $0x118] sm:$0xff] }
  0x44   :  { %4858 = vmatpush1.bf16.msra.mxu1 %v4857_v33  ;;  %v343_v33 = vld [vmem:[%s8419_s26 + $0x2c0] sm:$0xff] }
  0x45   :  { %4797 = vmatpush1.bf16.msra.mxu0 %v4796_v62  ;;  %4859 = vmatprep.subr.bf16.mxu1 %v5782_v48  ;;  %v4810_v62 = vpack.c.bf16 %v326_v58, %v324_v57  ;;  %v4832_v38 = vpack.c.bf16 %v345_v34, %v343_v33  ;;  %v6379_v57 = vpack.c.bf16 %v607_v55, %v605_v54  ;;  %v606_v58 = vld [vmem:[%s8394_s6 + $0x10] sm:$0xff]  ;;  %v4253_v33 = vld [vmem:[%s8421_s2 + $0x128] sm:$0xff] }
  0x46   :  { %4799 = vmatprep.subr.bf16.mxu0 %v4798_v63  ;;  %v323_v63 = vld [vmem:[%s8419_s26 + $0x220] sm:$0xff]  ;;  %v4293_v54 = vld [vmem:[%s8421_s2 + $0x188] sm:$0xff] }
  0x47   :  { %v4812_v4 = vpack.c.bf16 %v325_v0, %v323_v63  ;;  %v608_v63 = vld [vmem:[%s8394_s6 + $0x20] sm:$0xff]  ;;  %v610_v0 = vld [vmem:[%s8394_s6 + $0x30] sm:$0xff] }
  0x48   :  { %4861 = vmatpush1.bf16.msra.mxu1 %v4860_v36  ;;  %v350_v36 = vld [vmem:[%s8419_s26 + $0x2f8] sm:$0xff] }
  0x49   :  { %4801 = vmatpush1.bf16.msra.mxu0 %v4800_v2  ;;  %4862 = vmatprep.subr.bf16.mxu1 %v5782_v48  ;;  %v330_v2 = vld [vmem:[%s8419_s26 + $0x258] sm:$0xff] }
  0x4a   :  { %4803 = vmatprep.subr.bf16.mxu0 %v4802_v6  ;;  %v4814_v5 = vpack.c.bf16 %v330_v2, %v328_v1  ;;  %v327_v6 = vld [vmem:[%s8419_s26 + $0x240] sm:$0xff]  ;;  %v6404_v1 = vpack.c.bf16 %v610_v0, %v608_v63  ;;  %v4297_v63 = vld [vmem:[%s8421_s2 + $0x1a8] sm:$0xff] }
  0x4b   :  { %v4816_v10 = vpack.c.bf16 %v329_v7, %v327_v6  ;;  %v351_v2 = vld [vmem:[%s8395_s4] sm:$0x3] }
  0x4c   :  { %4864 = vmatpush1.bf16.msra.mxu1 %v4863_v39  ;;  %v4834_v39 = vpack.c.bf16 %v350_v36, %v348_v35  ;;  %v4254_v35 = vld [vmem:[%s8421_s2 + $0x130] sm:$0xff]  ;;  %v4255_v36 = vld [vmem:[%s8421_s2 + $0x138] sm:$0xff] }
  0x4d   :  { %4805 = vmatpush1.bf16.msra.mxu0 %v4804_v9  ;;  %4865 = vmatprep.subr.bf16.mxu1 %v5782_v48  ;;  %v334_v9 = vld [vmem:[%s8419_s26 + $0x278] sm:$0xff] }
  0x4e   :  { %4807 = vmatprep.subr.bf16.mxu0 %v4806_v12  ;;  %v4818_v11 = vpack.c.bf16 %v334_v9, %v332_v8  ;;  %v331_v12 = vld [vmem:[%s8419_s26 + $0x260] sm:$0xff] }
  0x4f   :  { %v4820_v16 = vpack.c.bf16 %v333_v13, %v331_v12  ;;  %v4240_v12 = vld [vmem:[%s8421_s2 + $0xc0] sm:$0xff]  ;;  %v4241_v13 = vld [vmem:[%s8421_s2 + $0xc8] sm:$0xff] }
  0x50   :  { %4867 = vmatpush1.bf16.msra.mxu1 %v4866_v42  ;;  %v4883_v14 = vpack.c.bf16 %v4241_v13, %v4240_v12  ;;  %v4303_v12 = vld [vmem:[%s8421_s2 + $0x1d8] sm:$0xff] }
  0x51   :  { %4868 = vmatprep.subr.bf16.mxu1 %v5782_v48 }
  0xee   :  { %v177_v51 = vpop.f32.mrb[0].mxu1 }
  0xef   :  { %v178_v52 = vadd.f32 %v177_v51, %v95_v49  ;;  %v179_v53 = vpop.f32.mrb[1].mxu1  ;;  %v528_v49 = vld [vmem:[%s8421_s2 + $0xa8] sm:$0xff]  ;;  %v529_v51 = vld [vmem:[%s8421_s2 + $0xb0] sm:$0xff] }
  0xf0   :  { %v180_v56 = vadd.f32 %v179_v53, %v99_v50  ;;  %v4869_v50 = vpack.c.bf16 %v528_v49, %v527_v46  ;;  %v4261_v46 = vld [vmem:[%s8421_s2 + $0x168] sm:$0xff] }
  0xf1   :  { %v252_v61 = vmax.f32 %v178_v52, 0.0  ;;  %v530_v52 = vld [vmem:[%s8421_s2 + $0xb8] sm:$0xff] }
  0xf2   :  { %v253_v59 = vmax.f32 %v180_v56, 0.0  ;;  %4870 = vmatpush1.bf16.msra.mxu1 %v4869_v50  ;;  %v4872_v53 = vpack.c.bf16 %v530_v52, %v529_v51  ;;  %v604_v56 = vld [vmem:[%s8394_s6] sm:$0xff]  ;;  %v4262_v50 = vld [vmem:[%s8421_s2 + $0x170] sm:$0xff]  ;;  %v4263_v51 = vld [vmem:[%s8421_s2 + $0x178] sm:$0xff] }
  0xf3   :  { %4871 = vmatprep.subr.bf16.mxu1 %v5782_v48  ;;  %v4916_v52 = vpack.c.bf16 %v4263_v51, %v4262_v50  ;;  %v4274_v51 = vld [vmem:[%s8396_s7 + $0x100] sm:$0xff] }
  0xf4   :  { %427 = vmatprep.mubr.f32.mxu0 %v253_v59  ;;  %v609_v59 = vld [vmem:[%s8394_s6 + $0x28] sm:$0xff] }
  0xf5   :  { %428 = vmatmul.mubr.f32.vlgmr.msra.gmra.mrb[0].mxu0 %v252_v61  ;;  %v6390_v61 = vpack.c.bf16 %v606_v58, %v604_v56  ;;  %v4294_v56 = vld [vmem:[%s8421_s2 + $0x190] sm:$0xff]  ;;  %v4295_v58 = vld [vmem:[%s8421_s2 + $0x198] sm:$0xff] }
  0xf6   :  { %4809 = vmatpush1.bf16.msra.mxu0 %v4808_v60  ;;  %498 = vmatprep.mubr.f32.mxu0 %v5781_v3  ;;  %v611_v60 = vld [vmem:[%s8394_s6 + $0x38] sm:$0xff] }
  0xf7   :  { %4811 = vmatprep.subr.bf16.mxu0 %v4810_v62  ;;  %4873 = vmatpush1.bf16.msra.mxu1 %v4872_v53  ;;  %v6393_v62 = vpack.c.bf16 %v611_v60, %v609_v59  ;;  %v4292_v53 = vld [vmem:[%s8421_s2 + $0x180] sm:$0xff]  ;;  %v5002_v59 = vpack.c.bf16 %v4295_v58, %v4294_v56 }
  0xf8   :  { %4875 = vmatprep.subr.bf16.mxu1 %v6379_v57  ;;  %v4999_v55 = vpack.c.bf16 %v4293_v54, %v4292_v53  ;;  %v4296_v60 = vld [vmem:[%s8421_s2 + $0x1a0] sm:$0xff]  ;;  %v4276_v54 = vld [vmem:[%s8396_s7 + $0x110] sm:$0xff] }
  0xf9   :  { %v5005_v0 = vpack.c.bf16 %v4297_v63, %v4296_v60  ;;  %v4278_v58 = vld [vmem:[%s8396_s7 + $0x120] sm:$0xff]  ;;  %v4280_v63 = vld [vmem:[%s8396_s7 + $0x130] sm:$0xff] }
  0xfa   :  { %4813 = vmatpush1.bf16.msra.mxu0 %v4812_v4  ;;  %v356_v4 = vrot.slane %v351_v2, %v6249_v45 }
  0xfb   :  { %4815 = vmatprep.subr.bf16.mxu0 %v4814_v5  ;;  %v360_v5 = vrot.slane %v351_v2, %v6257_v47  ;;  %v4298_v2 = vld [vmem:[%s8421_s2 + $0x1b0] sm:$0xff] }
  0xfe   :  { %4817 = vmatpush1.bf16.msra.mxu0 %v4816_v10  ;;  %v248_v17 = vpop.f32.mrb[2].mxu1 }
  0xff   :  { %4819 = vmatprep.subr.bf16.mxu0 %v4818_v11  ;;  %v4695_v21 = vpop.f32.mrb[3].mxu1  ;;  %v249_v42 = vadd.f32 %v248_v17, %v103_v37  ;;  %v4904_v37 = vpack.c.bf16 %v4255_v36, %v4254_v35  ;;  %v4267_v35 = vld [vmem:[%s8396_s7 + $0xc8] sm:$0xff] }
 0x100   :  { %v4245_v21 = vld [vmem:[%s8421_s2 + $0xe8] sm:$0xff] }
 0x101   :  { %v254_v44 = vmax.f32 %v249_v42, 0.0  ;;  %v4889_v22 = vpack.c.bf16 %v4245_v21, %v4244_v20  ;;  %v4259_v42 = vld [vmem:[%s8421_s2 + $0x158] sm:$0xff]  ;;  %v4308_v20 = vld [vmem:[%s8421_s2 + $0x200] sm:$0xff]  ;;  %v4309_v21 = vld [vmem:[%s8421_s2 + $0x208] sm:$0xff] }
 0x102   :  { %4821 = vmatpush1.bf16.msra.mxu0 %v4820_v16  ;;  %v4243_v16 = vld [vmem:[%s8421_s2 + $0xd8] sm:$0xff] }
 0x103   :  { %4823 = vmatprep.subr.bf16.mxu0 %v4822_v18  ;;  %v4886_v19 = vpack.c.bf16 %v4243_v16, %v4242_v15  ;;  %v4305_v15 = vld [vmem:[%s8421_s2 + $0x1e8] sm:$0xff] }
 0x106   :  { %4825 = vmatpush1.bf16.msra.mxu0 %v4824_v24  ;;  %v4247_v24 = vld [vmem:[%s8421_s2 + $0xf8] sm:$0xff] }
 0x107   :  { %4827 = vmatprep.subr.bf16.mxu0 %v4826_v25  ;;  %v4892_v25 = vpack.c.bf16 %v4247_v24, %v4246_v23  ;;  %v4310_v23 = vld [vmem:[%s8421_s2 + $0x210] sm:$0xff]  ;;  %v4311_v24 = vld [vmem:[%s8421_s2 + $0x218] sm:$0xff] }
 0x10a   :  { %4829 = vmatpush1.bf16.msra.mxu0 %v4828_v31  ;;  %v4898_v31 = vpack.c.bf16 %v4251_v30, %v4250_v29  ;;  %v4314_v29 = vld [vmem:[%s8421_s2 + $0x230] sm:$0xff]  ;;  %v4315_v30 = vld [vmem:[%s8421_s2 + $0x238] sm:$0xff] }
 0x10b   :  { %4831 = vmatprep.subr.bf16.mxu0 %v4830_v32  ;;  %v4252_v32 = vld [vmem:[%s8421_s2 + $0x120] sm:$0xff] }
 0x10c   :  { %v4901_v34 = vpack.c.bf16 %v4253_v33, %v4252_v32 }
 0x10e   :  { %4833 = vmatpush1.bf16.msra.mxu0 %v4832_v38  ;;  %v4256_v38 = vld [vmem:[%s8421_s2 + $0x140] sm:$0xff] }
 0x10f   :  { %4835 = vmatprep.subr.bf16.mxu0 %v4834_v39  ;;  %v4257_v39 = vld [vmem:[%s8421_s2 + $0x148] sm:$0xff] }
 0x110   :  { %v4907_v40 = vpack.c.bf16 %v4257_v39, %v4256_v38  ;;  %v4269_v38 = vld [vmem:[%s8396_s7 + $0xd8] sm:$0xff] }
 0x112   :  { %4837 = vmatpush1.bf16.msra.mxu0 %v4836_v43  ;;  %v4910_v43 = vpack.c.bf16 %v4259_v42, %v4258_v41  ;;  %v4270_v42 = vld [vmem:[%s8396_s7 + $0xe0] sm:$0xff] }
 0x113   :  { %4919 = vmatprep.subr.bf16.mxu0 %v6379_v57 }
 0x115   :  { %499 = vmatmul.mubr.f32.vlgmr.msra.gmra.mrb[0].mxu0 %v254_v44  ;;  %v4260_v44 = vld [vmem:[%s8421_s2 + $0x160] sm:$0xff] }
 0x116   :  { %875 = vmatprep.mubr.f32.mxu0 %v5781_v3  ;;  %4921 = vmatpush1.bf16.msra.mxu0 %v6390_v61  ;;  %v4913_v49 = vpack.c.bf16 %v4261_v46, %v4260_v44  ;;  %v4272_v46 = vld [vmem:[%s8396_s7 + $0xf0] sm:$0xff] }
 0x117   :  { %4923 = vmatprep.subr.bf16.mxu0 %v6393_v62 }
 0x11a   :  { %4925 = vmatpush1.bf16.msra.mxu0 %v6404_v1 }
 0x11b   :  { %4926 = vmatprep.subr.bf16.mxu0 %v5782_v48 }
 0x1e8   :  { %v500_v6 = vpop.f32.mrb[0].mxu0 }
 0x1e9   :  { %v5748_v7 = vadd.f32 %v500_v6, %v356_v4  ;;  %v502_v8 = vpop.f32.mrb[1].mxu0  ;;  %v4299_v4 = vld [vmem:[%s8421_s2 + $0x1b8] sm:$0xff]  ;;  %v4300_v6 = vld [vmem:[%s8421_s2 + $0x1c0] sm:$0xff] }
 0x1ea   :  { %v5749_v9 = vadd.f32 %v502_v8, %v360_v5  ;;  %v5008_v5 = vpack.c.bf16 %v4299_v4, %v4298_v2  ;;  %v4282_v4 = vld [vmem:[%s8396_s7 + $0x140] sm:$0xff] }
 0x1eb   :  { %v6415_v11 = vmax.f32 %v5748_v7, 0.0  ;;  %v4301_v7 = vld [vmem:[%s8421_s2 + $0x1c8] sm:$0xff] }
 0x1ec   :  { %v6413_v10 = vmax.f32 %v5749_v9, 0.0  ;;  %v5011_v8 = vpack.c.bf16 %v4301_v7, %v4300_v6  ;;  %v4302_v9 = vld [vmem:[%s8421_s2 + $0x1d0] sm:$0xff] }
 0x1ed   :  { %v5014_v13 = vpack.c.bf16 %v4303_v12, %v4302_v9  ;;  %v4284_v7 = vld [vmem:[%s8396_s7 + $0x150] sm:$0xff]  ;;  %v4286_v12 = vld [vmem:[%s8396_s7 + $0x160] sm:$0xff] }
 0x1ee   :  { %4238 = vmatprep.mubr.msk.f32.mxu1 %vm107_vm0, %v6413_v10 }
 0x1ef   :  { %599 = vmatmul.mubr.f32.vlgmr.msra.gmra.mrb[4].mxu1 %v6415_v11 }
 0x1f0   :  { %4877 = vmatpush1.bf16.msra.mxu1 %v6390_v61  ;;  %680 = vmatprep.mubr.f32.mxu1 %v5781_v3 }
 0x1f1   :  { %4879 = vmatprep.subr.bf16.mxu1 %v6393_v62 }
 0x1f4   :  { %4881 = vmatpush1.bf16.msra.mxu1 %v6404_v1 }
 0x1f5   :  { %4882 = vmatprep.subr.bf16.mxu1 %v5782_v48 }
 0x2c2   :  { %v600_v17 = vpop.f32.mrb[4].mxu1 }
 0x2c3   :  { %v602_v18 = vpop.f32.mrb[5].mxu1  ;;  %4239 = vmatmul.mubr.msk.f32.vlgmr.msra.gmra.mrb[6].mxu1 %vm612_vm2, %v600_v17  ;;  %v4306_v17 = vld [vmem:[%s8421_s2 + $0x1f0] sm:$0xff] }
 0x2c4   :  { %4884 = vmatpush1.bf16.msra.mxu1 %v4883_v14  ;;  %4264 = vmatprep.mubr.msk.f32.mxu1 %vm107_vm0, %v6413_v10  ;;  %v4304_v14 = vld [vmem:[%s8421_s2 + $0x1e0] sm:$0xff]  ;;  %v4307_v18 = vld [vmem:[%s8421_s2 + $0x1f8] sm:$0xff] }
 0x2c5   :  { %4885 = vmatprep.subr.bf16.mxu1 %v5782_v48  ;;  %v5017_v16 = vpack.c.bf16 %v4305_v15, %v4304_v14  ;;  %v4343_v15 = vld [vmem:[%s8421_s2 + $0x240] sm:$0xff] }
 0x2c8   :  { %4887 = vmatpush1.bf16.msra.mxu1 %v4886_v19  ;;  %v5020_v19 = vpack.c.bf16 %v4307_v18, %v4306_v17  ;;  %v4345_v18 = vld [vmem:[%s8421_s2 + $0x250] sm:$0xff] }
 0x2c9   :  { %4888 = vmatprep.subr.bf16.mxu1 %v5782_v48 }
 0x2cc   :  { %4890 = vmatpush1.bf16.msra.mxu1 %v4889_v22  ;;  %v5023_v22 = vpack.c.bf16 %v4309_v21, %v4308_v20 }
 0x2cd   :  { %4891 = vmatprep.subr.bf16.mxu1 %v5782_v48 }
 0x2d0   :  { %4893 = vmatpush1.bf16.msra.mxu1 %v4892_v25  ;;  %v5026_v25 = vpack.c.bf16 %v4311_v24, %v4310_v23  ;;  %v4347_v23 = vld [vmem:[%s8421_s2 + $0x260] sm:$0xff]  ;;  %v4348_v24 = vld [vmem:[%s8421_s2 + $0x268] sm:$0xff] }
 0x2d1   :  { %4894 = vmatprep.subr.bf16.mxu1 %v5782_v48 }
 0x2d4   :  { %4896 = vmatpush1.bf16.msra.mxu1 %v4895_v28  ;;  %v5029_v28 = vpack.c.bf16 %v4313_v27, %v4312_v26  ;;  %v4349_v26 = vld [vmem:[%s8421_s2 + $0x270] sm:$0xff]  ;;  %v4350_v27 = vld [vmem:[%s8421_s2 + $0x278] sm:$0xff] }
 0x2d5   :  { %4897 = vmatprep.subr.bf16.mxu1 %v5782_v48 }
 0x2d8   :  { %4899 = vmatpush1.bf16.msra.mxu1 %v4898_v31  ;;  %v5032_v31 = vpack.c.bf16 %v4315_v30, %v4314_v29  ;;  %v4351_v29 = vld [vmem:[%s8421_s2 + $0x280] sm:$0xff]  ;;  %v4352_v30 = vld [vmem:[%s8421_s2 + $0x288] sm:$0xff] }
 0x2d9   :  { %4900 = vmatprep.subr.bf16.mxu1 %v5782_v48 }
 0x2dc   :  { %4902 = vmatpush1.bf16.msra.mxu1 %v4901_v34  ;;  %v4266_v34 = vld [vmem:[%s8396_s7 + $0xc0] sm:$0xff] }
 0x2dd   :  { %4903 = vmatprep.subr.bf16.mxu1 %v5782_v48  ;;  %v4927_v36 = vpack.c.bf16 %v4267_v35, %v4266_v34  ;;  %v4353_v34 = vld [vmem:[%s8421_s2 + $0x290] sm:$0xff]  ;;  %v4354_v35 = vld [vmem:[%s8421_s2 + $0x298] sm:$0xff] }
 0x2e0   :  { %4905 = vmatpush1.bf16.msra.mxu1 %v4904_v37  ;;  %v4268_v37 = vld [vmem:[%s8396_s7 + $0xd0] sm:$0xff] }
 0x2e1   :  { %4906 = vmatprep.subr.bf16.mxu1 %v5782_v48  ;;  %v4930_v41 = vpack.c.bf16 %v4269_v38, %v4268_v37  ;;  %v4355_v37 = vld [vmem:[%s8421_s2 + $0x2a0] sm:$0xff]  ;;  %v4356_v38 = vld [vmem:[%s8421_s2 + $0x2a8] sm:$0xff] }
 0x2e4   :  { %4908 = vmatpush1.bf16.msra.mxu1 %v4907_v40 }
 0x2e5   :  { %4909 = vmatprep.subr.bf16.mxu1 %v5782_v48 }
 0x2e8   :  { %4911 = vmatpush1.bf16.msra.mxu1 %v4910_v43  ;;  %v4271_v43 = vld [vmem:[%s8396_s7 + $0xe8] sm:$0xff] }
 0x2e9   :  { %4912 = vmatprep.subr.bf16.mxu1 %v5782_v48  ;;  %v4933_v44 = vpack.c.bf16 %v4271_v43, %v4270_v42  ;;  %v4359_v43 = vld [vmem:[%s8421_s2 + $0x2c0] sm:$0xff] }
 0x2ec   :  { %4914 = vmatpush1.bf16.msra.mxu1 %v4913_v49  ;;  %v4273_v49 = vld [vmem:[%s8396_s7 + $0xf8] sm:$0xff] }
 0x2ed   :  { %4915 = vmatprep.subr.bf16.mxu1 %v5782_v48  ;;  %v4936_v50 = vpack.c.bf16 %v4273_v49, %v4272_v46  ;;  %v4361_v49 = vld [vmem:[%s8421_s2 + $0x2d0] sm:$0xff] }
 0x2f0   :  { %4917 = vmatpush1.bf16.msra.mxu1 %v4916_v52  ;;  %v4275_v52 = vld [vmem:[%s8396_s7 + $0x108] sm:$0xff] }
 0x2f1   :  { %4998 = vmatprep.subr.bf16.mxu1 %v5782_v48  ;;  %v4939_v53 = vpack.c.bf16 %v4275_v52, %v4274_v51  ;;  %v4363_v52 = vld [vmem:[%s8421_s2 + $0x2e0] sm:$0xff] }
 0x2f3   :  { %803 = vmatmul.mubr.f32.vlgmr.msra.gmra.mrb[8].mxu1 %v6415_v11 }
 0x2f4   :  { %5000 = vmatpush1.bf16.msra.mxu1 %v4999_v55  ;;  %4316 = vmatprep.mubr.msk.f32.mxu1 %vm107_vm0, %v6413_v10  ;;  %v4277_v55 = vld [vmem:[%s8396_s7 + $0x118] sm:$0xff] }
 0x2f5   :  { %5001 = vmatprep.subr.bf16.mxu1 %v5782_v48  ;;  %v4942_v56 = vpack.c.bf16 %v4277_v55, %v4276_v54  ;;  %v4288_v54 = vld [vmem:[%s8396_s7 + $0x170] sm:$0xff]  ;;  %v4289_v55 = vld [vmem:[%s8396_s7 + $0x178] sm:$0xff] }
 0x2f8   :  { %5003 = vmatpush1.bf16.msra.mxu1 %v5002_v59  ;;  %v4279_v59 = vld [vmem:[%s8396_s7 + $0x128] sm:$0xff] }
 0x2f9   :  { %5004 = vmatprep.subr.bf16.mxu1 %v5782_v48  ;;  %v4945_v60 = vpack.c.bf16 %v4279_v59, %v4278_v58  ;;  %v4365_v59 = vld [vmem:[%s8421_s2 + $0x2f0] sm:$0xff] }
 0x2fc   :  { %5006 = vmatpush1.bf16.msra.mxu1 %v5005_v0  ;;  %v4281_v0 = vld [vmem:[%s8396_s7 + $0x138] sm:$0xff] }
 0x2fd   :  { %5007 = vmatprep.subr.bf16.mxu1 %v5782_v48  ;;  %v4948_v2 = vpack.c.bf16 %v4281_v0, %v4280_v63  ;;  %v689_v0 = vld [vmem:[%s8396_s7] sm:$0xff] }
 0x300   :  { %5009 = vmatpush1.bf16.msra.mxu1 %v5008_v5  ;;  %v4283_v5 = vld [vmem:[%s8396_s7 + $0x148] sm:$0xff] }
 0x301   :  { %5010 = vmatprep.subr.bf16.mxu1 %v5782_v48  ;;  %v4951_v6 = vpack.c.bf16 %v4283_v5, %v4282_v4 }
 0x304   :  { %5012 = vmatpush1.bf16.msra.mxu1 %v5011_v8  ;;  %v4285_v8 = vld [vmem:[%s8396_s7 + $0x158] sm:$0xff] }
 0x305   :  { %5013 = vmatprep.subr.bf16.mxu1 %v5782_v48  ;;  %v4954_v9 = vpack.c.bf16 %v4285_v8, %v4284_v7 }
 0x308   :  { %5015 = vmatpush1.bf16.msra.mxu1 %v5014_v13  ;;  %v4287_v13 = vld [vmem:[%s8396_s7 + $0x168] sm:$0xff] }
 0x309   :  { %5016 = vmatprep.subr.bf16.mxu1 %v5782_v48  ;;  %v4957_v14 = vpack.c.bf16 %v4287_v13, %v4286_v12  ;;  %v692_v12 = vld [vmem:[%s8396_s7 + $0x18] sm:$0xff] }
 0x30c   :  { %5018 = vmatpush1.bf16.msra.mxu1 %v5017_v16  ;;  %v4344_v16 = vld [vmem:[%s8421_s2 + $0x248] sm:$0xff] }
 0x30d   :  { %5019 = vmatprep.subr.bf16.mxu1 %v5782_v48  ;;  %v5079_v17 = vpack.c.bf16 %v4344_v16, %v4343_v15  ;;  %v693_v15 = vld [vmem:[%s8396_s7 + $0x20] sm:$0xff]  ;;  %v694_v16 = vld [vmem:[%s8396_s7 + $0x28] sm:$0xff] }
 0x310   :  { %5021 = vmatpush1.bf16.msra.mxu1 %v5020_v19  ;;  %v4346_v19 = vld [vmem:[%s8421_s2 + $0x258] sm:$0xff] }
 0x311   :  { %5022 = vmatprep.subr.bf16.mxu1 %v5782_v48 }
 0x314   :  { %5024 = vmatpush1.bf16.msra.mxu1 %v5023_v22  ;;  %v5082_v22 = vpack.c.bf16 %v4346_v19, %v4345_v18  ;;  %v696_v18 = vld [vmem:[%s8396_s7 + $0x38] sm:$0xff] }
 0x315   :  { %5025 = vmatprep.subr.bf16.mxu1 %v5782_v48 }
 0x318   :  { %5027 = vmatpush1.bf16.msra.mxu1 %v5026_v25  ;;  %v5085_v25 = vpack.c.bf16 %v4348_v24, %v4347_v23  ;;  %v699_v23 = vld [vmem:[%s8396_s7 + $0x50] sm:$0xff]  ;;  %v700_v24 = vld [vmem:[%s8396_s7 + $0x58] sm:$0xff] }
 0x319   :  { %5028 = vmatprep.subr.bf16.mxu1 %v5782_v48 }
 0x31c   :  { %5030 = vmatpush1.bf16.msra.mxu1 %v5029_v28  ;;  %v5088_v28 = vpack.c.bf16 %v4350_v27, %v4349_v26  ;;  %v701_v26 = vld [vmem:[%s8396_s7 + $0x60] sm:$0xff]  ;;  %v702_v27 = vld [vmem:[%s8396_s7 + $0x68] sm:$0xff] }
 0x31d   :  { %5031 = vmatprep.subr.bf16.mxu1 %v5782_v48 }
 0x320   :  { %5033 = vmatpush1.bf16.msra.mxu1 %v5032_v31  ;;  %v5091_v31 = vpack.c.bf16 %v4352_v30, %v4351_v29  ;;  %v703_v29 = vld [vmem:[%s8396_s7 + $0x70] sm:$0xff]  ;;  %v704_v30 = vld [vmem:[%s8396_s7 + $0x78] sm:$0xff] }
 0x321   :  { %5035 = vmatprep.subr.bf16.mxu1 %v6379_v57 }
 0x323   :  { %1145 = vmatmul.mubr.f32.vlgmr.msra.gmra.mrb[10].mxu1 %v6415_v11 }
 0x324   :  { %5037 = vmatpush1.bf16.msra.mxu1 %v6390_v61  ;;  %1217 = vmatprep.mubr.f32.mxu1 %v5781_v3 }
 0x325   :  { %5039 = vmatprep.subr.bf16.mxu1 %v6393_v62 }
 0x328   :  { %5041 = vmatpush1.bf16.msra.mxu1 %v6404_v1 }
 0x329   :  { %5078 = vmatprep.subr.bf16.mxu1 %v5782_v48 }
 0x396   :  { %v6605_v32 = vpop.f32.mrb[6].mxu1 }
 0x397   :  { %v6607_v33 = vpop.f32.mrb[7].mxu1 }
 0x398   :  { %v688_v13 = vmul.f32 %v6607_v33, %v6413_v10  ;;  %v695_v33 = vld [vmem:[%s8396_s7 + $0x30] sm:$0xff] }
 0x399   :  { %v4972_v19 = vpack.c.bf16 %v696_v18, %v695_v33  ;;  %v4334_v18 = vld [vmem:[%s8396_s7 + $0x200] sm:$0xff] }
 0x3c6   :  { %v804_v39 = vpop.f32.mrb[8].mxu1 }
 0x3c7   :  { %v806_v40 = vpop.f32.mrb[9].mxu1  ;;  %4265 = vmatmul.mubr.msk.f32.vlgmr.msra.gmra.mrb[2].mxu0 %vm612_vm2, %v804_v39  ;;  %v5097_v39 = vpack.c.bf16 %v4356_v38, %v4355_v37  ;;  %v707_v37 = vld [vmem:[%s8396_s7 + $0x90] sm:$0xff]  ;;  %v708_v38 = vld [vmem:[%s8396_s7 + $0x98] sm:$0xff] }
 0x3c8   :  { %4928 = vmatpush1.bf16.msra.mxu0 %v4927_v36  ;;  %v5094_v36 = vpack.c.bf16 %v4354_v35, %v4353_v34  ;;  %v4357_v40 = vld [vmem:[%s8421_s2 + $0x2b0] sm:$0xff]  ;;  %v705_v34 = vld [vmem:[%s8396_s7 + $0x80] sm:$0xff]  ;;  %v706_v35 = vld [vmem:[%s8396_s7 + $0x88] sm:$0xff] }
 0x3c9   :  { %4929 = vmatprep.subr.bf16.mxu0 %v5782_v48 }
 0x3cc   :  { %4931 = vmatpush1.bf16.msra.mxu0 %v4930_v41  ;;  %v4358_v41 = vld [vmem:[%s8421_s2 + $0x2b8] sm:$0xff] }
 0x3cd   :  { %4932 = vmatprep.subr.bf16.mxu0 %v5782_v48  ;;  %v5100_v42 = vpack.c.bf16 %v4358_v41, %v4357_v40  ;;  %v709_v40 = vld [vmem:[%s8396_s7 + $0xa0] sm:$0xff]  ;;  %v710_v41 = vld [vmem:[%s8396_s7 + $0xa8] sm:$0xff] }
 0x3d0   :  { %4934 = vmatpush1.bf16.msra.mxu0 %v4933_v44  ;;  %v4360_v44 = vld [vmem:[%s8421_s2 + $0x2c8] sm:$0xff] }
 0x3d1   :  { %4935 = vmatprep.subr.bf16.mxu0 %v5782_v48  ;;  %v5103_v46 = vpack.c.bf16 %v4360_v44, %v4359_v43  ;;  %v711_v43 = vld [vmem:[%s8396_s7 + $0xb0] sm:$0xff]  ;;  %v712_v44 = vld [vmem:[%s8396_s7 + $0xb8] sm:$0xff] }
 0x3d4   :  { %4937 = vmatpush1.bf16.msra.mxu0 %v4936_v50  ;;  %v4362_v50 = vld [vmem:[%s8421_s2 + $0x2d8] sm:$0xff] }
 0x3d5   :  { %4938 = vmatprep.subr.bf16.mxu0 %v5782_v48  ;;  %v5106_v51 = vpack.c.bf16 %v4362_v50, %v4361_v49  ;;  %v4318_v49 = vld [vmem:[%s8396_s7 + $0x180] sm:$0xff]  ;;  %v4319_v50 = vld [vmem:[%s8396_s7 + $0x188] sm:$0xff] }
 0x3d8   :  { %4940 = vmatpush1.bf16.msra.mxu0 %v4939_v53  ;;  %v4364_v53 = vld [vmem:[%s8421_s2 + $0x2e8] sm:$0xff] }
 0x3d9   :  { %4941 = vmatprep.subr.bf16.mxu0 %v5782_v48  ;;  %v5109_v58 = vpack.c.bf16 %v4364_v53, %v4363_v52 }
 0x3dc   :  { %4943 = vmatpush1.bf16.msra.mxu0 %v4942_v56  ;;  %v4960_v56 = vpack.c.bf16 %v4289_v55, %v4288_v54  ;;  %v5043_v54 = vpack.c.bf16 %v4319_v50, %v4318_v49  ;;  %v687_v55 = vmul.f32 %v6605_v32, %v6415_v11  ;;  %v4322_v32 = vld [vmem:[%s8396_s7 + $0x1a0] sm:$0xff]  ;;  %v4371_v49 = vld [vmem:[%s8396_s7 + $0x250] sm:$0xff]  ;;  %v4372_v50 = vld [vmem:[%s8396_s7 + $0x258] sm:$0xff] }
 0x3dd   :  { %4944 = vmatprep.subr.bf16.mxu0 %v5782_v48 }
 0x3e0   :  { %4946 = vmatpush1.bf16.msra.mxu0 %v4945_v60  ;;  %v4366_v60 = vld [vmem:[%s8421_s2 + $0x2f8] sm:$0xff] }
 0x3e1   :  { %4947 = vmatprep.subr.bf16.mxu0 %v5782_v48  ;;  %v5112_v63 = vpack.c.bf16 %v4366_v60, %v4365_v59  ;;  %v4323_v60 = vld [vmem:[%s8396_s7 + $0x1a8] sm:$0xff] }
 0x3e4   :  { %4949 = vmatpush1.bf16.msra.mxu0 %v4948_v2  ;;  %v690_v2 = vld [vmem:[%s8396_s7 + $0x8] sm:$0xff] }
 0x3e5   :  { %4950 = vmatprep.subr.bf16.mxu0 %v5782_v48  ;;  %v4963_v7 = vpack.c.bf16 %v690_v2, %v689_v0  ;;  %v4324_v0 = vld [vmem:[%s8396_s7 + $0x1b0] sm:$0xff]  ;;  %v4325_v2 = vld [vmem:[%s8396_s7 + $0x1b8] sm:$0xff] }
 0x3e8   :  { %4952 = vmatpush1.bf16.msra.mxu0 %v4951_v6 }
 0x3e9   :  { %4953 = vmatprep.subr.bf16.mxu0 %v5782_v48 }
 0x3ec   :  { %4955 = vmatpush1.bf16.msra.mxu0 %v4954_v9  ;;  %v691_v9 = vld [vmem:[%s8396_s7 + $0x10] sm:$0xff] }
 0x3ed   :  { %4956 = vmatprep.subr.bf16.mxu0 %v5782_v48 }
 0x3f0   :  { %4958 = vmatpush1.bf16.msra.mxu0 %v4957_v14  ;;  %v4966_v14 = vpack.c.bf16 %v692_v12, %v691_v9  ;;  %v4329_v9 = vld [vmem:[%s8396_s7 + $0x1d8] sm:$0xff] }
 0x3f1   :  { %4959 = vmatprep.subr.bf16.mxu0 %v5782_v48 }
 0x3f4   :  { %4961 = vmatpush1.bf16.msra.mxu0 %v4960_v56  ;;  %v4320_v56 = vld [vmem:[%s8396_s7 + $0x190] sm:$0xff] }
 0x3f5   :  { %4962 = vmatprep.subr.bf16.mxu0 %v5782_v48 }
 0x3f6   :  { %v1146_v20 = vpop.f32.mrb[10].mxu1 }
 0x3f7   :  { %v1148_v21 = vpop.f32.mrb[11].mxu1  ;;  %4317 = vmatmul.mubr.msk.f32.vlgmr.msra.gmra.mrb[12].mxu1 %vm612_vm2, %v1146_v20  ;;  %v697_v20 = vld [vmem:[%s8396_s7 + $0x40] sm:$0xff] }
 0x3f8   :  { %5080 = vmatpush1.bf16.msra.mxu1 %v5079_v17  ;;  %4367 = vmatprep.mubr.msk.f32.mxu1 %vm107_vm0, %v6413_v10  ;;  %v4969_v17 = vpack.c.bf16 %v694_v16, %v693_v15  ;;  %v698_v21 = vld [vmem:[%s8396_s7 + $0x48] sm:$0xff]  ;;  %v4332_v16 = vld [vmem:[%s8396_s7 + $0x1f0] sm:$0xff] }
 0x3f9   :  { %5081 = vmatprep.subr.bf16.mxu1 %v5782_v48 }
 0x3fc   :  { %5083 = vmatpush1.bf16.msra.mxu1 %v5082_v22  ;;  %v4975_v22 = vpack.c.bf16 %v698_v21, %v697_v20  ;;  %v4336_v21 = vld [vmem:[%s8396_s7 + $0x210] sm:$0xff] }
 0x3fd   :  { %5084 = vmatprep.subr.bf16.mxu1 %v5782_v48 }
 0x400   :  { %5086 = vmatpush1.bf16.msra.mxu1 %v5085_v25  ;;  %v4978_v25 = vpack.c.bf16 %v700_v24, %v699_v23  ;;  %v4338_v24 = vld [vmem:[%s8396_s7 + $0x220] sm:$0xff] }
 0x401   :  { %5087 = vmatprep.subr.bf16.mxu1 %v5782_v48 }
 0x404   :  { %5089 = vmatpush1.bf16.msra.mxu1 %v5088_v28  ;;  %v4981_v28 = vpack.c.bf16 %v702_v27, %v701_v26  ;;  %v4394_v27 = vld [vmem:[%s8421_s2 + $0x300] sm:$0xff] }
 0x405   :  { %5090 = vmatprep.subr.bf16.mxu1 %v5782_v48 }
 0x408   :  { %5092 = vmatpush1.bf16.msra.mxu1 %v5091_v31  ;;  %v4984_v31 = vpack.c.bf16 %v704_v30, %v703_v29  ;;  %v4340_v29 = vld [vmem:[%s8396_s7 + $0x230] sm:$0xff]  ;;  %v4341_v30 = vld [vmem:[%s8396_s7 + $0x238] sm:$0xff] }
 0x409   :  { %5093 = vmatprep.subr.bf16.mxu1 %v5782_v48 }
 0x40c   :  { %5095 = vmatpush1.bf16.msra.mxu1 %v5094_v36  ;;  %v4987_v36 = vpack.c.bf16 %v706_v35, %v705_v34  ;;  %v5076_v34 = vpack.c.bf16 %v4341_v30, %v4340_v29  ;;  %v4396_v35 = vld [vmem:[%s8421_s2 + $0x310] sm:$0xff] }
 0x40d   :  { %5096 = vmatprep.subr.bf16.mxu1 %v5782_v48  ;;  %v4412_v29 = vld [vmem:[%s8421_s2 + $0x390] sm:$0xff] }
 0x410   :  { %5098 = vmatpush1.bf16.msra.mxu1 %v5097_v39  ;;  %v4990_v39 = vpack.c.bf16 %v708_v38, %v707_v37  ;;  %v4369_v37 = vld [vmem:[%s8396_s7 + $0x240] sm:$0xff]  ;;  %v4370_v38 = vld [vmem:[%s8396_s7 + $0x248] sm:$0xff] }
 0x411   :  { %5099 = vmatprep.subr.bf16.mxu1 %v5782_v48 }
 0x414   :  { %5101 = vmatpush1.bf16.msra.mxu1 %v5100_v42  ;;  %v4993_v42 = vpack.c.bf16 %v710_v41, %v709_v40 }
 0x415   :  { %5102 = vmatprep.subr.bf16.mxu1 %v5782_v48 }
 0x418   :  { %5104 = vmatpush1.bf16.msra.mxu1 %v5103_v46  ;;  %v4996_v46 = vpack.c.bf16 %v712_v44, %v711_v43  ;;  %v5123_v43 = vpack.c.bf16 %v4370_v38, %v4369_v37  ;;  %v4414_v37 = vld [vmem:[%s8421_s2 + $0x3a0] sm:$0xff] }
 0x419   :  { %5105 = vmatprep.subr.bf16.mxu1 %v5782_v48 }
 0x41c   :  { %5107 = vmatpush1.bf16.msra.mxu1 %v5106_v51 }
 0x41d   :  { %5108 = vmatprep.subr.bf16.mxu1 %v5782_v48 }
 0x420   :  { %5110 = vmatpush1.bf16.msra.mxu1 %v5109_v58  ;;  %v4321_v58 = vld [vmem:[%s8396_s7 + $0x198] sm:$0xff] }
 0x421   :  { %5111 = vmatprep.subr.bf16.mxu1 %v5782_v48  ;;  %v5046_v59 = vpack.c.bf16 %v4321_v58, %v4320_v56  ;;  %v4374_v56 = vld [vmem:[%s8396_s7 + $0x268] sm:$0xff] }
 0x424   :  { %5113 = vmatpush1.bf16.msra.mxu1 %v5112_v63  ;;  %v5049_v63 = vpack.c.bf16 %v4323_v60, %v4322_v32  ;;  %v4403_v60 = vld [vmem:[%s8421_s2 + $0x348] sm:$0xff] }
 0x425   :  { %5115 = vmatprep.subr.bf16.mxu1 %v6379_v57 }
 0x427   :  { %1415 = vmatmul.mubr.f32.vlgmr.msra.gmra.mrb[14].mxu1 %v6415_v11 }
 0x428   :  { %5117 = vmatpush1.bf16.msra.mxu1 %v6390_v61  ;;  %1487 = vmatprep.mubr.f32.mxu1 %v5781_v3 }
 0x429   :  { %5119 = vmatprep.subr.bf16.mxu1 %v6393_v62 }
 0x42c   :  { %5121 = vmatpush1.bf16.msra.mxu1 %v6404_v1 }
 0x42d   :  { %5158 = vmatprep.subr.bf16.mxu1 %v5782_v48 }
 0x49a   :  { %v877_v4 = vpop.f32.mrb[2].mxu0 }
 0x49b   :  { %v879_v5 = vpop.f32.mrb[3].mxu0  ;;  %v882_v8 = vmul.f32 %v877_v4, %v6415_v11  ;;  %v5052_v4 = vpack.c.bf16 %v4325_v2, %v4324_v0  ;;  %v4376_v0 = vld [vmem:[%s8396_s7 + $0x278] sm:$0xff] }
 0x49c   :  { %v883_v6 = vmul.f32 %v879_v5, %v6413_v10  ;;  %v4326_v5 = vld [vmem:[%s8396_s7 + $0x1c0] sm:$0xff] }
 0x49e   :  { %4290 = vmatprep.mubr.msk.f32.mxu0 %vm107_vm0, %v883_v6  ;;  %v4327_v6 = vld [vmem:[%s8396_s7 + $0x1c8] sm:$0xff] }
 0x49f   :  { %977 = vmatmul.mubr.f32.vlgmr.msra.gmra.mrb[4].mxu0 %v882_v8  ;;  %v4328_v8 = vld [vmem:[%s8396_s7 + $0x1d0] sm:$0xff] }
 0x4a0   :  { %4964 = vmatpush1.bf16.msra.mxu0 %v4963_v7  ;;  %4291 = vmatprep.mubr.msk.f32.mxu0 %vm107_vm0, %v688_v13  ;;  %v5055_v7 = vpack.c.bf16 %v4327_v6, %v4326_v5  ;;  %v5058_v12 = vpack.c.bf16 %v4329_v9, %v4328_v8  ;;  %v4330_v13 = vld [vmem:[%s8396_s7 + $0x1e0] sm:$0xff]  ;;  %v4405_v6 = vld [vmem:[%s8421_s2 + $0x358] sm:$0xff]  ;;  %v4378_v8 = vld [vmem:[%s8396_s7 + $0x288] sm:$0xff] }
 0x4a1   :  { %4965 = vmatprep.subr.bf16.mxu0 %v5782_v48 }
 0x4a4   :  { %4967 = vmatpush1.bf16.msra.mxu0 %v4966_v14  ;;  %v4331_v14 = vld [vmem:[%s8396_s7 + $0x1e8] sm:$0xff] }
 0x4a5   :  { %4968 = vmatprep.subr.bf16.mxu0 %v5782_v48  ;;  %v5061_v15 = vpack.c.bf16 %v4331_v14, %v4330_v13  ;;  %v4407_v14 = vld [vmem:[%s8421_s2 + $0x368] sm:$0xff] }
 0x4a8   :  { %4970 = vmatpush1.bf16.msra.mxu0 %v4969_v17  ;;  %v4333_v17 = vld [vmem:[%s8396_s7 + $0x1f8] sm:$0xff] }
 0x4a9   :  { %4971 = vmatprep.subr.bf16.mxu0 %v5782_v48  ;;  %v5064_v33 = vpack.c.bf16 %v4333_v17, %v4332_v16  ;;  %v4380_v16 = vld [vmem:[%s8396_s7 + $0x298] sm:$0xff] }
 0x4ac   :  { %4973 = vmatpush1.bf16.msra.mxu0 %v4972_v19  ;;  %v4335_v19 = vld [vmem:[%s8396_s7 + $0x208] sm:$0xff] }
 0x4ad   :  { %4974 = vmatprep.subr.bf16.mxu0 %v5782_v48  ;;  %v5067_v20 = vpack.c.bf16 %v4335_v19, %v4334_v18  ;;  %v4409_v19 = vld [vmem:[%s8421_s2 + $0x378] sm:$0xff] }
 0x4b0   :  { %4976 = vmatpush1.bf16.msra.mxu0 %v4975_v22  ;;  %v4337_v22 = vld [vmem:[%s8396_s7 + $0x218] sm:$0xff] }
 0x4b1   :  { %4977 = vmatprep.subr.bf16.mxu0 %v5782_v48  ;;  %v5070_v23 = vpack.c.bf16 %v4337_v22, %v4336_v21  ;;  %v4382_v21 = vld [vmem:[%s8396_s7 + $0x2a8] sm:$0xff] }
 0x4b4   :  { %4979 = vmatpush1.bf16.msra.mxu0 %v4978_v25  ;;  %v4339_v25 = vld [vmem:[%s8396_s7 + $0x228] sm:$0xff] }
 0x4b5   :  { %4980 = vmatprep.subr.bf16.mxu0 %v5782_v48  ;;  %v5073_v26 = vpack.c.bf16 %v4339_v25, %v4338_v24  ;;  %v4411_v25 = vld [vmem:[%s8421_s2 + $0x388] sm:$0xff] }
 0x4b8   :  { %4982 = vmatpush1.bf16.msra.mxu0 %v4981_v28  ;;  %v4395_v28 = vld [vmem:[%s8421_s2 + $0x308] sm:$0xff] }
 0x4b9   :  { %4983 = vmatprep.subr.bf16.mxu0 %v5782_v48 }
 0x4bc   :  { %4985 = vmatpush1.bf16.msra.mxu0 %v4984_v31  ;;  %v5159_v31 = vpack.c.bf16 %v4395_v28, %v4394_v27  ;;  %v4384_v27 = vld [vmem:[%s8396_s7 + $0x2b8] sm:$0xff] }
 0x4bd   :  { %4986 = vmatprep.subr.bf16.mxu0 %v5782_v48 }
 0x4c0   :  { %4988 = vmatpush1.bf16.msra.mxu0 %v4987_v36  ;;  %v4397_v36 = vld [vmem:[%s8421_s2 + $0x318] sm:$0xff] }
 0x4c1   :  { %4989 = vmatprep.subr.bf16.mxu0 %v5782_v48  ;;  %v5162_v41 = vpack.c.bf16 %v4397_v36, %v4396_v35  ;;  %v4386_v35 = vld [vmem:[%s8396_s7 + $0x2c8] sm:$0xff] }
 0x4c4   :  { %4991 = vmatpush1.bf16.msra.mxu0 %v4990_v39 }
 0x4c5   :  { %4992 = vmatprep.subr.bf16.mxu0 %v5782_v48 }
 0x4c8   :  { %4994 = vmatpush1.bf16.msra.mxu0 %v4993_v42  ;;  %v4398_v42 = vld [vmem:[%s8421_s2 + $0x320] sm:$0xff] }
 0x4c9   :  { %4995 = vmatprep.subr.bf16.mxu0 %v5782_v48 }
 0x4ca   :  { %v6882_v51 = vpop.f32.mrb[12].mxu1 }
 0x4cb   :  { %v1221_v52 = vpop.f32.mrb[13].mxu1  ;;  %v1224_v44 = vmul.f32 %v6882_v51, %v6415_v11 }
 0x4cc   :  { %4997 = vmatpush1.bf16.msra.mxu0 %v4996_v46  ;;  %v1225_v53 = vmul.f32 %v1221_v52, %v6413_v10  ;;  %v4399_v46 = vld [vmem:[%s8421_s2 + $0x328] sm:$0xff]  ;;  %v4400_v52 = vld [vmem:[%s8421_s2 + $0x330] sm:$0xff] }
 0x4cd   :  { %5042 = vmatprep.subr.bf16.mxu0 %v5782_v48  ;;  %v5165_v51 = vpack.c.bf16 %v4399_v46, %v4398_v42  ;;  %v4417_v46 = vld [vmem:[%s8421_s2 + $0x3b8] sm:$0xff] }
 0x4cf   :  { %1050 = vmatmul.mubr.f32.vlgmr.msra.gmra.mrb[4].mxu0 %v687_v55  ;;  %v4373_v55 = vld [vmem:[%s8396_s7 + $0x260] sm:$0xff] }
 0x4d0   :  { %5044 = vmatpush1.bf16.msra.mxu0 %v5043_v54  ;;  %4342 = vmatprep.mubr.msk.f32.mxu0 %vm107_vm0, %v1225_v53  ;;  %v5126_v53 = vpack.c.bf16 %v4372_v50, %v4371_v49  ;;  %v4401_v54 = vld [vmem:[%s8421_s2 + $0x338] sm:$0xff]  ;;  %v5129_v32 = vpack.c.bf16 %v4374_v56, %v4373_v55  ;;  %v4389_v49 = vld [vmem:[%s8396_s7 + $0x2e0] sm:$0xff]  ;;  %v4390_v50 = vld [vmem:[%s8396_s7 + $0x2e8] sm:$0xff] }
 0x4d1   :  { %5045 = vmatprep.subr.bf16.mxu0 %v5782_v48  ;;  %v5168_v58 = vpack.c.bf16 %v4401_v54, %v4400_v52  ;;  %v5153_v52 = vpack.c.bf16 %v4390_v50, %v4389_v49  ;;  %v4392_v54 = vld [vmem:[%s8396_s7 + $0x2f8] sm:$0xff]  ;;  %v4420_v56 = vld [vmem:[%s8396_s7 + $0x300] sm:$0xff]  ;;  %v4451_v50 = vld [vmem:[%s8421_s2 + $0x3f0] sm:$0xff] }
 0x4d4   :  { %5047 = vmatpush1.bf16.msra.mxu0 %v5046_v59  ;;  %v4402_v59 = vld [vmem:[%s8421_s2 + $0x340] sm:$0xff] }
 0x4d5   :  { %5048 = vmatprep.subr.bf16.mxu0 %v5782_v48  ;;  %v5171_v2 = vpack.c.bf16 %v4403_v60, %v4402_v59 }
 0x4d8   :  { %5050 = vmatpush1.bf16.msra.mxu0 %v5049_v63  ;;  %v4375_v63 = vld [vmem:[%s8396_s7 + $0x270] sm:$0xff] }
 0x4d9   :  { %5051 = vmatprep.subr.bf16.mxu0 %v5782_v48  ;;  %v5132_v5 = vpack.c.bf16 %v4376_v0, %v4375_v63 }
 0x4dc   :  { %5053 = vmatpush1.bf16.msra.mxu0 %v5052_v4  ;;  %v4404_v4 = vld [vmem:[%s8421_s2 + $0x350] sm:$0xff] }
 0x4dd   :  { %5054 = vmatprep.subr.bf16.mxu0 %v5782_v48  ;;  %v5174_v9 = vpack.c.bf16 %v4405_v6, %v4404_v4  ;;  %v4423_v4 = vld [vmem:[%s8396_s7 + $0x318] sm:$0xff]  ;;  %v4424_v6 = vld [vmem:[%s8396_s7 + $0x320] sm:$0xff] }
 0x4e0   :  { %5056 = vmatpush1.bf16.msra.mxu0 %v5055_v7  ;;  %v4377_v7 = vld [vmem:[%s8396_s7 + $0x280] sm:$0xff] }
 0x4e1   :  { %5057 = vmatprep.subr.bf16.mxu0 %v5782_v48  ;;  %v5135_v13 = vpack.c.bf16 %v4378_v8, %v4377_v7  ;;  %v4425_v7 = vld [vmem:[%s8396_s7 + $0x328] sm:$0xff] }
 0x4e2   :  { %v5209_v8 = vpack.c.bf16 %v4425_v7, %v4424_v6  ;;  %v4462_v6 = vld [vmem:[%s8421_s2 + $0x448] sm:$0xff] }
 0x4e4   :  { %5059 = vmatpush1.bf16.msra.mxu0 %v5058_v12  ;;  %v4406_v12 = vld [vmem:[%s8421_s2 + $0x360] sm:$0xff] }
 0x4e5   :  { %5060 = vmatprep.subr.bf16.mxu0 %v5782_v48  ;;  %v5177_v17 = vpack.c.bf16 %v4407_v14, %v4406_v12  ;;  %v4427_v12 = vld [vmem:[%s8396_s7 + $0x338] sm:$0xff]  ;;  %v4428_v14 = vld [vmem:[%s8396_s7 + $0x340] sm:$0xff] }
 0x4e8   :  { %5062 = vmatpush1.bf16.msra.mxu0 %v5061_v15  ;;  %v4379_v15 = vld [vmem:[%s8396_s7 + $0x290] sm:$0xff] }
 0x4e9   :  { %5063 = vmatprep.subr.bf16.mxu0 %v5782_v48  ;;  %v5138_v18 = vpack.c.bf16 %v4380_v16, %v4379_v15  ;;  %v4429_v15 = vld [vmem:[%s8396_s7 + $0x348] sm:$0xff] }
 0x4ea   :  { %v5215_v16 = vpack.c.bf16 %v4429_v15, %v4428_v14  ;;  %v4466_v14 = vld [vmem:[%s8421_s2 + $0x468] sm:$0xff] }
 0x4ec   :  { %5065 = vmatpush1.bf16.msra.mxu0 %v5064_v33  ;;  %v4408_v33 = vld [vmem:[%s8421_s2 + $0x370] sm:$0xff] }
 0x4ed   :  { %5066 = vmatprep.subr.bf16.mxu0 %v5782_v48  ;;  %v5180_v22 = vpack.c.bf16 %v4409_v19, %v4408_v33  ;;  %v4431_v33 = vld [vmem:[%s8396_s7 + $0x358] sm:$0xff]  ;;  %v4432_v19 = vld [vmem:[%s8396_s7 + $0x360] sm:$0xff] }
 0x4f0   :  { %5068 = vmatpush1.bf16.msra.mxu0 %v5067_v20  ;;  %v4381_v20 = vld [vmem:[%s8396_s7 + $0x2a0] sm:$0xff] }
 0x4f1   :  { %5069 = vmatprep.subr.bf16.mxu0 %v5782_v48  ;;  %v5141_v24 = vpack.c.bf16 %v4382_v21, %v4381_v20  ;;  %v4433_v20 = vld [vmem:[%s8396_s7 + $0x368] sm:$0xff] }
 0x4f2   :  { %v5221_v21 = vpack.c.bf16 %v4433_v20, %v4432_v19 }
 0x4f4   :  { %5071 = vmatpush1.bf16.msra.mxu0 %v5070_v23  ;;  %v4410_v23 = vld [vmem:[%s8421_s2 + $0x380] sm:$0xff] }
 0x4f5   :  { %5072 = vmatprep.subr.bf16.mxu0 %v5782_v48  ;;  %v5183_v28 = vpack.c.bf16 %v4411_v25, %v4410_v23  ;;  %v4435_v23 = vld [vmem:[%s8396_s7 + $0x378] sm:$0xff]  ;;  %v4436_v25 = vld [vmem:[%s8396_s7 + $0x380] sm:$0xff] }
 0x4f8   :  { %5074 = vmatpush1.bf16.msra.mxu0 %v5073_v26  ;;  %v4383_v26 = vld [vmem:[%s8396_s7 + $0x2b0] sm:$0xff] }
 0x4f9   :  { %5075 = vmatprep.subr.bf16.mxu0 %v5782_v48  ;;  %v5144_v30 = vpack.c.bf16 %v4384_v27, %v4383_v26  ;;  %v4437_v26 = vld [vmem:[%s8396_s7 + $0x388] sm:$0xff] }
 0x4fa   :  { %v1416_v39 = vpop.f32.mrb[14].mxu1  ;;  %v5227_v27 = vpack.c.bf16 %v4437_v26, %v4436_v25  ;;  %v4474_v25 = vld [vmem:[%s8396_s7 + $0x3d8] sm:$0xff] }
 0x4fb   :  { %v1418_v40 = vpop.f32.mrb[15].mxu1  ;;  %4368 = vmatmul.mubr.msk.f32.vlgmr.msra.gmra.mrb[16].mxu1 %vm612_vm2, %v1416_v39  ;;  %v4415_v39 = vld [vmem:[%s8421_s2 + $0x3a8] sm:$0xff] }
 0x4fc   :  { %5160 = vmatpush1.bf16.msra.mxu1 %v5159_v31  ;;  %5077 = vmatpush1.bf16.msra.mxu0 %v5076_v34  ;;  %v4413_v31 = vld [vmem:[%s8421_s2 + $0x398] sm:$0xff]  ;;  %v4385_v34 = vld [vmem:[%s8396_s7 + $0x2c0] sm:$0xff]  ;;  %v4387_v40 = vld [vmem:[%s8396_s7 + $0x2d0] sm:$0xff]  ;;  %v5189_v42 = vpack.c.bf16 %v4415_v39, %v4414_v37 }
 0x4fd   :  { %4418 = vmatprep.mubr.msk.f32.mxu1 %vm107_vm0, %v6413_v10  ;;  %5161 = vmatprep.subr.bf16.mxu1 %v5782_v48  ;;  %v5186_v36 = vpack.c.bf16 %v4413_v31, %v4412_v29  ;;  %v5147_v38 = vpack.c.bf16 %v4386_v35, %v4385_v34  ;;  %v4439_v29 = vld [vmem:[%s8396_s7 + $0x398] sm:$0xff]  ;;  %v4440_v31 = vld [vmem:[%s8396_s7 + $0x3a0] sm:$0xff]  ;;  %v4441_v34 = vld [vmem:[%s8396_s7 + $0x3a8] sm:$0xff] }
 0x4fe   :  { %5122 = vmatprep.subr.bf16.mxu0 %v5782_v48  ;;  %v5233_v35 = vpack.c.bf16 %v4441_v34, %v4440_v31  ;;  %v4446_v37 = vld [vmem:[%s8421_s2 + $0x3c8] sm:$0xff]  ;;  %v4447_v39 = vld [vmem:[%s8421_s2 + $0x3d0] sm:$0xff]  ;;  %v4478_v31 = vld [vmem:[%s8396_s7 + $0x3f8] sm:$0xff] }
 0x4ff   :  { %1319 = vmatmul.mubr.f32.vlgmr.msra.gmra.mrb[4].mxu0 %v1224_v44 }
 0x500   :  { %5163 = vmatpush1.bf16.msra.mxu1 %v5162_v41  ;;  %5124 = vmatpush1.bf16.msra.mxu0 %v5123_v43  ;;  %v4388_v41 = vld [vmem:[%s8396_s7 + $0x2d8] sm:$0xff]  ;;  %v4416_v43 = vld [vmem:[%s8421_s2 + $0x3b0] sm:$0xff] }
 0x501   :  { %5164 = vmatprep.subr.bf16.mxu1 %v5782_v48  ;;  %5125 = vmatprep.subr.bf16.mxu0 %v5782_v48  ;;  %v5150_v44 = vpack.c.bf16 %v4388_v41, %v4387_v40  ;;  %v4448_v40 = vld [vmem:[%s8421_s2 + $0x3d8] sm:$0xff] }
 0x504   :  { %5166 = vmatpush1.bf16.msra.mxu1 %v5165_v51  ;;  %5127 = vmatpush1.bf16.msra.mxu0 %v5126_v53  ;;  %v5192_v51 = vpack.c.bf16 %v4417_v46, %v4416_v43  ;;  %v4391_v53 = vld [vmem:[%s8396_s7 + $0x2f0] sm:$0xff]  ;;  %v5242_v43 = vpack.c.bf16 %v4448_v40, %v4447_v39  ;;  %v4450_v46 = vld [vmem:[%s8421_s2 + $0x3e8] sm:$0xff]  ;;  %v4482_v39 = vld [vmem:[%s8396_s7 + $0x418] sm:$0xff] }
 0x505   :  { %5167 = vmatprep.subr.bf16.mxu1 %v5782_v48  ;;  %5128 = vmatprep.subr.bf16.mxu0 %v5782_v48  ;;  %v5156_v55 = vpack.c.bf16 %v4392_v54, %v4391_v53  ;;  %v4453_v53 = vld [vmem:[%s8421_s2 + $0x400] sm:$0xff]  ;;  %v4454_v54 = vld [vmem:[%s8421_s2 + $0x408] sm:$0xff] }
 0x508   :  { %5169 = vmatpush1.bf16.msra.mxu1 %v5168_v58  ;;  %5130 = vmatpush1.bf16.msra.mxu0 %v5129_v32  ;;  %v4421_v58 = vld [vmem:[%s8396_s7 + $0x308] sm:$0xff] }
 0x509   :  { %5170 = vmatprep.subr.bf16.mxu1 %v5782_v48  ;;  %5131 = vmatprep.subr.bf16.mxu0 %v5782_v48  ;;  %v5203_v63 = vpack.c.bf16 %v4421_v58, %v4420_v56  ;;  %v4455_v56 = vld [vmem:[%s8421_s2 + $0x410] sm:$0xff]  ;;  %v4456_v58 = vld [vmem:[%s8421_s2 + $0x418] sm:$0xff] }
 0x50c   :  { %5172 = vmatpush1.bf16.msra.mxu1 %v5171_v2  ;;  %5133 = vmatpush1.bf16.msra.mxu0 %v5132_v5  ;;  %v4422_v2 = vld [vmem:[%s8396_s7 + $0x310] sm:$0xff] }
 0x50d   :  { %5173 = vmatprep.subr.bf16.mxu1 %v5782_v48  ;;  %5134 = vmatprep.subr.bf16.mxu0 %v5782_v48  ;;  %v5206_v5 = vpack.c.bf16 %v4423_v4, %v4422_v2  ;;  %v4460_v2 = vld [vmem:[%s8421_s2 + $0x438] sm:$0xff] }
 0x510   :  { %5175 = vmatpush1.bf16.msra.mxu1 %v5174_v9  ;;  %5136 = vmatpush1.bf16.msra.mxu0 %v5135_v13  ;;  %v4426_v9 = vld [vmem:[%s8396_s7 + $0x330] sm:$0xff] }
 0x511   :  { %5176 = vmatprep.subr.bf16.mxu1 %v5782_v48  ;;  %5137 = vmatprep.subr.bf16.mxu0 %v5782_v48  ;;  %v5212_v13 = vpack.c.bf16 %v4427_v12, %v4426_v9  ;;  %v4464_v9 = vld [vmem:[%s8421_s2 + $0x458] sm:$0xff] }
 0x514   :  { %5178 = vmatpush1.bf16.msra.mxu1 %v5177_v17  ;;  %5139 = vmatpush1.bf16.msra.mxu0 %v5138_v18  ;;  %v4430_v17 = vld [vmem:[%s8396_s7 + $0x350] sm:$0xff] }
 0x515   :  { %5179 = vmatprep.subr.bf16.mxu1 %v5782_v48  ;;  %5140 = vmatprep.subr.bf16.mxu0 %v5782_v48  ;;  %v5218_v18 = vpack.c.bf16 %v4431_v33, %v4430_v17  ;;  %v4468_v17 = vld [vmem:[%s8421_s2 + $0x478] sm:$0xff] }
 0x518   :  { %5181 = vmatpush1.bf16.msra.mxu1 %v5180_v22  ;;  %5142 = vmatpush1.bf16.msra.mxu0 %v5141_v24  ;;  %v4434_v22 = vld [vmem:[%s8396_s7 + $0x370] sm:$0xff] }
 0x519   :  { %5182 = vmatprep.subr.bf16.mxu1 %v5782_v48  ;;  %5143 = vmatprep.subr.bf16.mxu0 %v5782_v48  ;;  %v5224_v24 = vpack.c.bf16 %v4435_v23, %v4434_v22 }
 0x51c   :  { %5184 = vmatpush1.bf16.msra.mxu1 %v5183_v28  ;;  %5145 = vmatpush1.bf16.msra.mxu0 %v5144_v30  ;;  %v4438_v28 = vld [vmem:[%s8396_s7 + $0x390] sm:$0xff] }
 0x51d   :  { %5185 = vmatprep.subr.bf16.mxu1 %v5782_v48  ;;  %5146 = vmatprep.subr.bf16.mxu0 %v5782_v48  ;;  %v5230_v30 = vpack.c.bf16 %v4439_v29, %v4438_v28  ;;  %v4476_v28 = vld [vmem:[%s8396_s7 + $0x3e8] sm:$0xff] }
 0x520   :  { %5187 = vmatpush1.bf16.msra.mxu1 %v5186_v36  ;;  %5148 = vmatpush1.bf16.msra.mxu0 %v5147_v38  ;;  %v4445_v36 = vld [vmem:[%s8421_s2 + $0x3c0] sm:$0xff] }
 0x521   :  { %5188 = vmatprep.subr.bf16.mxu1 %v5782_v48  ;;  %5149 = vmatprep.subr.bf16.mxu0 %v5782_v48  ;;  %v5239_v38 = vpack.c.bf16 %v4446_v37, %v4445_v36  ;;  %v4480_v36 = vld [vmem:[%s8396_s7 + $0x408] sm:$0xff] }
 0x524   :  { %5190 = vmatpush1.bf16.msra.mxu1 %v5189_v42  ;;  %5151 = vmatpush1.bf16.msra.mxu0 %v5150_v44  ;;  %v4449_v44 = vld [vmem:[%s8421_s2 + $0x3e0] sm:$0xff] }
 0x525   :  { %5191 = vmatprep.subr.bf16.mxu1 %v5782_v48  ;;  %5152 = vmatprep.subr.bf16.mxu0 %v5782_v48  ;;  %v5245_v49 = vpack.c.bf16 %v4450_v46, %v4449_v44  ;;  %v4485_v44 = vld [vmem:[%s8396_s7 + $0x430] sm:$0xff]  ;;  %v4486_v46 = vld [vmem:[%s8396_s7 + $0x438] sm:$0xff] }
 0x528   :  { %5193 = vmatpush1.bf16.msra.mxu1 %v5192_v51  ;;  %5154 = vmatpush1.bf16.msra.mxu0 %v5153_v52  ;;  %v4452_v51 = vld [vmem:[%s8421_s2 + $0x3f8] sm:$0xff] }
 0x529   :  { %5155 = vmatprep.subr.bf16.mxu0 %v5782_v48  ;;  %5195 = vmatprep.subr.bf16.mxu1 %v6379_v57  ;;  %v5248_v52 = vpack.c.bf16 %v4452_v51, %v4451_v50  ;;  %v4487_v50 = vld [vmem:[%s8396_s7 + $0x440] sm:$0xff]  ;;  %v4488_v51 = vld [vmem:[%s8396_s7 + $0x448] sm:$0xff] }
 0x52b   :  { %1685 = vmatmul.mubr.f32.vlgmr.msra.gmra.mrb[18].mxu1 %v6415_v11 }
 0x52c   :  { %5197 = vmatpush1.bf16.msra.mxu1 %v6390_v61  ;;  %1757 = vmatprep.mubr.f32.mxu1 %v5781_v3 }
 0x52d   :  { %5199 = vmatprep.subr.bf16.mxu1 %v6393_v62  ;;  %5157 = vmatpush1.bf16.msra.mxu0 %v5156_v55  ;;  %v5251_v55 = vpack.c.bf16 %v4454_v54, %v4453_v53  ;;  %v4489_v53 = vld [vmem:[%s8396_s7 + $0x450] sm:$0xff]  ;;  %v4490_v54 = vld [vmem:[%s8396_s7 + $0x458] sm:$0xff] }
 0x52e   :  { %5202 = vmatprep.subr.bf16.mxu0 %v5782_v48 }
 0x530   :  { %5201 = vmatpush1.bf16.msra.mxu1 %v6404_v1 }
 0x531   :  { %5238 = vmatprep.subr.bf16.mxu1 %v5782_v48 }
 0x5ce   :  { %v1489_v59 = vpop.f32.mrb[16].mxu1 }
 0x5cf   :  { %v1491_v32 = vpop.f32.mrb[17].mxu1  ;;  %v1494_v0 = vmul.f32 %v1489_v59, %v6415_v11  ;;  %v5254_v59 = vpack.c.bf16 %v4456_v58, %v4455_v56  ;;  %v4491_v56 = vld [vmem:[%s8396_s7 + $0x460] sm:$0xff]  ;;  %v4492_v58 = vld [vmem:[%s8396_s7 + $0x468] sm:$0xff] }
 0x5d0   :  { %v1495_v60 = vmul.f32 %v1491_v32, %v6413_v10  ;;  %v4457_v32 = vld [vmem:[%s8421_s2 + $0x420] sm:$0xff] }
 0x5d2   :  { %4393 = vmatprep.mubr.msk.f32.mxu0 %vm107_vm0, %v1495_v60  ;;  %v4458_v60 = vld [vmem:[%s8421_s2 + $0x428] sm:$0xff] }
 0x5d3   :  { %1589 = vmatmul.mubr.f32.vlgmr.msra.gmra.mrb[4].mxu0 %v1494_v0  ;;  %v4459_v0 = vld [vmem:[%s8421_s2 + $0x430] sm:$0xff] }
 0x5d4   :  { %5204 = vmatpush1.bf16.msra.mxu0 %v5203_v63  ;;  %v5257_v63 = vpack.c.bf16 %v4458_v60, %v4457_v32  ;;  %v5260_v4 = vpack.c.bf16 %v4460_v2, %v4459_v0  ;;  %v4494_v0 = vld [vmem:[%s8396_s7 + $0x478] sm:$0xff] }
 0x5d5   :  { %5205 = vmatprep.subr.bf16.mxu0 %v5782_v48 }
 0x5d8   :  { %5207 = vmatpush1.bf16.msra.mxu0 %v5206_v5  ;;  %v4461_v5 = vld [vmem:[%s8421_s2 + $0x440] sm:$0xff] }
 0x5d9   :  { %5208 = vmatprep.subr.bf16.mxu0 %v5782_v48  ;;  %v5263_v7 = vpack.c.bf16 %v4462_v6, %v4461_v5 }
 0x5dc   :  { %5210 = vmatpush1.bf16.msra.mxu0 %v5209_v8  ;;  %v4463_v8 = vld [vmem:[%s8421_s2 + $0x450] sm:$0xff] }
 0x5dd   :  { %5211 = vmatprep.subr.bf16.mxu0 %v5782_v48  ;;  %v5266_v12 = vpack.c.bf16 %v4464_v9, %v4463_v8 }
 0x5e0   :  { %5213 = vmatpush1.bf16.msra.mxu0 %v5212_v13  ;;  %v4465_v13 = vld [vmem:[%s8421_s2 + $0x460] sm:$0xff] }
 0x5e1   :  { %5214 = vmatprep.subr.bf16.mxu0 %v5782_v48  ;;  %v5269_v15 = vpack.c.bf16 %v4466_v14, %v4465_v13  ;;  %v2142_v13 = vld [vmem:[%s8397_s8] sm:$0xff]  ;;  %v2143_v14 = vld [vmem:[%s8397_s8 + $0x8] sm:$0xff] }
 0x5e4   :  { %5216 = vmatpush1.bf16.msra.mxu0 %v5215_v16  ;;  %v4467_v16 = vld [vmem:[%s8421_s2 + $0x470] sm:$0xff] }
 0x5e5   :  { %5217 = vmatprep.subr.bf16.mxu0 %v5782_v48  ;;  %v5272_v33 = vpack.c.bf16 %v4468_v17, %v4467_v16  ;;  %v2144_v16 = vld [vmem:[%s8397_s8 + $0x10] sm:$0xff]  ;;  %v2145_v17 = vld [vmem:[%s8397_s8 + $0x18] sm:$0xff] }
 0x5e8   :  { %5219 = vmatpush1.bf16.msra.mxu0 %v5218_v18  ;;  %v4442_v18 = vld [vmem:[%s8396_s7 + $0x3b0] sm:$0xff] }
 0x5e9   :  { %5220 = vmatprep.subr.bf16.mxu0 %v5782_v48 }
 0x5ec   :  { %5222 = vmatpush1.bf16.msra.mxu0 %v5221_v21 }
 0x5ed   :  { %5223 = vmatprep.subr.bf16.mxu0 %v5782_v48 }
 0x5f0   :  { %5225 = vmatpush1.bf16.msra.mxu0 %v5224_v24  ;;  %v4473_v24 = vld [vmem:[%s8396_s7 + $0x3d0] sm:$0xff] }
 0x5f1   :  { %5226 = vmatprep.subr.bf16.mxu0 %v5782_v48  ;;  %v5286_v26 = vpack.c.bf16 %v4474_v25, %v4473_v24  ;;  %v4507_v24 = vld [vmem:[%s8399_s10 + $0x68] sm:$0xff]  ;;  %v2305_v25 = vld [vmem:[%s8399_s10] sm:$0xff] }
 0x5f4   :  { %5228 = vmatpush1.bf16.msra.mxu0 %v5227_v27  ;;  %v4475_v27 = vld [vmem:[%s8396_s7 + $0x3e0] sm:$0xff] }
 0x5f5   :  { %5229 = vmatprep.subr.bf16.mxu0 %v5782_v48  ;;  %v5289_v29 = vpack.c.bf16 %v4476_v28, %v4475_v27 }
 0x5f8   :  { %5231 = vmatpush1.bf16.msra.mxu0 %v5230_v30  ;;  %v4477_v30 = vld [vmem:[%s8396_s7 + $0x3f0] sm:$0xff] }
 0x5f9   :  { %5232 = vmatprep.subr.bf16.mxu0 %v5782_v48  ;;  %v5292_v34 = vpack.c.bf16 %v4478_v31, %v4477_v30  ;;  %v2312_v30 = vld [vmem:[%s8399_s10 + $0x38] sm:$0xff] }
 0x5fc   :  { %5234 = vmatpush1.bf16.msra.mxu0 %v5233_v35  ;;  %v4479_v35 = vld [vmem:[%s8396_s7 + $0x400] sm:$0xff] }
 0x5fd   :  { %5235 = vmatprep.subr.bf16.mxu0 %v5782_v48  ;;  %v5295_v37 = vpack.c.bf16 %v4480_v36, %v4479_v35  ;;  %v2311_v35 = vld [vmem:[%s8399_s10 + $0x30] sm:$0xff] }
 0x5fe   :  { %v1686_v41 = vpop.f32.mrb[18].mxu1 }
 0x5ff   :  { %v1688_v42 = vpop.f32.mrb[19].mxu1  ;;  %4419 = vmatmul.mubr.msk.f32.vlgmr.msra.gmra.mrb[20].mxu1 %vm612_vm2, %v1686_v41  ;;  %v4483_v41 = vld [vmem:[%s8396_s7 + $0x420] sm:$0xff] }
 0x600   :  { %5240 = vmatpush1.bf16.msra.mxu1 %v5239_v38  ;;  %4469 = vmatprep.mubr.msk.f32.mxu1 %vm107_vm0, %v6413_v10  ;;  %v4481_v38 = vld [vmem:[%s8396_s7 + $0x410] sm:$0xff]  ;;  %v4484_v42 = vld [vmem:[%s8396_s7 + $0x428] sm:$0xff] }
 0x601   :  { %5241 = vmatprep.subr.bf16.mxu1 %v5782_v48  ;;  %v5298_v40 = vpack.c.bf16 %v4482_v39, %v4481_v38  ;;  %v4504_v39 = vld [vmem:[%s8399_s10 + $0x50] sm:$0xff] }
 0x604   :  { %5243 = vmatpush1.bf16.msra.mxu1 %v5242_v43  ;;  %v5301_v43 = vpack.c.bf16 %v4484_v42, %v4483_v41  ;;  %v4509_v41 = vld [vmem:[%s8399_s10 + $0x78] sm:$0xff]  ;;  %v4511_v42 = vld [vmem:[%s8399_s10 + $0x88] sm:$0xff] }
 0x605   :  { %5244 = vmatprep.subr.bf16.mxu1 %v5782_v48 }
 0x608   :  { %5246 = vmatpush1.bf16.msra.mxu1 %v5245_v49  ;;  %v5304_v49 = vpack.c.bf16 %v4486_v46, %v4485_v44  ;;  %v5372_v44 = vpack.c.bf16 %v4511_v42, %v4509_v41  ;;  %v4508_v46 = vld [vmem:[%s8399_s10 + $0x70] sm:$0xff]  ;;  %v4552_v41 = vld [vmem:[%s8399_s10 + $0xf8] sm:$0xff]  ;;  %v4554_v42 = vld [vmem:[%s8399_s10 + $0x108] sm:$0xff] }
 0x609   :  { %5247 = vmatprep.subr.bf16.mxu1 %v5782_v48 }
 0x60c   :  { %5249 = vmatpush1.bf16.msra.mxu1 %v5248_v52  ;;  %v5307_v52 = vpack.c.bf16 %v4488_v51, %v4487_v50 }
 0x60d   :  { %5250 = vmatprep.subr.bf16.mxu1 %v5782_v48 }
 0x610   :  { %5252 = vmatpush1.bf16.msra.mxu1 %v5251_v55  ;;  %v5310_v55 = vpack.c.bf16 %v4490_v54, %v4489_v53  ;;  %v4513_v53 = vld [vmem:[%s8399_s10 + $0x98] sm:$0xf]  ;;  %v2313_v54 = vld [vmem:[%s8399_s10 + $0x40] sm:$0xf] }
 0x611   :  { %5253 = vmatprep.subr.bf16.mxu1 %v5782_v48 }
 0x614   :  { %5255 = vmatpush1.bf16.msra.mxu1 %v5254_v59  ;;  %v5313_v59 = vpack.c.bf16 %v4492_v58, %v4491_v56  ;;  %v2397_v56 = vld [vmem:[%s8400_s11] sm:$0xff]  ;;  %v2398_v58 = vld [vmem:[%s8400_s11 + $0x8] sm:$0xff] }
 0x615   :  { %5256 = vmatprep.subr.bf16.mxu1 %v5782_v48 }
 0x618   :  { %5258 = vmatpush1.bf16.msra.mxu1 %v5257_v63  ;;  %v4493_v63 = vld [vmem:[%s8396_s7 + $0x470] sm:$0xff] }
 0x619   :  { %5259 = vmatprep.subr.bf16.mxu1 %v5782_v48  ;;  %v5316_v2 = vpack.c.bf16 %v4494_v0, %v4493_v63  ;;  %v2399_v0 = vld [vmem:[%s8400_s11 + $0x10] sm:$0xff] }
 0x61c   :  { %5261 = vmatpush1.bf16.msra.mxu1 %v5260_v4 }
 0x61d   :  { %5262 = vmatprep.subr.bf16.mxu1 %v5782_v48 }
 0x620   :  { %5264 = vmatpush1.bf16.msra.mxu1 %v5263_v7 }
 0x621   :  { %5265 = vmatprep.subr.bf16.mxu1 %v5782_v48 }
 0x624   :  { %5267 = vmatpush1.bf16.msra.mxu1 %v5266_v12 }
 0x625   :  { %5268 = vmatprep.subr.bf16.mxu1 %v5782_v48 }
 0x628   :  { %5270 = vmatpush1.bf16.msra.mxu1 %v5269_v15  ;;  %v5319_v15 = vpack.c.bf16 %v2143_v14, %v2142_v13  ;;  %v2405_v13 = vld [vmem:[%s8400_s11 + $0x40] sm:$0xff]  ;;  %v2406_v14 = vld [vmem:[%s8400_s11 + $0x48] sm:$0xff] }
 0x629   :  { %5271 = vmatprep.subr.bf16.mxu1 %v5782_v48 }
 0x62c   :  { %5273 = vmatpush1.bf16.msra.mxu1 %v5272_v33  ;;  %v5322_v33 = vpack.c.bf16 %v2145_v17, %v2144_v16  ;;  %v2407_v16 = vld [vmem:[%s8400_s11 + $0x50] sm:$0xff]  ;;  %v2408_v17 = vld [vmem:[%s8400_s11 + $0x58] sm:$0xff] }
 0x62d   :  { %5275 = vmatprep.subr.bf16.mxu1 %v6379_v57  ;;  %v4443_v57 = vld [vmem:[%s8396_s7 + $0x3b8] sm:$0xff] }
 0x62e   :  { %v5236_v19 = vpack.c.bf16 %v4443_v57, %v4442_v18  ;;  %v2146_v18 = vld [vmem:[%s8397_s8 + $0x20] sm:$0xf] }
 0x62f   :  { %1955 = vmatmul.mubr.f32.vlgmr.msra.gmra.mrb[22].mxu1 %v6415_v11 }
 0x630   :  { %5277 = vmatpush1.bf16.msra.mxu1 %v6390_v61  ;;  %2027 = vmatprep.mubr.f32.mxu1 %v5781_v3  ;;  %v4471_v61 = vld [vmem:[%s8396_s7 + $0x3c0] sm:$0xff] }
 0x631   :  { %5279 = vmatprep.subr.bf16.mxu1 %v6393_v62  ;;  %5237 = vmatpush1.bf16.msra.mxu0 %v5236_v19  ;;  %v4472_v62 = vld [vmem:[%s8396_s7 + $0x3c8] sm:$0xff] }
 0x632   :  { %5282 = vmatprep.subr.bf16.mxu0 %v5782_v48  ;;  %v5283_v22 = vpack.c.bf16 %v4472_v62, %v4471_v61 }
 0x634   :  { %5281 = vmatpush1.bf16.msra.mxu1 %v6404_v1 }
 0x635   :  { %5318 = vmatprep.subr.bf16.mxu1 %v5782_v48 }
 0x6d2   :  { %v1759_v1 = vpop.f32.mrb[20].mxu1 }
 0x6d3   :  { %v1761_v20 = vpop.f32.mrb[21].mxu1  ;;  %v1764_v23 = vmul.f32 %v1759_v1, %v6415_v11  ;;  %v2225_v1 = vld [vmem:[%s8398_s9] sm:$0x3f] }
 0x6d4   :  { %v1765_v21 = vmul.f32 %v1761_v20, %v6413_v10  ;;  %v2306_v20 = vld [vmem:[%s8399_s10 + $0x8] sm:$0xff] }
 0x6d6   :  { %4444 = vmatprep.mubr.msk.f32.mxu0 %vm107_vm0, %v1765_v21  ;;  %v2308_v21 = vld [vmem:[%s8399_s10 + $0x18] sm:$0xff] }
 0x6d7   :  { %1859 = vmatmul.mubr.f32.vlgmr.msra.gmra.mrb[4].mxu0 %v1764_v23  ;;  %v5324_v23 = vpack.c.bf16 %v2308_v21, %v2306_v20  ;;  %v2413_v20 = vld [vmem:[%s8400_s11 + $0x80] sm:$0xff]  ;;  %v2414_v21 = vld [vmem:[%s8400_s11 + $0x88] sm:$0xff] }
 0x6d8   :  { %5284 = vmatpush1.bf16.msra.mxu0 %v5283_v22  ;;  %v4505_v22 = vld [vmem:[%s8399_s10 + $0x58] sm:$0xff] }
 0x6d9   :  { %5285 = vmatprep.subr.bf16.mxu0 %v5782_v48  ;;  %v5368_v27 = vpack.c.bf16 %v4507_v24, %v4505_v22  ;;  %v7603_v22 = vpack.c.bf16 %v2414_v21, %v2413_v20  ;;  %v2416_v24 = vld [vmem:[%s8400_s11 + $0x98] sm:$0xff]  ;;  %v4600_v21 = vld [vmem:[%s8399_s10 + $0x1a8] sm:$0xff] }
 0x6da   :  { %v4598_v20 = vld [vmem:[%s8399_s10 + $0x198] sm:$0xff] }
 0x6dc   :  { %5287 = vmatpush1.bf16.msra.mxu0 %v5286_v26  ;;  %v2307_v26 = vld [vmem:[%s8399_s10 + $0x10] sm:$0xff] }
 0x6dd   :  { %5288 = vmatprep.subr.bf16.mxu0 %v5782_v48  ;;  %v5326_v28 = vpack.c.bf16 %v2307_v26, %v2305_v25  ;;  %v2417_v26 = vld [vmem:[%s8400_s11 + $0xa0] sm:$0xff] }
 0x6e0   :  { %5290 = vmatpush1.bf16.msra.mxu0 %v5289_v29  ;;  %v2310_v29 = vld [vmem:[%s8399_s10 + $0x28] sm:$0xff] }
 0x6e1   :  { %5291 = vmatprep.subr.bf16.mxu0 %v5782_v48  ;;  %v5328_v31 = vpack.c.bf16 %v2312_v30, %v2310_v29  ;;  %v2419_v29 = vld [vmem:[%s8400_s11 + $0xb0] sm:$0xff]  ;;  %v2420_v30 = vld [vmem:[%s8400_s11 + $0xb8] sm:$0xff] }
 0x6e4   :  { %5293 = vmatpush1.bf16.msra.mxu0 %v5292_v34  ;;  %v2309_v34 = vld [vmem:[%s8399_s10 + $0x20] sm:$0xff] }
 0x6e5   :  { %5294 = vmatprep.subr.bf16.mxu0 %v5782_v48  ;;  %v5330_v36 = vpack.c.bf16 %v2311_v35, %v2309_v34 }
 0x6e8   :  { %5296 = vmatpush1.bf16.msra.mxu0 %v5295_v37 }
 0x6e9   :  { %5297 = vmatprep.subr.bf16.mxu0 %v5782_v48 }
 0x6ec   :  { %5299 = vmatpush1.bf16.msra.mxu0 %v5298_v40  ;;  %v4506_v40 = vld [vmem:[%s8399_s10 + $0x60] sm:$0xff] }
 0x6ed   :  { %5300 = vmatprep.subr.bf16.mxu0 %v5782_v48 }
 0x6f0   :  { %5302 = vmatpush1.bf16.msra.mxu0 %v5301_v43  ;;  %v5370_v43 = vpack.c.bf16 %v4506_v40, %v4504_v39 }
 0x6f1   :  { %5303 = vmatprep.subr.bf16.mxu0 %v5782_v48 }
 0x6f4   :  { %5305 = vmatpush1.bf16.msra.mxu0 %v5304_v49  ;;  %v4510_v49 = vld [vmem:[%s8399_s10 + $0x80] sm:$0xff] }
 0x6f5   :  { %5306 = vmatprep.subr.bf16.mxu0 %v5782_v48  ;;  %v5374_v51 = vpack.c.bf16 %v4510_v49, %v4508_v46  ;;  %v4553_v46 = vld [vmem:[%s8399_s10 + $0x100] sm:$0xff]  ;;  %v4556_v49 = vld [vmem:[%s8399_s10 + $0x118] sm:$0xff] }
 0x6f8   :  { %5308 = vmatpush1.bf16.msra.mxu0 %v5307_v52  ;;  %v2314_v52 = vld [vmem:[%s8399_s10 + $0x48] sm:$0xf] }
 0x6f9   :  { %5309 = vmatprep.subr.bf16.mxu0 %v5782_v48 }
 0x6fc   :  { %5311 = vmatpush1.bf16.msra.mxu0 %v5310_v55  ;;  %v4512_v55 = vld [vmem:[%s8399_s10 + $0x90] sm:$0xf] }
 0x6fd   :  { %5312 = vmatprep.subr.bf16.mxu0 %v5782_v48 }
 0x700   :  { %5314 = vmatpush1.bf16.msra.mxu0 %v5313_v59 }
 0x701   :  { %5315 = vmatprep.subr.bf16.mxu0 %v5782_v48 }
 0x702   :  { %v1956_v32 = vpop.f32.mrb[22].mxu1 }
 0x703   :  { %v1958_v60 = vpop.f32.mrb[23].mxu1  ;;  %4470 = vmatmul.mubr.msk.f32.vlgmr.msra.gmra.mrb[24].mxu1 %vm612_vm2, %v1956_v32  ;;  %v7517_v32 = vpack.c.bf16 %v2398_v58, %v2397_v56  ;;  %v4560_v58 = vld [vmem:[%s8399_s10 + $0x138] sm:$0xf] }
 0x704   :  { %4706 = vmatprep.mubr.msk.f32.mxu1 %vm5783_vm1, %v5781_v3  ;;  %5317 = vmatpush1.bf16.msra.mxu0 %v5316_v2  ;;  %v2400_v2 = vld [vmem:[%s8400_s11 + $0x18] sm:$0xff] }
 0x705   :  { %4709 = vmatprep.subr.mxu0 %v5781_v3  ;;  %5320 = vmatpush3.bf16.msra.mxu1 %v5319_v15  ;;  %v7563_v15 = vpack.c.bf16 %v2406_v14, %v2405_v13 }
 0x706   :  { %5321 = vmatprep.subr.bf16.mxu1 %v5782_v48 }
 0x709   :  { %5323 = vmatpush3.bf16.msra.mxu1 %v5322_v33  ;;  %v7573_v33 = vpack.c.bf16 %v2408_v17, %v2407_v16  ;;  %v4522_v16 = vld [vmem:[%s8401_s12 + $0x60] sm:$0xff]  ;;  %v4524_v17 = vld [vmem:[%s8401_s12 + $0x70] sm:$0xff] }
 0x70a   :  { %4704 = vmatprep.subr.mxu1 %v5781_v3 }
 0x70d   :  { %4705 = vmatpush3.msk.msra.mxu1 %vm2150_vm4, %v2146_v18  ;;  %v2409_v18 = vld [vmem:[%s8400_s11 + $0x60] sm:$0xff] }
 0x70e   :  { %5325 = vmatprep.subr.bf16.mxu1 %v5324_v23  ;;  %v2415_v23 = vld [vmem:[%s8400_s11 + $0x90] sm:$0xff] }
 0x70f   :  { %v7613_v25 = vpack.c.bf16 %v2416_v24, %v2415_v23  ;;  %v5584_v23 = vpack.c.bf16 %v4600_v21, %v4598_v20  ;;  %v4606_v20 = vld [vmem:[%s8399_s10 + $0x1d8] sm:$0xf]  ;;  %v4605_v21 = vld [vmem:[%s8399_s10 + $0x1d0] sm:$0xf] }
 0x7d6   :  { %v2029_v4 = vpop.f32.mrb[24].mxu1 }
 0x7d7   :  { %v2031_v5 = vpop.f32.mrb[25].mxu1  ;;  %v2034_v7 = vmul.f32 %v2029_v4, %v6415_v11  ;;  %v7532_v4 = vpack.c.bf16 %v2400_v2, %v2399_v0  ;;  %v4521_v0 = vld [vmem:[%s8401_s12 + $0x58] sm:$0xff]  ;;  %v4518_v2 = vld [vmem:[%s8401_s12 + $0x40] sm:$0xff] }
 0x7d8   :  { %v2035_v6 = vmul.f32 %v2031_v5, %v6413_v10  ;;  %v2401_v5 = vld [vmem:[%s8400_s11 + $0x20] sm:$0xff] }
 0x7da   :  { %4495 = vmatprep.mubr.msk.f32.mxu0 %vm107_vm0, %v2035_v6  ;;  %v2402_v6 = vld [vmem:[%s8400_s11 + $0x28] sm:$0xff] }
 0x7db   :  { %2129 = vmatmul.mubr.f32.vlgmr.msra.gmra.mrb[4].mxu0 %v2034_v7  ;;  %v7543_v7 = vpack.c.bf16 %v2402_v6, %v2401_v5  ;;  %v4520_v6 = vld [vmem:[%s8401_s12 + $0x50] sm:$0xff] }
 0x7dc   :  { %4711 = vmatprep.mubr.msk.f32.mxu0 %vm5783_vm1, %v5781_v3  ;;  %4710 = vmatpush3.msk.msra.mxu0 %vm2230_vm5, %v2225_v1  ;;  %v5414_v13 = vpack.c.bf16 %v4520_v6, %v4518_v2  ;;  %v4604_v6 = vld [vmem:[%s8399_s10 + $0x1c8] sm:$0xff] }
 0x7dd   :  { %5369 = vmatprep.subr.bf16.mxu0 %v5368_v27  ;;  %v2418_v27 = vld [vmem:[%s8400_s11 + $0xa8] sm:$0xff] }
 0x8ae   :  { %v2130_v8 = vpop.f32.mrb[4].mxu0 }
 0x8af   :  { %v2132_v9 = vpop.f32.mrb[5].mxu0  ;;  %v2136_v12 = vsel %vm2135_vm3, %v2130_v8, -inf }
 0x8b0   :  { %2137 = vmax.xlane.f32.xlu0 %v2136_v12  ;;  %v2404_v9 = vld [vmem:[%s8400_s11 + $0x38] sm:$0xff] }
 0x93d   :  { %v2138_v57 = vpop.xlane.xlu0 %2137 }
 0x93e   :  { %v2139_v19 = vsub.f32 %v2130_v8, %v2138_v57  ;;  %v2403_v8 = vld [vmem:[%s8400_s11 + $0x30] sm:$0xff]  ;;  %v2410_v57 = vld [vmem:[%s8400_s11 + $0x68] sm:$0xff] }
 0x93f   :  { %v7553_v12 = vpack.c.bf16 %v2404_v9, %v2403_v8  ;;  %v4523_v8 = vld [vmem:[%s8401_s12 + $0x68] sm:$0xff]  ;;  %v4525_v9 = vld [vmem:[%s8401_s12 + $0x78] sm:$0xff] }
 0x940   :  { %v2140_v61 = vmul.f32 1.442695, %v2139_v19  ;;  %v7583_v19 = vpack.c.bf16 %v2410_v57, %v2409_v18  ;;  %v5416_v14 = vpack.c.bf16 %v4525_v9, %v4523_v8  ;;  %v5418_v18 = vpack.c.bf16 %v4524_v17, %v4522_v16  ;;  %v2495_v57 = vld [vmem:[%s8401_s12 + $0x8] sm:$0xff] }
 0x942   :  { %5775 = vpow2.f32 %v2140_v61  ;;  %v2411_v61 = vld [vmem:[%s8400_s11 + $0x70] sm:$0xff] }
 0x94c   :  { %v5776_v62 = vpop.eup %5775 }
 0x94d   :  { %4707 = vmatmul.mubr.msk.f32.vlgmr.msra.gmra.mrb[26].mxu1 %vm2135_vm3, %v5776_v62 }
 0x94e   :  { %2388 = vmatprep.mubr.f32.mxu1 %v5781_v3  ;;  %5327 = vmatpush1.bf16.msra.mxu1 %v5326_v28  ;;  %v7623_v28 = vpack.c.bf16 %v2418_v27, %v2417_v26  ;;  %v2494_v27 = vld [vmem:[%s8401_s12] sm:$0xff] }
 0x94f   :  { %5329 = vmatprep.subr.bf16.mxu1 %v5328_v31  ;;  %v7634_v31 = vpack.c.bf16 %v2420_v30, %v2419_v29  ;;  %v2496_v29 = vld [vmem:[%s8401_s12 + $0x10] sm:$0xff]  ;;  %v2499_v30 = vld [vmem:[%s8401_s12 + $0x28] sm:$0xff] }
 0x952   :  { %5331 = vmatpush1.bf16.msra.mxu1 %v5330_v36 }
 0x953   :  { %4500 = vmatprep.subr.msk.mxu1 %vm2150_vm4, %v2314_v52 }
 0x956   :  { %4501 = vmatpush1.msk.msra.mxu1 %vm2150_vm4, %v2313_v54  ;;  %v4555_v54 = vld [vmem:[%s8399_s10 + $0x110] sm:$0xff] }
 0x957   :  { %5332 = vmatprep.subr.bf16.mxu1 %v5782_v48 }
 0xa20   :  { %v2220_v37 = vpop.f32.mrb[26].mxu1 }
 0xa21   :  { %5777 = vrcp.f32 %v2220_v37  ;;  %v4708_v38 = vpop.f32.mrb[27].mxu1 }
 0xa2b   :  { %v5778_v50 = vpop.eup %5777 }
 0xa2c   :  { %4712 = vmatmul.mubr.msk.f32.vlgmr.msra.gmra.mrb[6].mxu0 %vm2226_vm6, %v5778_v50  ;;  %v4558_v50 = vld [vmem:[%s8399_s10 + $0x128] sm:$0xff] }
 0xa2d   :  { %5371 = vmatpush1.bf16.msra.mxu0 %v5370_v43  ;;  %2583 = vmatprep.mubr.f32.mxu0 %v5781_v3  ;;  %v5480_v43 = vpack.c.bf16 %v4554_v42, %v4552_v41  ;;  %v4529_v42 = vld [vmem:[%s8399_s10 + $0xa8] sm:$0xff] }
 0xa2e   :  { %5373 = vmatprep.subr.bf16.mxu0 %v5372_v44  ;;  %v4551_v44 = vld [vmem:[%s8399_s10 + $0xf0] sm:$0xff] }
 0xa31   :  { %5375 = vmatpush1.bf16.msra.mxu0 %v5374_v51  ;;  %v5482_v51 = vpack.c.bf16 %v4553_v46, %v4551_v44 }
 0xa32   :  { %4514 = vmatprep.subr.msk.mxu0 %vm2150_vm4, %v4513_v53  ;;  %v5484_v53 = vpack.c.bf16 %v4558_v50, %v4556_v49  ;;  %v4528_v50 = vld [vmem:[%s8399_s10 + $0xa0] sm:$0xff] }
 0xa35   :  { %4515 = vmatpush1.msk.msra.mxu0 %vm2150_vm4, %v4512_v55  ;;  %v4557_v55 = vld [vmem:[%s8399_s10 + $0x120] sm:$0xff] }
 0xa36   :  { %v5486_v56 = vpack.c.bf16 %v4557_v55, %v4555_v54 }
 0xaff   :  { %v2300_v59 = vpop.f32.mrb[6].mxu0 }
 0xb00   :  { %v7519_v60 = vmul.f32 %v5776_v62, %v2300_v59  ;;  %v4713_v63 = vpop.f32.mrb[7].mxu0  ;;  %v2412_v62 = vld [vmem:[%s8400_s11 + $0x78] sm:$0xff]  ;;  %v4559_v59 = vld [vmem:[%s8399_s10 + $0x130] sm:$0xf] }
 0xb01   :  { %v7593_v1 = vpack.c.bf16 %v2412_v62, %v2411_v61  ;;  %v4519_v63 = vld [vmem:[%s8401_s12 + $0x48] sm:$0xff]  ;;  %v2497_v61 = vld [vmem:[%s8401_s12 + $0x18] sm:$0xff] }
 0xb02   :  { %4502 = vmatmul.mubr.msk.f32.vlgmr.msra.gmra.mrb[28].mxu1 %vm2135_vm3, %v7519_v60  ;;  %4516 = vmatmul.mubr.msk.f32.vlgmr.msra.gmra.mrb[8].mxu0 %vm2135_vm3, %v7519_v60  ;;  %v5412_v5 = vpack.c.bf16 %v4521_v0, %v4519_v63  ;;  %v5420_v62 = vpack.c.bf16 %v2497_v61, %v2495_v57  ;;  %v4599_v63 = vld [vmem:[%s8399_s10 + $0x1a0] sm:$0xff] }
 0xb03   :  { %5334 = vmatpush1.bf16.msra.mxu1 %v7517_v32  ;;  %2741 = vmatprep.mubr.f32.mxu0 %v5781_v3  ;;  %v4603_v57 = vld [vmem:[%s8399_s10 + $0x1c0] sm:$0xff] }
 0xb04   :  { %5335 = vmatprep.subr.bf16.mxu1 %v5782_v48  ;;  %5413 = vmatprep.subr.bf16.mxu0 %v5412_v5  ;;  %v4602_v5 = vld [vmem:[%s8399_s10 + $0x1b8] sm:$0xff]  ;;  %v4536_v61 = vld [vmem:[%s8399_s10 + $0xe0] sm:$0xf] }
 0xb05   :  { %5415 = vmatpush1.bf16.msra.mxu0 %v5414_v13  ;;  %v5588_v17 = vpack.c.bf16 %v4604_v6, %v4602_v5 }
 0xb06   :  { %5417 = vmatprep.subr.bf16.mxu0 %v5416_v14  ;;  %v4537_v14 = vld [vmem:[%s8399_s10 + $0xe8] sm:$0xf] }
 0xb07   :  { %5337 = vmatpush1.bf16.msra.mxu1 %v7532_v4 }
 0xb08   :  { %5338 = vmatprep.subr.bf16.mxu1 %v5782_v48 }
 0xb09   :  { %5419 = vmatpush1.bf16.msra.mxu0 %v5418_v18  ;;  %v4601_v18 = vld [vmem:[%s8399_s10 + $0x1b0] sm:$0xff] }
 0xb0a   :  { %5421 = vmatprep.subr.bf16.mxu0 %v5420_v62  ;;  %v5590_v62 = vpack.c.bf16 %v4603_v57, %v4601_v18 }
 0xb0b   :  { %5340 = vmatpush1.bf16.msra.mxu1 %v7543_v7 }
 0xb0c   :  { %5341 = vmatprep.subr.bf16.mxu1 %v5782_v48 }
 0xb0f   :  { %5343 = vmatpush1.bf16.msra.mxu1 %v7553_v12 }
 0xb10   :  { %5344 = vmatprep.subr.bf16.mxu1 %v5782_v48 }
 0xb13   :  { %5346 = vmatpush1.bf16.msra.mxu1 %v7563_v15 }
 0xb14   :  { %5347 = vmatprep.subr.bf16.mxu1 %v5782_v48 }
 0xb17   :  { %5349 = vmatpush1.bf16.msra.mxu1 %v7573_v33 }
 0xb18   :  { %5350 = vmatprep.subr.bf16.mxu1 %v5782_v48 }
 0xb1b   :  { %5352 = vmatpush1.bf16.msra.mxu1 %v7583_v19 }
 0xb1c   :  { %5353 = vmatprep.subr.bf16.mxu1 %v5782_v48 }
 0xb1f   :  { %5355 = vmatpush1.bf16.msra.mxu1 %v7593_v1 }
 0xb20   :  { %5356 = vmatprep.subr.bf16.mxu1 %v5782_v48 }
 0xb23   :  { %5358 = vmatpush1.bf16.msra.mxu1 %v7603_v22 }
 0xb24   :  { %5359 = vmatprep.subr.bf16.mxu1 %v5782_v48 }
 0xb27   :  { %5361 = vmatpush1.bf16.msra.mxu1 %v7613_v25 }
 0xb28   :  { %5362 = vmatprep.subr.bf16.mxu1 %v5782_v48 }
 0xb2b   :  { %5364 = vmatpush1.bf16.msra.mxu1 %v7623_v28 }
 0xb2c   :  { %5365 = vmatprep.subr.bf16.mxu1 %v5782_v48 }
 0xb2f   :  { %5367 = vmatpush1.bf16.msra.mxu1 %v7634_v31 }
 0xb30   :  { %5376 = vmatprep.subr.bf16.mxu1 %v5782_v48 }
 0xbd5   :  { %v7638_v34 = vpop.f32.mrb[28].mxu1  ;;  %v2585_v35 = vpop.f32.mrb[8].mxu0 }
 0xbd6   :  { %v7640_v36 = vpop.f32.mrb[29].mxu1  ;;  %v2587_v37 = vpop.f32.mrb[9].mxu0  ;;  %v2395_v39 = vmul.f32 %v7638_v34, %v6415_v11  ;;  %v2590_v52 = vmul.f32 %v2585_v35, %v6415_v11  ;;  %v2501_v35 = vld [vmem:[%s8401_s12 + $0x38] sm:$0xff] }
 0xbd7   :  { %v2396_v38 = vmul.f32 %v7640_v36, %v6413_v10  ;;  %v2591_v40 = vmul.f32 %v2587_v37, %v6413_v10  ;;  %v5422_v37 = vpack.c.bf16 %v2496_v29, %v2494_v27 }
 0xbd9   :  { %4503 = vmatprep.mubr.msk.f32.mxu1 %vm107_vm0, %v2396_v38  ;;  %v5424_v38 = vpack.c.bf16 %v2501_v35, %v2499_v30  ;;  %v4542_v30 = vld [vmem:[%s8401_s12 + $0x80] sm:$0xff]  ;;  %v4544_v35 = vld [vmem:[%s8401_s12 + $0x90] sm:$0xff] }
 0xbda   :  { %2489 = vmatmul.mubr.f32.vlgmr.msra.gmra.mrb[30].mxu1 %v2395_v39  ;;  %v2498_v39 = vld [vmem:[%s8401_s12 + $0x20] sm:$0xff] }
 0xbdb   :  { %5378 = vmatpush1.bf16.msra.mxu1 %v7517_v32  ;;  %4517 = vmatprep.mubr.msk.f32.mxu1 %vm107_vm0, %v2591_v40  ;;  %v2500_v40 = vld [vmem:[%s8401_s12 + $0x30] sm:$0xff] }
 0xbdc   :  { %5379 = vmatprep.subr.bf16.mxu1 %v5782_v48  ;;  %v5426_v46 = vpack.c.bf16 %v2500_v40, %v2498_v39  ;;  %v4549_v39 = vld [vmem:[%s8401_s12 + $0xb8] sm:$0xff] }
 0xbdf   :  { %5381 = vmatpush1.bf16.msra.mxu1 %v7532_v4 }
 0xbe0   :  { %5382 = vmatprep.subr.bf16.mxu1 %v5782_v48 }
 0xbe3   :  { %5384 = vmatpush1.bf16.msra.mxu1 %v7543_v7 }
 0xbe4   :  { %5385 = vmatprep.subr.bf16.mxu1 %v5782_v48 }
 0xbe7   :  { %5387 = vmatpush1.bf16.msra.mxu1 %v7553_v12 }
 0xbe8   :  { %5388 = vmatprep.subr.bf16.mxu1 %v5782_v48 }
 0xbeb   :  { %5390 = vmatpush1.bf16.msra.mxu1 %v7563_v15 }
 0xbec   :  { %5391 = vmatprep.subr.bf16.mxu1 %v5782_v48 }
 0xbef   :  { %5393 = vmatpush1.bf16.msra.mxu1 %v7573_v33 }
 0xbf0   :  { %5394 = vmatprep.subr.bf16.mxu1 %v5782_v48 }
 0xbf3   :  { %5396 = vmatpush1.bf16.msra.mxu1 %v7583_v19 }
 0xbf4   :  { %5397 = vmatprep.subr.bf16.mxu1 %v5782_v48 }
 0xbf7   :  { %5399 = vmatpush1.bf16.msra.mxu1 %v7593_v1 }
 0xbf8   :  { %5400 = vmatprep.subr.bf16.mxu1 %v5782_v48 }
 0xbfb   :  { %5402 = vmatpush1.bf16.msra.mxu1 %v7603_v22 }
 0xbfc   :  { %5403 = vmatprep.subr.bf16.mxu1 %v5782_v48 }
 0xbff   :  { %5405 = vmatpush1.bf16.msra.mxu1 %v7613_v25 }
 0xc00   :  { %5406 = vmatprep.subr.bf16.mxu1 %v5782_v48 }
 0xc03   :  { %5408 = vmatpush1.bf16.msra.mxu1 %v7623_v28 }
 0xc04   :  { %5409 = vmatprep.subr.bf16.mxu1 %v5782_v48 }
 0xc07   :  { %5411 = vmatpush1.bf16.msra.mxu1 %v7634_v31 }
 0xc08   :  { %5481 = vmatprep.subr.bf16.mxu1 %v5480_v43  ;;  %v4531_v43 = vld [vmem:[%s8399_s10 + $0xb8] sm:$0xff] }
 0xc09   :  { %v5428_v49 = vpack.c.bf16 %v4531_v43, %v4529_v42  ;;  %v5474_v42 = vpack.c.bf16 %v4544_v35, %v4542_v30  ;;  %v4578_v30 = vld [vmem:[%s8399_s10 + $0x160] sm:$0xff]  ;;  %v4580_v35 = vld [vmem:[%s8399_s10 + $0x170] sm:$0xff] }
 0xc0a   :  { %2660 = vmatmul.mubr.f32.vlgmr.msra.gmra.mrb[32].mxu1 %v2590_v52  ;;  %v4533_v52 = vld [vmem:[%s8399_s10 + $0xc8] sm:$0xff] }
 0xc0b   :  { %5483 = vmatpush1.bf16.msra.mxu1 %v5482_v51  ;;  %3151 = vmatprep.mubr.f32.mxu1 %v5781_v3  ;;  %v4530_v51 = vld [vmem:[%s8399_s10 + $0xb0] sm:$0xff] }
 0xc0c   :  { %5485 = vmatprep.subr.bf16.mxu1 %v5484_v53  ;;  %v4535_v53 = vld [vmem:[%s8399_s10 + $0xd8] sm:$0xff]  ;;  %v5430_v54 = vpack.c.bf16 %v4530_v51, %v4528_v50 }
 0xc0d   :  { %v5432_v55 = vpack.c.bf16 %v4535_v53, %v4533_v52 }
 0xc0f   :  { %5487 = vmatpush1.bf16.msra.mxu1 %v5486_v56  ;;  %v4532_v56 = vld [vmem:[%s8399_s10 + $0xc0] sm:$0xff] }
 0xc10   :  { %4561 = vmatprep.subr.msk.mxu1 %vm2150_vm4, %v4560_v58  ;;  %v4534_v58 = vld [vmem:[%s8399_s10 + $0xd0] sm:$0xff] }
 0xc11   :  { %v5434_v2 = vpack.c.bf16 %v4534_v58, %v4532_v56  ;;  %v4568_v56 = vld [vmem:[%s8401_s12 + $0xd8] sm:$0xff] }
 0xc13   :  { %4562 = vmatpush1.msk.msra.mxu1 %vm2150_vm4, %v4559_v59  ;;  %v4597_v59 = vld [vmem:[%s8399_s10 + $0x190] sm:$0xff] }
 0xc14   :  { %4563 = vmatmul.mubr.msk.f32.vlgmr.msra.gmra.mrb[34].mxu1 %vm2135_vm3, %v7519_v60  ;;  %5488 = vmatprep.subr.bf16.mxu1 %v5782_v48  ;;  %v5586_v13 = vpack.c.bf16 %v4599_v63, %v4597_v59  ;;  %v4565_v59 = vld [vmem:[%s8401_s12 + $0xc0] sm:$0xff]  ;;  %v4567_v63 = vld [vmem:[%s8401_s12 + $0xd0] sm:$0xff] }
 0xc15   :  { %5490 = vmatpush1.bf16.msra.mxu1 %v7517_v32  ;;  %v5526_v5 = vpack.c.bf16 %v4567_v63, %v4565_v59  ;;  %v3827_v59 = vld [vmem:[%s8402_s14 + $0x38] sm:$0xff] }
 0xc16   :  { %5491 = vmatprep.subr.bf16.mxu1 %v5782_v48 }
 0xc19   :  { %5493 = vmatpush1.bf16.msra.mxu1 %v7532_v4 }
 0xc1a   :  { %5494 = vmatprep.subr.bf16.mxu1 %v5782_v48 }
 0xc1d   :  { %5496 = vmatpush1.bf16.msra.mxu1 %v7543_v7 }
 0xc1e   :  { %5497 = vmatprep.subr.bf16.mxu1 %v5782_v48 }
 0xc21   :  { %5499 = vmatpush1.bf16.msra.mxu1 %v7553_v12 }
 0xc22   :  { %5500 = vmatprep.subr.bf16.mxu1 %v5782_v48 }
 0xc25   :  { %5502 = vmatpush1.bf16.msra.mxu1 %v7563_v15 }
 0xc26   :  { %5503 = vmatprep.subr.bf16.mxu1 %v5782_v48 }
 0xc29   :  { %5505 = vmatpush1.bf16.msra.mxu1 %v7573_v33 }
 0xc2a   :  { %5506 = vmatprep.subr.bf16.mxu1 %v5782_v48 }
 0xc2d   :  { %5508 = vmatpush1.bf16.msra.mxu1 %v7583_v19 }
 0xc2e   :  { %5509 = vmatprep.subr.bf16.mxu1 %v5782_v48 }
 0xc31   :  { %5511 = vmatpush1.bf16.msra.mxu1 %v7593_v1 }
 0xc32   :  { %5512 = vmatprep.subr.bf16.mxu1 %v5782_v48 }
 0xc35   :  { %5514 = vmatpush1.bf16.msra.mxu1 %v7603_v22 }
 0xc36   :  { %5515 = vmatprep.subr.bf16.mxu1 %v5782_v48 }
 0xc39   :  { %5517 = vmatpush1.bf16.msra.mxu1 %v7613_v25 }
 0xc3a   :  { %5518 = vmatprep.subr.bf16.mxu1 %v5782_v48 }
 0xc3d   :  { %5520 = vmatpush1.bf16.msra.mxu1 %v7623_v28 }
 0xc3e   :  { %5521 = vmatprep.subr.bf16.mxu1 %v5782_v48 }
 0xc41   :  { %5523 = vmatpush1.bf16.msra.mxu1 %v7634_v31 }
 0xc42   :  { %5585 = vmatprep.subr.bf16.mxu1 %v5584_v23  ;;  %v4543_v23 = vld [vmem:[%s8401_s12 + $0x88] sm:$0xff] }
 0xcad   :  { %v2490_v24 = vpop.f32.mrb[30].mxu1 }
 0xcae   :  { %v2492_v26 = vpop.f32.mrb[31].mxu1 }
 0xcdd   :  { %v2661_v41 = vpop.f32.mrb[32].mxu1 }
 0xcde   :  { %v2663_v44 = vpop.f32.mrb[33].mxu1  ;;  %4526 = vmatmul.mubr.msk.f32.vlgmr.msra.gmra.mrb[10].mxu0 %vm612_vm2, %v2661_v41 }
 0xcdf   :  { %5423 = vmatpush1.bf16.msra.mxu0 %v5422_v37  ;;  %2815 = vmatprep.mubr.f32.mxu0 %v5781_v3 }
 0xce0   :  { %5425 = vmatprep.subr.bf16.mxu0 %v5424_v38  ;;  %v4547_v38 = vld [vmem:[%s8401_s12 + $0xa8] sm:$0xff] }
 0xce1   :  { %v5476_v44 = vpack.c.bf16 %v4549_v39, %v4547_v38  ;;  %v4583_v38 = vld [vmem:[%s8399_s10 + $0x188] sm:$0xf]  ;;  %v4582_v39 = vld [vmem:[%s8399_s10 + $0x180] sm:$0xf] }
 0xce3   :  { %5427 = vmatpush1.bf16.msra.mxu0 %v5426_v46  ;;  %v4546_v46 = vld [vmem:[%s8401_s12 + $0xa0] sm:$0xff] }
 0xce4   :  { %5429 = vmatprep.subr.bf16.mxu0 %v5428_v49  ;;  %v4548_v49 = vld [vmem:[%s8401_s12 + $0xb0] sm:$0xff] }
 0xce5   :  { %v5478_v51 = vpack.c.bf16 %v4548_v49, %v4546_v46  ;;  %v3820_v46 = vld [vmem:[%s8402_s14] sm:$0xff]  ;;  %v3821_v49 = vld [vmem:[%s8402_s14 + $0x8] sm:$0xff] }
 0xce6   :  { %4527 = vmatmul.mubr.msk.f32.vlgmr.msra.gmra.mrb[10].mxu0 %vm612_vm2, %v2490_v24  ;;  %v4545_v24 = vld [vmem:[%s8401_s12 + $0x98] sm:$0xff] }
 0xce7   :  { %5431 = vmatpush1.bf16.msra.mxu0 %v5430_v54  ;;  %v3153_v0 = vpop.f32.mrb[34].mxu1  ;;  %2903 = vmatprep.mubr.f32.mxu0 %v5781_v3  ;;  %v5472_v26 = vpack.c.bf16 %v4545_v24, %v4543_v23 }
 0xce8   :  { %v3155_v8 = vpop.f32.mrb[35].mxu1  ;;  %5433 = vmatprep.subr.bf16.mxu0 %v5432_v55  ;;  %v3158_v16 = vmul.f32 %v3153_v0, %v6415_v11  ;;  %v4566_v55 = vld [vmem:[%s8401_s12 + $0xc8] sm:$0xff] }
 0xce9   :  { %v3159_v9 = vmul.f32 %v3155_v8, %v6413_v10  ;;  %v5524_v58 = vpack.c.bf16 %v4568_v56, %v4566_v55  ;;  %v4570_v0 = vld [vmem:[%s8401_s12 + $0xe8] sm:$0xff]  ;;  %v4569_v8 = vld [vmem:[%s8401_s12 + $0xe0] sm:$0xff] }
 0xcea   :  { %v3825_v55 = vld [vmem:[%s8402_s14 + $0x28] sm:$0xff] }
 0xceb   :  { %5435 = vmatpush1.bf16.msra.mxu0 %v5434_v2  ;;  %4564 = vmatprep.mubr.msk.f32.mxu1 %vm107_vm0, %v3159_v9  ;;  %v4572_v2 = vld [vmem:[%s8401_s12 + $0xf8] sm:$0xff]  ;;  %v4571_v9 = vld [vmem:[%s8401_s12 + $0xf0] sm:$0xff] }
 0xcec   :  { %3228 = vmatmul.mubr.f32.vlgmr.msra.gmra.mrb[36].mxu1 %v3158_v16  ;;  %4538 = vmatprep.subr.msk.mxu0 %vm2150_vm4, %v4537_v14  ;;  %v5528_v6 = vpack.c.bf16 %v4572_v2, %v4570_v0  ;;  %v4575_v14 = vld [vmem:[%s8399_s10 + $0x148] sm:$0xff]  ;;  %v4577_v16 = vld [vmem:[%s8399_s10 + $0x158] sm:$0xff]  ;;  %v5530_v18 = vpack.c.bf16 %v4571_v9, %v4569_v8  ;;  %v3828_v0 = vld [vmem:[%s8402_s14 + $0x40] sm:$0xff] }
 0xced   :  { %5587 = vmatpush1.bf16.msra.mxu1 %v5586_v13  ;;  %3647 = vmatprep.mubr.f32.mxu1 %v5781_v3  ;;  %v5532_v57 = vpack.c.bf16 %v4577_v16, %v4575_v14  ;;  %v3829_v2 = vld [vmem:[%s8402_s14 + $0x48] sm:$0xff]  ;;  %v3831_v8 = vld [vmem:[%s8402_s14 + $0x58] sm:$0xff] }
 0xcee   :  { %5589 = vmatprep.subr.bf16.mxu1 %v5588_v17  ;;  %v3833_v14 = vld [vmem:[%s8402_s14 + $0x68] sm:$0xff] }
 0xcef   :  { %4539 = vmatpush1.msk.msra.mxu0 %vm2150_vm4, %v4536_v61  ;;  %v4574_v61 = vld [vmem:[%s8399_s10 + $0x140] sm:$0xff] }
 0xcf0   :  { %4540 = vmatmul.mubr.msk.f32.vlgmr.msra.gmra.mrb[12].mxu0 %vm2135_vm3, %v7519_v60  ;;  %5436 = vmatprep.subr.bf16.mxu0 %v5782_v48 }
 0xcf1   :  { %5591 = vmatpush1.bf16.msra.mxu1 %v5590_v62  ;;  %5438 = vmatpush1.bf16.msra.mxu0 %v7517_v32  ;;  %v4576_v62 = vld [vmem:[%s8399_s10 + $0x150] sm:$0xff] }
 0xcf2   :  { %4607 = vmatprep.subr.msk.mxu1 %vm2150_vm4, %v4606_v20  ;;  %5439 = vmatprep.subr.bf16.mxu0 %v5782_v48  ;;  %v4579_v20 = vld [vmem:[%s8399_s10 + $0x168] sm:$0xff]  ;;  %v5534_v24 = vpack.c.bf16 %v4576_v62, %v4574_v61  ;;  %v3836_v61 = vld [vmem:[%s8402_s14 + $0x80] sm:$0xff] }
 0xcf3   :  { %v3837_v62 = vld [vmem:[%s8402_s14 + $0x88] sm:$0xff] }
 0xcf5   :  { %4608 = vmatpush1.msk.msra.mxu1 %vm2150_vm4, %v4605_v21  ;;  %5441 = vmatpush1.bf16.msra.mxu0 %v7532_v4  ;;  %v4581_v21 = vld [vmem:[%s8399_s10 + $0x178] sm:$0xff] }
 0xcf6   :  { %4609 = vmatmul.mubr.msk.f32.vlgmr.msra.gmra.mrb[38].mxu1 %vm2135_vm3, %v7519_v60  ;;  %5592 = vmatprep.subr.bf16.mxu1 %v5782_v48 }
 0xcf7   :  { %5594 = vmatpush1.bf16.msra.mxu1 %v7517_v32  ;;  %5442 = vmatprep.subr.bf16.mxu0 %v5782_v48 }
 0xcf8   :  { %5595 = vmatprep.subr.bf16.mxu1 %v5782_v48 }
 0xcf9   :  { %5444 = vmatpush1.bf16.msra.mxu0 %v7543_v7 }
 0xcfa   :  { %5445 = vmatprep.subr.bf16.mxu0 %v5782_v48 }
 0xcfb   :  { %5597 = vmatpush1.bf16.msra.mxu1 %v7532_v4 }
 0xcfc   :  { %5598 = vmatprep.subr.bf16.mxu1 %v5782_v48 }
 0xcfd   :  { %5447 = vmatpush1.bf16.msra.mxu0 %v7553_v12 }
 0xcfe   :  { %5448 = vmatprep.subr.bf16.mxu0 %v5782_v48 }
 0xcff   :  { %5600 = vmatpush1.bf16.msra.mxu1 %v7543_v7 }
 0xd00   :  { %5601 = vmatprep.subr.bf16.mxu1 %v5782_v48 }
 0xd01   :  { %5450 = vmatpush1.bf16.msra.mxu0 %v7563_v15 }
 0xd02   :  { %5451 = vmatprep.subr.bf16.mxu0 %v5782_v48 }
 0xd03   :  { %5603 = vmatpush1.bf16.msra.mxu1 %v7553_v12 }
 0xd04   :  { %5604 = vmatprep.subr.bf16.mxu1 %v5782_v48 }
 0xd05   :  { %5453 = vmatpush1.bf16.msra.mxu0 %v7573_v33 }
 0xd06   :  { %5454 = vmatprep.subr.bf16.mxu0 %v5782_v48 }
 0xd07   :  { %5606 = vmatpush1.bf16.msra.mxu1 %v7563_v15 }
 0xd08   :  { %5607 = vmatprep.subr.bf16.mxu1 %v5782_v48 }
 0xd09   :  { %5456 = vmatpush1.bf16.msra.mxu0 %v7583_v19 }
 0xd0a   :  { %5457 = vmatprep.subr.bf16.mxu0 %v5782_v48 }
 0xd0b   :  { %5609 = vmatpush1.bf16.msra.mxu1 %v7573_v33 }
 0xd0c   :  { %5610 = vmatprep.subr.bf16.mxu1 %v5782_v48 }
 0xd0d   :  { %5459 = vmatpush1.bf16.msra.mxu0 %v7593_v1 }
 0xd0e   :  { %5460 = vmatprep.subr.bf16.mxu0 %v5782_v48 }
 0xd0f   :  { %5612 = vmatpush1.bf16.msra.mxu1 %v7583_v19 }
 0xd10   :  { %5613 = vmatprep.subr.bf16.mxu1 %v5782_v48 }
 0xd11   :  { %5462 = vmatpush1.bf16.msra.mxu0 %v7603_v22 }
 0xd12   :  { %5463 = vmatprep.subr.bf16.mxu0 %v5782_v48 }
 0xd13   :  { %5615 = vmatpush1.bf16.msra.mxu1 %v7593_v1 }
 0xd14   :  { %5616 = vmatprep.subr.bf16.mxu1 %v5782_v48 }
 0xd15   :  { %5465 = vmatpush1.bf16.msra.mxu0 %v7613_v25 }
 0xd16   :  { %5466 = vmatprep.subr.bf16.mxu0 %v5782_v48 }
 0xd17   :  { %5618 = vmatpush1.bf16.msra.mxu1 %v7603_v22 }
 0xd18   :  { %5619 = vmatprep.subr.bf16.mxu1 %v5782_v48 }
 0xd19   :  { %5468 = vmatpush1.bf16.msra.mxu0 %v7623_v28 }
 0xd1a   :  { %5469 = vmatprep.subr.bf16.mxu0 %v5782_v48 }
 0xd1b   :  { %5621 = vmatpush1.bf16.msra.mxu1 %v7613_v25 }
 0xd1c   :  { %5622 = vmatprep.subr.bf16.mxu1 %v5782_v48 }
 0xd1d   :  { %5471 = vmatpush1.bf16.msra.mxu0 %v7634_v31 }
 0xd1e   :  { %5473 = vmatprep.subr.bf16.mxu0 %v5472_v26 }
 0xd1f   :  { %5624 = vmatpush1.bf16.msra.mxu1 %v7623_v28 }
 0xd20   :  { %5625 = vmatprep.subr.bf16.mxu1 %v5782_v48 }
 0xd23   :  { %5627 = vmatpush1.bf16.msra.mxu1 %v7634_v31 }
 0xd24   :  { %5636 = vmatprep.subr.bf16.mxu1 %v5782_v48 }
 0xdbf   :  { %v3229_v27 = vpop.f32.mrb[36].mxu1 }
 0xdc0   :  { %v3231_v29 = vpop.f32.mrb[37].mxu1 }
 0xdc1   :  { %v5536_v29 = vpack.c.bf16 %v4581_v21, %v4579_v20  ;;  %v5661_v20 = vpack.c.bf16 %v3837_v62, %v3836_v61  ;;  %v3838_v21 = vld [vmem:[%s8402_s14 + $0x90] sm:$0xff]  ;;  %v3843_v62 = vld [vmem:[%s8402_s14 + $0xb8] sm:$0xff] }
 0xdc2   :  { %v3842_v61 = vld [vmem:[%s8402_s14 + $0xb0] sm:$0xff] }
 0xdc3   :  { %v2905_v37 = vpop.f32.mrb[12].mxu0 }
 0xdc4   :  { %v2907_v40 = vpop.f32.mrb[13].mxu0  ;;  %v2910_v43 = vmul.f32 %v2905_v37, %v6415_v11  ;;  %v5538_v37 = vpack.c.bf16 %v4580_v35, %v4578_v30  ;;  %v4613_v30 = vld [vmem:[%s8401_s12 + $0x150] sm:$0xff]  ;;  %v4616_v35 = vld [vmem:[%s8401_s12 + $0x168] sm:$0xff] }
 0xdc5   :  { %v2911_v41 = vmul.f32 %v2907_v40, %v6413_v10  ;;  %v4594_v40 = vld [vmem:[%s8401_s12 + $0x130] sm:$0xff] }
 0xdc7   :  { %4541 = vmatprep.mubr.msk.f32.mxu0 %vm107_vm0, %v2911_v41 }
 0xdc8   :  { %2980 = vmatmul.mubr.f32.vlgmr.msra.gmra.mrb[14].mxu0 %v2910_v43  ;;  %v4614_v43 = vld [vmem:[%s8401_s12 + $0x158] sm:$0xff] }
 0xdc9   :  { %v3649_v50 = vpop.f32.mrb[38].mxu1  ;;  %5475 = vmatpush1.bf16.msra.mxu0 %v5474_v42  ;;  %3061 = vmatprep.mubr.f32.mxu0 %v5781_v3  ;;  %v4612_v42 = vld [vmem:[%s8401_s12 + $0x148] sm:$0xff] }
 0xdca   :  { %v3651_v52 = vpop.f32.mrb[39].mxu1  ;;  %5477 = vmatprep.subr.bf16.mxu0 %v5476_v44  ;;  %v3654_v54 = vmul.f32 %v3649_v50, %v6415_v11  ;;  %v5628_v44 = vpack.c.bf16 %v4614_v43, %v4612_v42  ;;  %v5637_v50 = vpack.c.bf16 %v3821_v49, %v3820_v46  ;;  %v3926_v42 = vld [vmem:[%s8403_s13 + $0x40] sm:$0xff]  ;;  %v3927_v43 = vld [vmem:[%s8403_s13 + $0x48] sm:$0xff]  ;;  %v3928_v46 = vld [vmem:[%s8403_s13 + $0x50] sm:$0xff] }
 0xdcb   :  { %v3655_v53 = vmul.f32 %v3651_v52, %v6413_v10  ;;  %v3823_v52 = vld [vmem:[%s8402_s14 + $0x18] sm:$0xff] }
 0xdcc   :  { %v3929_v49 = vld [vmem:[%s8403_s13 + $0x58] sm:$0xff] }
 0xdcd   :  { %4610 = vmatprep.mubr.msk.f32.mxu1 %vm107_vm0, %v3655_v53  ;;  %5479 = vmatpush1.bf16.msra.mxu0 %v5478_v51  ;;  %v3822_v51 = vld [vmem:[%s8402_s14 + $0x10] sm:$0xff] }
 0xdce   :  { %3724 = vmatmul.mubr.f32.vlgmr.msra.gmra.mrb[40].mxu1 %v3654_v54  ;;  %5525 = vmatprep.subr.bf16.mxu0 %v5524_v58  ;;  %v5640_v53 = vpack.c.bf16 %v3823_v52, %v3822_v51  ;;  %v3824_v54 = vld [vmem:[%s8402_s14 + $0x20] sm:$0xff]  ;;  %v3826_v58 = vld [vmem:[%s8402_s14 + $0x30] sm:$0xff]  ;;  %v3931_v52 = vld [vmem:[%s8403_s13 + $0x68] sm:$0xff] }
 0xdcf   :  { %5638 = vmatpush1.bf16.msra.mxu1 %v5637_v50  ;;  %v5643_v56 = vpack.c.bf16 %v3825_v55, %v3824_v54  ;;  %v5646_v63 = vpack.c.bf16 %v3827_v59, %v3826_v58  ;;  %v5688_v50 = vpack.c.bf16 %v3929_v49, %v3928_v46  ;;  %v3930_v51 = vld [vmem:[%s8403_s13 + $0x60] sm:$0xff]  ;;  %v3932_v54 = vld [vmem:[%s8403_s13 + $0x70] sm:$0xff]  ;;  %v3933_v55 = vld [vmem:[%s8403_s13 + $0x78] sm:$0xff] }
 0xdd0   :  { %5639 = vmatprep.subr.bf16.mxu1 %v5782_v48  ;;  %v3934_v58 = vld [vmem:[%s8403_s13 + $0x80] sm:$0xff]  ;;  %v3935_v59 = vld [vmem:[%s8403_s13 + $0x88] sm:$0xff] }
 0xdd1   :  { %v4116_v46 = vld [vmem:[%s8405_s17 + $0x20] sm:$0xff]  ;;  %v4117_v49 = vld [vmem:[%s8405_s17 + $0x28] sm:$0xff] }
 0xdd3   :  { %5641 = vmatpush1.bf16.msra.mxu1 %v5640_v53  ;;  %v5691_v53 = vpack.c.bf16 %v3931_v52, %v3930_v51  ;;  %v4135_v51 = vld [vmem:[%s8405_s17 + $0xb8] sm:$0xff]  ;;  %v5726_v52 = vpack.c.bf16 %v4117_v49, %v4116_v46 }
 0xdd4   :  { %5642 = vmatprep.subr.bf16.mxu1 %v5782_v48 }
 0xdd7   :  { %5644 = vmatpush1.bf16.msra.mxu1 %v5643_v56  ;;  %v5694_v56 = vpack.c.bf16 %v3933_v55, %v3932_v54  ;;  %v4118_v54 = vld [vmem:[%s8405_s17 + $0x30] sm:$0xff]  ;;  %v4119_v55 = vld [vmem:[%s8405_s17 + $0x38] sm:$0xff] }
 0xdd8   :  { %5645 = vmatprep.subr.bf16.mxu1 %v5782_v48 }
 0xddb   :  { %5647 = vmatpush1.bf16.msra.mxu1 %v5646_v63  ;;  %v5697_v63 = vpack.c.bf16 %v3935_v59, %v3934_v58  ;;  %v4137_v58 = vld [vmem:[%s8405_s17 + $0xc8] sm:$0xff]  ;;  %v5730_v59 = vpack.c.bf16 %v4119_v55, %v4118_v54 }
 0xddc   :  { %5648 = vmatprep.subr.bf16.mxu1 %v5782_v48 }
 0xe9b   :  { %v2981_v13 = vpop.f32.mrb[14].mxu0 }
 0xe9c   :  { %v2983_v17 = vpop.f32.mrb[15].mxu0  ;;  %4550 = vmatmul.mubr.msk.f32.vlgmr.msra.gmra.mrb[10].mxu0 %vm612_vm2, %v2981_v13  ;;  %v3832_v13 = vld [vmem:[%s8402_s14 + $0x60] sm:$0xff] }
 0xe9d   :  { %5527 = vmatpush1.bf16.msra.mxu0 %v5526_v5  ;;  %3309 = vmatprep.mubr.f32.mxu0 %v5781_v3  ;;  %v5649_v5 = vpack.c.bf16 %v3829_v2, %v3828_v0  ;;  %v5655_v16 = vpack.c.bf16 %v3833_v14, %v3832_v13  ;;  %v3834_v17 = vld [vmem:[%s8402_s14 + $0x70] sm:$0xff]  ;;  %v3937_v2 = vld [vmem:[%s8403_s13 + $0x98] sm:$0xff]  ;;  %v3840_v13 = vld [vmem:[%s8402_s14 + $0xa0] sm:$0xff] }
 0xe9e   :  { %5529 = vmatprep.subr.bf16.mxu0 %v5528_v6  ;;  %v3830_v6 = vld [vmem:[%s8402_s14 + $0x50] sm:$0xff]  ;;  %v3841_v14 = vld [vmem:[%s8402_s14 + $0xa8] sm:$0xff] }
 0xe9f   :  { %5650 = vmatpush1.bf16.msra.mxu1 %v5649_v5  ;;  %v5652_v9 = vpack.c.bf16 %v3831_v8, %v3830_v6  ;;  %v3936_v0 = vld [vmem:[%s8403_s13 + $0x90] sm:$0xff]  ;;  %v3938_v6 = vld [vmem:[%s8403_s13 + $0xa0] sm:$0xff]  ;;  %v3939_v8 = vld [vmem:[%s8403_s13 + $0xa8] sm:$0xff] }
 0xea0   :  { %5651 = vmatprep.subr.bf16.mxu1 %v5782_v48  ;;  %v5700_v5 = vpack.c.bf16 %v3937_v2, %v3936_v0  ;;  %v4120_v0 = vld [vmem:[%s8405_s17 + $0x40] sm:$0xff]  ;;  %v4121_v2 = vld [vmem:[%s8405_s17 + $0x48] sm:$0xff] }
 0xea1   :  { %5531 = vmatpush1.bf16.msra.mxu0 %v5530_v18  ;;  %v7980_v23 = vpop.f32.mrb[40].mxu1  ;;  %v3835_v18 = vld [vmem:[%s8402_s14 + $0x78] sm:$0xff] }
 0xea2   :  { %v3727_v26 = vpop.f32.mrb[41].mxu1  ;;  %5533 = vmatprep.subr.bf16.mxu0 %v5532_v57  ;;  %v5658_v57 = vpack.c.bf16 %v3835_v18, %v3834_v17  ;;  %v3940_v17 = vld [vmem:[%s8403_s13 + $0xb0] sm:$0xff]  ;;  %v3941_v18 = vld [vmem:[%s8403_s13 + $0xb8] sm:$0xff] }
 0xea3   :  { %5653 = vmatpush1.bf16.msra.mxu1 %v5652_v9  ;;  %v5703_v9 = vpack.c.bf16 %v3939_v8, %v3938_v6  ;;  %v4139_v6 = vld [vmem:[%s8405_s17 + $0xd8] sm:$0xff]  ;;  %v5734_v8 = vpack.c.bf16 %v4121_v2, %v4120_v0 }
 0xea4   :  { %4573 = vmatmul.mubr.msk.f32.vlgmr.msra.gmra.mrb[10].mxu0 %vm612_vm2, %v3229_v27  ;;  %v4592_v27 = vld [vmem:[%s8401_s12 + $0x120] sm:$0xff]  ;;  %5654 = vmatprep.subr.bf16.mxu1 %v5782_v48 }
 0xea5   :  { %5535 = vmatpush1.bf16.msra.mxu0 %v5534_v24  ;;  %3399 = vmatprep.mubr.f32.mxu0 %v5781_v3  ;;  %v5582_v41 = vpack.c.bf16 %v4594_v40, %v4592_v27  ;;  %v3839_v24 = vld [vmem:[%s8402_s14 + $0x98] sm:$0xff] }
 0xea6   :  { %5537 = vmatprep.subr.bf16.mxu0 %v5536_v29  ;;  %v5664_v26 = vpack.c.bf16 %v3839_v24, %v3838_v21  ;;  %v4611_v29 = vld [vmem:[%s8401_s12 + $0x140] sm:$0xff]  ;;  %v3925_v40 = vld [vmem:[%s8403_s13 + $0x38] sm:$0xff]  ;;  %v4017_v21 = vld [vmem:[%s8404_s15 + $0x8] sm:$0xff] }
 0xea7   :  { %5656 = vmatpush1.bf16.msra.mxu1 %v5655_v16  ;;  %v5667_v16 = vpack.c.bf16 %v3841_v14, %v3840_v13  ;;  %v4019_v24 = vld [vmem:[%s8404_s15 + $0x18] sm:$0xff]  ;;  %v4122_v13 = vld [vmem:[%s8405_s17 + $0x50] sm:$0xff] }
 0xea8   :  { %5657 = vmatprep.subr.bf16.mxu1 %v5782_v48  ;;  %v4123_v14 = vld [vmem:[%s8405_s17 + $0x58] sm:$0xff] }
 0xea9   :  { %5539 = vmatpush1.bf16.msra.mxu0 %v5538_v37  ;;  %v4618_v37 = vld [vmem:[%s8401_s12 + $0x178] sm:$0xff] }
 0xeaa   :  { %4584 = vmatprep.subr.msk.mxu0 %vm2150_vm4, %v4583_v38  ;;  %v5630_v38 = vpack.c.bf16 %v4613_v30, %v4611_v29 }
 0xeab   :  { %5659 = vmatpush1.bf16.msra.mxu1 %v5658_v57  ;;  %v5706_v57 = vpack.c.bf16 %v3941_v18, %v3940_v17  ;;  %v4141_v17 = vld [vmem:[%s8405_s17 + $0xe8] sm:$0xff]  ;;  %v5738_v18 = vpack.c.bf16 %v4123_v14, %v4122_v13 }
 0xeac   :  { %5660 = vmatprep.subr.bf16.mxu1 %v5782_v48 }
 0xead   :  { %4585 = vmatpush1.msk.msra.mxu0 %vm2150_vm4, %v4582_v39  ;;  %v5632_v39 = vpack.c.bf16 %v4618_v37, %v4616_v35 }
 0xeae   :  { %4586 = vmatmul.mubr.msk.f32.vlgmr.msra.gmra.mrb[16].mxu0 %vm2135_vm3, %v7519_v60  ;;  %5540 = vmatprep.subr.bf16.mxu0 %v5782_v48  ;;  %v4591_v60 = vld [vmem:[%s8401_s12 + $0x118] sm:$0xff] }
 0xeaf   :  { %5542 = vmatpush1.bf16.msra.mxu0 %v7517_v32  ;;  %v4589_v32 = vld [vmem:[%s8401_s12 + $0x108] sm:$0xff]  ;;  %5662 = vmatpush1.bf16.msra.mxu1 %v5661_v20  ;;  %v5670_v20 = vpack.c.bf16 %v3843_v62, %v3842_v61 }
 0xeb0   :  { %5543 = vmatprep.subr.bf16.mxu0 %v5782_v48  ;;  %5663 = vmatprep.subr.bf16.mxu1 %v5782_v48 }
 0xeb3   :  { %5545 = vmatpush1.bf16.msra.mxu0 %v7532_v4  ;;  %v5576_v4 = vpack.c.bf16 %v4591_v60, %v4589_v32  ;;  %5665 = vmatpush1.bf16.msra.mxu1 %v5664_v26  ;;  %v4615_v32 = vld [vmem:[%s8401_s12 + $0x160] sm:$0xff]  ;;  %v4617_v60 = vld [vmem:[%s8401_s12 + $0x170] sm:$0xff] }
 0xeb4   :  { %5546 = vmatprep.subr.bf16.mxu0 %v5782_v48  ;;  %5666 = vmatprep.subr.bf16.mxu1 %v5782_v48 }
 0xeb7   :  { %5548 = vmatpush1.bf16.msra.mxu0 %v7543_v7  ;;  %v4588_v7 = vld [vmem:[%s8401_s12 + $0x100] sm:$0xff]  ;;  %5668 = vmatpush1.bf16.msra.mxu1 %v5667_v16 }
 0xeb8   :  { %5549 = vmatprep.subr.bf16.mxu0 %v5782_v48  ;;  %5669 = vmatprep.subr.bf16.mxu1 %v5782_v48  ;;  %v4140_v16 = vld [vmem:[%s8405_s17 + $0xe0] sm:$0xff] }
 0xebb   :  { %5551 = vmatpush1.bf16.msra.mxu0 %v7553_v12  ;;  %v4590_v12 = vld [vmem:[%s8401_s12 + $0x110] sm:$0xff]  ;;  %5671 = vmatpush1.bf16.msra.mxu1 %v5670_v20 }
 0xebc   :  { %5552 = vmatprep.subr.bf16.mxu0 %v5782_v48 }
 0xebf   :  { %5554 = vmatpush1.bf16.msra.mxu0 %v7563_v15 }
 0xec0   :  { %5555 = vmatprep.subr.bf16.mxu0 %v5782_v48 }
 0xec3   :  { %5557 = vmatpush1.bf16.msra.mxu0 %v7573_v33  ;;  %v4593_v33 = vld [vmem:[%s8401_s12 + $0x128] sm:$0xff] }
 0xec4   :  { %5558 = vmatprep.subr.bf16.mxu0 %v5782_v48 }
 0xec7   :  { %5560 = vmatpush1.bf16.msra.mxu0 %v7583_v19  ;;  %v4595_v19 = vld [vmem:[%s8401_s12 + $0x138] sm:$0xff] }
 0xec8   :  { %5561 = vmatprep.subr.bf16.mxu0 %v5782_v48 }
 0xecb   :  { %5563 = vmatpush1.bf16.msra.mxu0 %v7593_v1 }
 0xecc   :  { %5564 = vmatprep.subr.bf16.mxu0 %v5782_v48 }
 0xecf   :  { %5566 = vmatpush1.bf16.msra.mxu0 %v7603_v22 }
 0xed0   :  { %5567 = vmatprep.subr.bf16.mxu0 %v5782_v48 }
 0xed3   :  { %5569 = vmatpush1.bf16.msra.mxu0 %v7613_v25  ;;  %v5578_v25 = vpack.c.bf16 %v4590_v12, %v4588_v7  ;;  %v5634_v12 = vpack.c.bf16 %v4617_v60, %v4615_v32  ;;  %v4016_v60 = vld [vmem:[%s8404_s15] sm:$0xff] }
 0xed4   :  { %5570 = vmatprep.subr.bf16.mxu0 %v5782_v48 }
 0xed7   :  { %5572 = vmatpush1.bf16.msra.mxu0 %v7623_v28 }
 0xed8   :  { %5573 = vmatprep.subr.bf16.mxu0 %v5782_v48 }
 0xedb   :  { %5575 = vmatpush1.bf16.msra.mxu0 %v7634_v31  ;;  %v5580_v31 = vpack.c.bf16 %v4595_v19, %v4593_v33  ;;  %v3919_v33 = vld [vmem:[%s8403_s13 + $0x8] sm:$0xff] }
 0xedc   :  { %5577 = vmatprep.subr.bf16.mxu0 %v5576_v4 }
 0xf81   :  { %v3401_v15 = vpop.f32.mrb[16].mxu0 }
 0xf82   :  { %v3403_v1 = vpop.f32.mrb[17].mxu0  ;;  %v3406_v28 = vmul.f32 %v3401_v15, %v6415_v11  ;;  %v3918_v15 = vld [vmem:[%s8403_s13] sm:$0xff] }
 0xf83   :  { %v3407_v22 = vmul.f32 %v3403_v1, %v6413_v10  ;;  %v5673_v19 = vpack.c.bf16 %v3919_v33, %v3918_v15  ;;  %v3920_v1 = vld [vmem:[%s8403_s13 + $0x10] sm:$0xff]  ;;  %v4128_v15 = vld [vmem:[%s8405_s17 + $0x80] sm:$0xff]  ;;  %v4129_v33 = vld [vmem:[%s8405_s17 + $0x88] sm:$0xff] }
 0xf85   :  { %4587 = vmatprep.mubr.msk.f32.mxu0 %vm107_vm0, %v3407_v22  ;;  %v3921_v22 = vld [vmem:[%s8403_s13 + $0x18] sm:$0xff] }
 0xf86   :  { %3476 = vmatmul.mubr.f32.vlgmr.msra.gmra.mrb[18].mxu0 %v3406_v28  ;;  %v3922_v28 = vld [vmem:[%s8403_s13 + $0x20] sm:$0xff] }
 0xf87   :  { %5579 = vmatpush1.bf16.msra.mxu0 %v5578_v25  ;;  %3557 = vmatprep.mubr.f32.mxu0 %v5781_v3  ;;  %v5676_v25 = vpack.c.bf16 %v3921_v22, %v3920_v1  ;;  %v5716_v1 = vpack.c.bf16 %v4129_v33, %v4128_v15  ;;  %v4113_v22 = vld [vmem:[%s8405_s17 + $0x8] sm:$0xff] }
 0xf88   :  { %5581 = vmatprep.subr.bf16.mxu0 %v5580_v31  ;;  %v3923_v31 = vld [vmem:[%s8403_s13 + $0x28] sm:$0xff] }
 0xf89   :  { %v5679_v27 = vpack.c.bf16 %v3923_v31, %v3922_v28  ;;  %v4131_v28 = vld [vmem:[%s8405_s17 + $0x98] sm:$0xff] }
 0xf8b   :  { %5583 = vmatpush1.bf16.msra.mxu0 %v5582_v41 }
 0xf8c   :  { %5629 = vmatprep.subr.bf16.mxu0 %v5628_v44  ;;  %v5685_v44 = vpack.c.bf16 %v3927_v43, %v3926_v42  ;;  %v4133_v42 = vld [vmem:[%s8405_s17 + $0xa8] sm:$0xff] }
0x1059   :  { %v3477_v4 = vpop.f32.mrb[18].mxu0 }
0x105a   :  { %v3479_v7 = vpop.f32.mrb[19].mxu0  ;;  %4596 = vmatmul.mubr.msk.f32.vlgmr.msra.gmra.mrb[10].mxu0 %vm612_vm2, %v3477_v4 }
0x105b   :  { %5631 = vmatpush1.bf16.msra.mxu0 %v5630_v38  ;;  %3805 = vmatprep.mubr.f32.mxu0 %v5781_v3  ;;  %v4022_v7 = vld [vmem:[%s8404_s15 + $0x30] sm:$0xff] }
0x105c   :  { %5633 = vmatprep.subr.bf16.mxu0 %v5632_v39 }
0x105f   :  { %5635 = vmatpush1.bf16.msra.mxu0 %v5634_v12 }
0x1060   :  { %5672 = vmatprep.subr.bf16.mxu0 %v5782_v48 }
0x1062   :  { %4619 = vmatmul.mubr.msk.f32.vlgmr.msra.gmra.mrb[10].mxu0 %vm612_vm2, %v7980_v23  ;;  %v3924_v23 = vld [vmem:[%s8403_s13 + $0x30] sm:$0xff] }
0x1063   :  { %5674 = vmatpush1.bf16.msra.mxu0 %v5673_v19  ;;  %v5682_v41 = vpack.c.bf16 %v3925_v40, %v3924_v23  ;;  %v4112_v19 = vld [vmem:[%s8405_s17] sm:$0xff]  ;;  %v4114_v23 = vld [vmem:[%s8405_s17 + $0x10] sm:$0xff]  ;;  %v4115_v40 = vld [vmem:[%s8405_s17 + $0x18] sm:$0xff] }
0x1064   :  { %5675 = vmatprep.subr.bf16.mxu0 %v5782_v48  ;;  %v5718_v31 = vpack.c.bf16 %v4113_v22, %v4112_v19  ;;  %v5722_v43 = vpack.c.bf16 %v4115_v40, %v4114_v23  ;;  %v4623_v19 = vld [vmem:[%s8407_s18] ss:$0 sm:$0xff] }
0x1067   :  { %5677 = vmatpush1.bf16.msra.mxu0 %v5676_v25  ;;  %v4130_v25 = vld [vmem:[%s8405_s17 + $0x90] sm:$0xff] }
0x1068   :  { %5678 = vmatprep.subr.bf16.mxu0 %v5782_v48 }
0x106b   :  { %5680 = vmatpush1.bf16.msra.mxu0 %v5679_v27  ;;  %v5720_v27 = vpack.c.bf16 %v4131_v28, %v4130_v25 }
0x106c   :  { %5681 = vmatprep.subr.bf16.mxu0 %v5782_v48 }
0x106f   :  { %5683 = vmatpush1.bf16.msra.mxu0 %v5682_v41  ;;  %v4132_v41 = vld [vmem:[%s8405_s17 + $0xa0] sm:$0xff] }
0x1070   :  { %5684 = vmatprep.subr.bf16.mxu0 %v5782_v48 }
0x1073   :  { %5686 = vmatpush1.bf16.msra.mxu0 %v5685_v44  ;;  %v5724_v44 = vpack.c.bf16 %v4133_v42, %v4132_v41 }
0x1074   :  { %5687 = vmatprep.subr.bf16.mxu0 %v5782_v48 }
0x1077   :  { %5689 = vmatpush1.bf16.msra.mxu0 %v5688_v50  ;;  %v4134_v50 = vld [vmem:[%s8405_s17 + $0xb0] sm:$0xff] }
0x1078   :  { %5690 = vmatprep.subr.bf16.mxu0 %v5782_v48 }
0x107b   :  { %5692 = vmatpush1.bf16.msra.mxu0 %v5691_v53  ;;  %v5728_v53 = vpack.c.bf16 %v4135_v51, %v4134_v50 }
0x107c   :  { %5693 = vmatprep.subr.bf16.mxu0 %v5782_v48 }
0x107f   :  { %5695 = vmatpush1.bf16.msra.mxu0 %v5694_v56  ;;  %v4136_v56 = vld [vmem:[%s8405_s17 + $0xc0] sm:$0xff] }
0x1080   :  { %5696 = vmatprep.subr.bf16.mxu0 %v5782_v48 }
0x1083   :  { %5698 = vmatpush1.bf16.msra.mxu0 %v5697_v63  ;;  %v5732_v63 = vpack.c.bf16 %v4137_v58, %v4136_v56 }
0x1084   :  { %5699 = vmatprep.subr.bf16.mxu0 %v5782_v48 }
0x1087   :  { %5701 = vmatpush1.bf16.msra.mxu0 %v5700_v5  ;;  %v4138_v5 = vld [vmem:[%s8405_s17 + $0xd0] sm:$0xff] }
0x1088   :  { %5702 = vmatprep.subr.bf16.mxu0 %v5782_v48 }
0x108b   :  { %5704 = vmatpush1.bf16.msra.mxu0 %v5703_v9  ;;  %v5736_v9 = vpack.c.bf16 %v4139_v6, %v4138_v5 }
0x108c   :  { %5705 = vmatprep.subr.bf16.mxu0 %v5782_v48  ;;  %v5708_v48 = vpack.c.bf16 %v4019_v24, %v4017_v21 }
0x108e   :  { %5709 = vmatprep.subr.bf16.mxu1 %v5708_v48 }
0x108f   :  { %5707 = vmatpush1.bf16.msra.mxu0 %v5706_v57  ;;  %v5740_v57 = vpack.c.bf16 %v4141_v17, %v4140_v16 }
0x1090   :  { %5717 = vmatprep.subr.bf16.mxu0 %v5716_v1 }
0x1135   :  { %v3807_v26 = vpop.f32.mrb[10].mxu0 }
0x1136   :  { %v3814_v29 = vmax.f32 %v3807_v26, 0.0  ;;  %v3809_v30 = vpop.f32.mrb[11].mxu0  ;;  %v4124_v26 = vld [vmem:[%s8405_s17 + $0x60] sm:$0xff] }
0x1137   :  { %v3815_v35 = vmax.f32 %v3809_v30, 0.0 }
0x1138   :  { %v3816_v37 = vadd.f32 %v3814_v29, %v6415_v11  ;;  %v4125_v29 = vld [vmem:[%s8405_s17 + $0x68] sm:$0xff] }
0x1139   :  { %v3817_v38 = vadd.f32 %v3815_v35, %v6413_v10  ;;  %v4018_v10 = vld [vmem:[%s8404_s15 + $0x10] sm:$0xff]  ;;  %v5742_v30 = vpack.c.bf16 %v4125_v29, %v4124_v26 }
0x113a   :  { %v3818_v39 = vmul.f32 %v3816_v37, %v7638_v34  ;;  %v5710_v11 = vpack.c.bf16 %v4018_v10, %v4016_v60  ;;  %v4021_v34 = vld [vmem:[%s8404_s15 + $0x28] sm:$0xff]  ;;  %v4142_v35 = vld [vmem:[%s8405_s17 + $0xf0] sm:$0xff]  ;;  %v4024_v10 = vld [vmem:[%s8406_s16] sm:$0x3] }
0x113b   :  { %v3819_v32 = vmul.f32 %v3817_v38, %v7640_v36  ;;  %4621 = vmatprep.mubr.msk.f32.mxu0 %vm107_vm0, %v3817_v38  ;;  %v4023_v36 = vld [vmem:[%s8404_s15 + $0x38] sm:$0xff] }
0x113c   :  { %4010 = vmatmul.mubr.f32.vlgmr.msra.gmra.mrb[20].mxu0 %v3816_v37  ;;  %v5712_v4 = vpack.c.bf16 %v4023_v36, %v4021_v34  ;;  %v4143_v37 = vld [vmem:[%s8405_s17 + $0xf8] sm:$0xff]  ;;  %v4033_v34 = vrot.slane %v4024_v10, %v6257_v47 }
0x113d   :  { %4620 = vmatprep.mubr.msk.f32.mxu1 %vm107_vm0, %v3819_v32  ;;  %5719 = vmatpush3.bf16.msra.mxu0 %v5718_v31  ;;  %v5744_v38 = vpack.c.bf16 %v4143_v37, %v4142_v35  ;;  %v4127_v32 = vld [vmem:[%s8405_s17 + $0x78] sm:$0xff] }
0x113e   :  { %3912 = vmatmul.mubr.f32.vlgmr.msra.gmra.mrb[42].mxu1 %v3818_v39  ;;  %5721 = vmatprep.subr.bf16.mxu0 %v5720_v27  ;;  %v4126_v39 = vld [vmem:[%s8405_s17 + $0x70] sm:$0xff] }
0x113f   :  { %4103 = vmatprep.mubr.f32.mxu1 %v5781_v3  ;;  %5711 = vmatpush1.bf16.msra.mxu1 %v5710_v11  ;;  %v4020_v3 = vld [vmem:[%s8404_s15 + $0x20] sm:$0xff]  ;;  %v5746_v60 = vpack.c.bf16 %v4127_v32, %v4126_v39  ;;  %v4029_v11 = vrot.slane %v4024_v10, %v6249_v45 }
0x1140   :  { %v5714_v12 = vpack.c.bf16 %v4022_v7, %v4020_v3  ;;  %5713 = vmatprep.subr.bf16.mxu1 %v5712_v4  ;;  %v4624_v45 = vld [vmem:[%s8408_s19] ss:$0 sm:$0xff] }
0x1141   :  { %5723 = vmatpush3.bf16.msra.mxu0 %v5722_v43 }
0x1142   :  { %5725 = vmatprep.subr.bf16.mxu0 %v5724_v44 }
0x1143   :  { %5715 = vmatpush1.bf16.msra.mxu1 %v5714_v12 }
0x1145   :  { %5727 = vmatpush3.bf16.msra.mxu0 %v5726_v52 }
0x1146   :  { %5729 = vmatprep.subr.bf16.mxu0 %v5728_v53 }
0x1149   :  { %5731 = vmatpush3.bf16.msra.mxu0 %v5730_v59 }
0x114a   :  { %5733 = vmatprep.subr.bf16.mxu0 %v5732_v63 }
0x114d   :  { %5735 = vmatpush3.bf16.msra.mxu0 %v5734_v8 }
0x114e   :  { %5737 = vmatprep.subr.bf16.mxu0 %v5736_v9 }
0x1151   :  { %5739 = vmatpush3.bf16.msra.mxu0 %v5738_v18 }
0x1152   :  { %5741 = vmatprep.subr.bf16.mxu0 %v5740_v57 }
0x1155   :  { %5743 = vmatpush3.bf16.msra.mxu0 %v5742_v30 }
0x1156   :  { %5745 = vmatprep.subr.bf16.mxu0 %v5744_v38 }
0x1159   :  { %5747 = vmatpush3.bf16.msra.mxu0 %v5746_v60 }
0x120f   :  { %v4011_v61 = vpop.f32.mrb[20].mxu0 }
0x1210   :  { %v4013_v62 = vpop.f32.mrb[21].mxu0 }
0x1211   :  { %v3913_v20 = vpop.f32.mrb[42].mxu1 }
0x1212   :  { %v3917_v21 = vmax.f32 %v3913_v20, 0.0  ;;  %v3915_v24 = vpop.f32.mrb[43].mxu1 }
0x1214   :  { %v4015_v48 = vadd.f32 %v4011_v61, %v3917_v21 }
0x1216   :  { %4622 = vmatmul.mubr.msk.f32.vlgmr.msra.gmra.mrb[44].mxu1 %vm612_vm2, %v4015_v48 }
0x12e9   :  { %v4105_v36 = vpop.f32.mrb[44].mxu1 }
0x12ea   :  { %v4106_v4 = vadd.f32 %v4105_v36, %v4029_v11  ;;  %v4107_v3 = vpop.f32.mrb[45].mxu1 }
0x12eb   :  { %v4108_v7 = vadd.f32 %v4107_v3, %v4033_v34 }
0x12ec   :  { %v4110_v15 = vmax.f32 %v4106_v4, 0.0 }
0x12ed   :  { %v4111_v12 = vmax.f32 %v4108_v7, 0.0 }
0x12ef   :  { %4215 = vmatprep.mubr.f32.mxu0 %v4111_v12 }
0x12f0   :  { %4216 = vmatmul.mubr.f32.vlgmr.msra.gmra.mrb[22].mxu0 %v4110_v15 }
0x13c3   :  { %v4674_v33 = vpop.f32.mrb[22].mxu0 }
0x13c4   :  { %v4675_v1 = vpop.f32.mrb[23].mxu0 }
0x13c5   :  { %v4676_v22 = vadd.f32 %v4675_v1, %v4674_v33 }
0x13c7   :  { %v4218_v25 = vadd.f32 %v4676_v22, %v4623_v19 }
0x13c9   :  { %5779 = vtanh.f32 %v4218_v25 }
0x13d3   :  { %v5780_v47 = vpop.eup %5779 }
0x13d4   :  { %v4229_v28 = vmul.f32 %v5780_v47, %v4624_v45 }
0x13d6   :  { %4231 = vst.msk [vmem:[%s8409_s20] sm:$0xff] %vm4230_vm7, %v4229_v28 }

</bundles_post_ra>
